<compile_context>
chip_gen: v7x
topology: tpu7x:2x2x1
jax: 0.10.0
libtpu: 0.0.40
codegen_flags: <defaults>
</compile_context>

<pallas_src>
import functools

import jax
import jax.numpy as jnp
from jax import lax
from jax.experimental import pallas as pl
from jax.experimental.pallas import tpu as pltpu


# (dh, dw) taps of the 3x3 window, row-major — must match the weight layout
# and the mask layout built in the wrapper.
_TAPS = tuple((dh, dw) for dh in range(3) for dw in range(3))


# ----------------------------------------------------------------------------
# Fused Inception_A kernel (single invocation, batch folded into the lanes)
# ----------------------------------------------------------------------------
def _inception_a_kernel(x_ref, m_ref, we_ref, be_ref,
                        w1_ref, b1_ref, w2a_ref, b2a_ref, w2b_ref, b2b_ref,
                        o_ref, xcm_ref, pad_ref, *, N, H, W, PAD):
    # x_ref  : (N, 192, H*W)  f32   channel-major input (pure reshape of NCHW)
    # m_ref  : (9, 1, N*H*W)  f32   per-tap validity masks
    # we_ref : (160, 192)     bf16  four entry 1x1 convs, BN scale folded
    # be_ref : (160, 1)       f32   entry biases
    # w*_ref : (9, 48, Cin)   bf16  per-tap 3x3 weights, BN scale folded
    # b*_ref : (48, 1)        f32
    # o_ref  : (N, 192, H*W)  f32
    # xcm_ref: (192, N*H*W)   f32   scratch: batch-folded channel-major x
    # pad_ref: (48, N*H*W + 2*PAD) f32 scratch: shared halo buffer for shifts
    HW = H * W
    NHW = N * HW

    # --- zero the halo scratch once; interior is rewritten before every read,
    #     halo columns act as the conv zero padding (reads there are masked
    #     anyway, zeroing just avoids 0 * garbage) -----------------------------
    pad_ref[...] = jnp.zeros(pad_ref.shape, jnp.float32)

    # --- fold the batch into the lane axis: channel-major x (192, N*HW) ------
    for n in range(N):
        xcm_ref[:, n * HW:(n + 1) * HW] = x_ref[n]
    x_cm = xcm_ref[...]

    # --- the four branch-entry 1x1 convs as ONE MXU matmul (bf16 operands) ---
    y = jnp.dot(we_ref[...], x_cm.astype(jnp.bfloat16),
                preferred_element_type=jnp.float32)                # (160, NHW)

    # --- inverse valid-count of the 3x3 window (count_include_pad=False) -----
    cnt = m_ref[0]
    for j in range(1, 9):
        cnt = cnt + m_ref[j]
    inv_cnt = 1.0 / cnt                                            # (1, NHW)

    def conv3x3(t_cm, w_ref, b_ref):
        """3x3 / pad=1 conv as 9 shift-and-accumulate MXU matmuls (f32 acc)."""
        cin = t_cm.shape[0]
        pad_ref[0:cin, PAD:PAD + NHW] = t_cm
        acc = jnp.zeros((48, NHW), jnp.float32)
        for j, (dh, dw) in enumerate(_TAPS):
            s = (dh - 1) * W + (dw - 1)
            if s == 0:                         # center tap: mask is all-ones
                src = t_cm
            else:
                src = pad_ref[0:cin, PAD + s:PAD + s + NHW] * m_ref[j]
            acc = acc + jnp.dot(w_ref[j], src.astype(jnp.bfloat16),
                                preferred_element_type=jnp.float32)
        return jnp.maximum(acc + b_ref[...], 0.0)

    def store_branch(b, val):
        """val (48, N*HW) channel-major -> o_ref[n, 48b:48b+48, :]."""
        for n in range(N):
            o_ref[n, 48 * b:48 * (b + 1), :] = val[:, n * HW:(n + 1) * HW]

    # ---- branch0: 1x1 -------------------------------------------------------
    store_branch(0, jnp.maximum(y[0:48, :] + be_ref[0:48, :], 0.0))

    # ---- branch1: 1x1 -> 3x3 ------------------------------------------------
    t1 = jnp.maximum(y[48:80, :] + be_ref[48:80, :], 0.0)
    store_branch(1, conv3x3(t1, w1_ref, b1_ref))

    # ---- branch2: 1x1 -> 3x3 -> 3x3 -----------------------------------------
    t2 = jnp.maximum(y[80:112, :] + be_ref[80:112, :], 0.0)
    u2 = conv3x3(t2, w2a_ref, b2a_ref)
    store_branch(2, conv3x3(u2, w2b_ref, b2b_ref))

    # ---- branch3: 1x1 first (commutes exactly with the avg-pool), then the
    #      3x3 average pool over 48 channels with the valid-count divisor -----
    z3 = y[112:160, :]                                             # no bias yet
    pad_ref[0:48, PAD:PAD + NHW] = z3
    pooled = z3                                                    # center tap
    for j, (dh, dw) in enumerate(_TAPS):
        if dh == 1 and dw == 1:
            continue
        s = (dh - 1) * W + (dw - 1)
        pooled = pooled + pad_ref[0:48, PAD + s:PAD + s + NHW] * m_ref[j]
    store_branch(3, jnp.maximum(pooled * inv_cnt + be_ref[112:160, :], 0.0))


# ----------------------------------------------------------------------------
# Wrapper
# ----------------------------------------------------------------------------
def _make_tap_masks(N, H, W):
    """mask[j, 0, n*HW + h*W + w] = 1 iff (h+dh-1, w+dw-1) is inside the image."""
    hh = jnp.arange(H).reshape(H, 1)
    ww = jnp.arange(W).reshape(1, W)
    rows = []
    for dh in range(3):
        for dw in range(3):
            mh = (hh + dh - 1 >= 0) & (hh + dh - 1 < H)
            mw = (ww + dw - 1 >= 0) & (ww + dw - 1 < W)
            m = (mh & mw).astype(jnp.float32).reshape(H * W)
            rows.append(jnp.tile(m, N))
    return jnp.stack(rows, axis=0).reshape(9, 1, N * H * W)


def inception_a_pallas(x_nchw, kp):
    N, C, H, W = x_nchw.shape
    assert C == 192
    HW = H * W
    NHW = N * HW
    PAD = 128                      # halo width: >= W+1 and lane-aligned interior
    assert W + 1 <= PAD

    x3d = x_nchw.reshape(N, C, HW)             # free reshape, NO transpose
    masks = _make_tap_masks(N, H, W)

    kernel = functools.partial(_inception_a_kernel, N=N, H=H, W=W, PAD=PAD)
    vmem = pl.BlockSpec(memory_space=pltpu.MemorySpace.VMEM)

    out = pl.pallas_call(
        kernel,
        out_shape=jax.ShapeDtypeStruct((N, 192, HW), jnp.float32),
        in_specs=[vmem] * 10,
        out_specs=vmem,
        scratch_shapes=[
            pltpu.VMEM((192, NHW), jnp.float32),           # batch-folded x
            pltpu.VMEM((48, NHW + 2 * PAD), jnp.float32),  # shared halo buffer
        ],
    )(x3d, masks, kp["w_entry_t"], kp["b_entry"],
      kp["w_b1_t"], kp["b_b1"], kp["w_b2a_t"], kp["b_b2a"],
      kp["w_b2b_t"], kp["b_b2b"])
    return out.reshape(N, 192, H, W)           # free reshape, NO transpose


@jax.jit
def inception_a_forward(x_nchw, kernel_params):
    return inception_a_pallas(x_nchw, kernel_params)


# ----------------------------------------------------------------------------
# Parameter construction (deterministic, synthetic) + BN folding
# ----------------------------------------------------------------------------
def make_basic_conv_params(key, cin, cout, ksize):
    kw, kg, kb, km, kv = jax.random.split(key, 5)
    if ksize == 1:
        w = jax.random.normal(kw, (cin, cout), jnp.float32) * 0.05
    else:  # 3x3, stored as (9, Cin, Cout) in (dh, dw) row-major order
        w = jax.random.normal(kw, (ksize * ksize, cin, cout), jnp.float32) * 0.05
    gamma = jax.random.uniform(kg, (cout,), jnp.float32, 0.5, 1.5)
    beta = jax.random.normal(kb, (cout,), jnp.float32) * 0.1
    rmean = jax.random.normal(km, (cout,), jnp.float32) * 0.1
    rvar = jax.random.uniform(kv, (cout,), jnp.float32, 0.5, 1.5)
    eps = 1e-3                                  # BatchNorm2d(eps=0.001)
    scale = gamma / jnp.sqrt(rvar + eps)
    bias = beta - rmean * scale
    return w, scale.reshape(1, cout), bias.reshape(1, cout)


def make_inception_a_params(key):
    keys = jax.random.split(key, 7)
    return {
        "b0": make_basic_conv_params(keys[0], 192, 48, 1),
        "b1_0": make_basic_conv_params(keys[1], 192, 32, 1),
        "b1_1": make_basic_conv_params(keys[2], 32, 48, 3),
        "b2_0": make_basic_conv_params(keys[3], 192, 32, 1),
        "b2_1": make_basic_conv_params(keys[4], 32, 48, 3),
        "b2_2": make_basic_conv_params(keys[5], 48, 48, 3),
        "b3": make_basic_conv_params(keys[6], 192, 48, 1),
    }


def fold_params_for_kernel(params):
    """Fold BN scale into the conv weights, transpose to channel-major layouts,
    concat the four entry 1x1 convs, and cast matmul weights to bfloat16."""
    def fold1(p):                                # -> (Cin, Cout), (1, Cout)
        w, s, b = p
        return w * s, b

    def fold3_t(p):                              # -> (9, Cout, Cin) bf16, (Cout,1)
        w, s, b = p                              # w: (9, Cin, Cout)
        wf = w * s.reshape(1, 1, -1)
        wt = jnp.transpose(wf, (0, 2, 1)).astype(jnp.bfloat16)
        return wt, jnp.transpose(b)

    w0, b0 = fold1(params["b0"])
    w10, b10 = fold1(params["b1_0"])
    w20, b20 = fold1(params["b2_0"])
    w3, b3 = fold1(params["b3"])
    w_entry = jnp.concatenate([w0, w10, w20, w3], axis=1)     # (192, 160)
    b_entry = jnp.concatenate([b0, b10, b20, b3], axis=1)     # (1, 160)
    w1t, b1 = fold3_t(params["b1_1"])
    w2at, b2a = fold3_t(params["b2_1"])
    w2bt, b2b = fold3_t(params["b2_2"])
    return {
        "w_entry_t": jnp.transpose(w_entry).astype(jnp.bfloat16),  # (160, 192)
        "b_entry": jnp.transpose(b_entry),                          # (160, 1)
        "w_b1_t": w1t, "b_b1": b1,                                  # (9,48,32)
        "w_b2a_t": w2at, "b_b2a": b2a,                              # (9,48,32)
        "w_b2b_t": w2bt, "b_b2b": b2b,                              # (9,48,48)
    }


# ----------------------------------------------------------------------------
# Pure-JAX reference (f32, HIGHEST precision, unfolded per-conv parameters)
# ----------------------------------------------------------------------------
def _ref_conv1x1(x, w, s, b):
    y = jnp.einsum("nhwc,cd->nhwd", x, w, precision=lax.Precision.HIGHEST)
    y = y * s.reshape(-1) + b.reshape(-1)
    return jnp.maximum(y, 0.0)


def _ref_conv3x3(x, w9, s, b):
    w = w9.reshape(3, 3, w9.shape[1], w9.shape[2])
    y = lax.conv_general_dilated(
        x, w, (1, 1), "SAME", dimension_numbers=("NHWC", "HWIO", "NHWC"),
        precision=lax.Precision.HIGHEST)
    y = y * s.reshape(-1) + b.reshape(-1)
    return jnp.maximum(y, 0.0)


def _ref_avgpool_conv1x1(x, w, s, b):
    ssum = lax.reduce_window(x, 0.0, lax.add, (1, 3, 3, 1), (1, 1, 1, 1), "SAME")
    cnt = lax.reduce_window(jnp.ones_like(x), 0.0, lax.add,
                            (1, 3, 3, 1), (1, 1, 1, 1), "SAME")
    pooled = ssum / cnt                          # count_include_pad=False
    return _ref_conv1x1(pooled, w, s, b)


def inception_a_reference(x_nchw, params):
    x = jnp.transpose(x_nchw, (0, 2, 3, 1))
    w, s, b = params["b0"]; x0 = _ref_conv1x1(x, w, s, b)
    w, s, b = params["b1_0"]; t = _ref_conv1x1(x, w, s, b)
    w, s, b = params["b1_1"]; x1 = _ref_conv3x3(t, w, s, b)
    w, s, b = params["b2_0"]; t = _ref_conv1x1(x, w, s, b)
    w, s, b = params["b2_1"]; t = _ref_conv3x3(t, w, s, b)
    w, s, b = params["b2_2"]; x2 = _ref_conv3x3(t, w, s, b)
    w, s, b = params["b3"]; x3 = _ref_avgpool_conv1x1(x, w, s, b)
    out = jnp.concatenate([x0, x1, x2, x3], axis=-1)
    return jnp.transpose(out, (0, 3, 1, 2))


# ----------------------------------------------------------------------------
if __name__ == "__main__":
    key = jax.random.PRNGKey(0)
    kx, kp_key = jax.random.split(key)

    N, C, H, W = 2, 192, 8, 8          # Inception_A requires 192 input channels
    x = jax.random.normal(kx, (N, C, H, W), jnp.float32)
    params = make_inception_a_params(kp_key)
    kernel_params = fold_params_for_kernel(params)

    out = jax.block_until_ready(inception_a_forward(x, kernel_params))
    assert out.shape == (N, 192, H, W), out.shape

    ref = jax.block_until_ready(inception_a_reference(x, params))
    # Tolerance accounts for intentional bf16 matmul operands (f32 accumulation)
    # along the 3-conv-deep branch2 path vs the HIGHEST-precision f32 reference;
    # the exact algebraic reorderings (BN fold, pool/conv commute) add nothing.
    assert jnp.allclose(out, ref, atol=5e-2, rtol=5e-2), float(
        jnp.max(jnp.abs(out - ref)))

    print("KERNEL_OK")
</pallas_src>

<mosaic_0001>
module attributes {stable_mosaic.version = 11 : i64} {
  func.func @_inception_a_kernel(%arg0: memref<2x192x64xf32, #tpu.memory_space<vmem>>, %arg1: memref<9x1x128xf32, #tpu.memory_space<vmem>>, %arg2: memref<160x192xbf16, #tpu.memory_space<vmem>>, %arg3: memref<160x1xf32, #tpu.memory_space<vmem>>, %arg4: memref<9x48x32xbf16, #tpu.memory_space<vmem>>, %arg5: memref<48x1xf32, #tpu.memory_space<vmem>>, %arg6: memref<9x48x32xbf16, #tpu.memory_space<vmem>>, %arg7: memref<48x1xf32, #tpu.memory_space<vmem>>, %arg8: memref<9x48x48xbf16, #tpu.memory_space<vmem>>, %arg9: memref<48x1xf32, #tpu.memory_space<vmem>>, %arg10: memref<2x192x64xf32, #tpu.memory_space<vmem>>, %arg11: memref<192x128xf32, #tpu.memory_space<vmem>>, %arg12: memref<48x384xf32, #tpu.memory_space<vmem>>) attributes {dimension_semantics = [], scalar_prefetch = 0 : i64, scratch_operands = 2 : i64, tpu.core_type = #tpu.core_type<tc>} {
    %cst = arith.constant 0.000000e+00 : f32
    %0 = vector.broadcast %cst : f32 to vector<48x384xf32>
    %c0 = arith.constant 0 : index
    %c0_0 = arith.constant 0 : index
    %1 = vector.load %arg12[%c0, %c0_0] : memref<48x384xf32, #tpu.memory_space<vmem>>, vector<48x384xf32>
    tpu.vector_store %arg12[%c0, %c0_0], %0 {strides = array<i32>} : memref<48x384xf32, #tpu.memory_space<vmem>>, vector<48x384xf32>,
    %c0_1 = arith.constant 0 : index
    %c0_2 = arith.constant 0 : index
    %c0_3 = arith.constant 0 : index
    %2 = vector.load %arg0[%c0_1, %c0_2, %c0_3] : memref<2x192x64xf32, #tpu.memory_space<vmem>>, vector<1x192x64xf32>
    %3 = vector.shape_cast %2 : vector<1x192x64xf32> to vector<192x64xf32>
    %c0_4 = arith.constant 0 : index
    %c0_5 = arith.constant 0 : index
    %4 = vector.load %arg11[%c0_4, %c0_5] : memref<192x128xf32, #tpu.memory_space<vmem>>, vector<192x64xf32>
    tpu.vector_store %arg11[%c0_4, %c0_5], %3 {strides = array<i32>} : memref<192x128xf32, #tpu.memory_space<vmem>>, vector<192x64xf32>,
    %c1 = arith.constant 1 : index
    %c0_6 = arith.constant 0 : index
    %c0_7 = arith.constant 0 : index
    %5 = vector.load %arg0[%c1, %c0_6, %c0_7] : memref<2x192x64xf32, #tpu.memory_space<vmem>>, vector<1x192x64xf32>
    %6 = vector.shape_cast %5 : vector<1x192x64xf32> to vector<192x64xf32>
    %c0_8 = arith.constant 0 : index
    %c64 = arith.constant 64 : index
    %7 = vector.load %arg11[%c0_8, %c64] : memref<192x128xf32, #tpu.memory_space<vmem>>, vector<192x64xf32>
    tpu.vector_store %arg11[%c0_8, %c64], %6 {strides = array<i32>} : memref<192x128xf32, #tpu.memory_space<vmem>>, vector<192x64xf32>,
    %c0_9 = arith.constant 0 : index
    %c0_10 = arith.constant 0 : index
    %8 = vector.load %arg11[%c0_9, %c0_10] : memref<192x128xf32, #tpu.memory_space<vmem>>, vector<192x128xf32>
    %c0_11 = arith.constant 0 : index
    %c0_12 = arith.constant 0 : index
    %9 = vector.load %arg2[%c0_11, %c0_12] : memref<160x192xbf16, #tpu.memory_space<vmem>>, vector<160x192xbf16>
    %10 = arith.truncf %8 : vector<192x128xf32> to vector<192x128xbf16>
    %cst_13 = arith.constant dense<0.000000e+00> : vector<160x128xf32>
    %11 = tpu.matmul %9, %10, %cst_13 {dimension_numbers = #tpu.dot_dimension_numbers<[1], [0], [0], [1], [0, 0, 1, 1], [], []>} : vector<160x192xbf16>, vector<192x128xbf16>, vector<160x128xf32> -> vector<160x128xf32>
    %c0_14 = arith.constant 0 : index
    %c0_15 = arith.constant 0 : index
    %c0_16 = arith.constant 0 : index
    %12 = vector.load %arg1[%c0_14, %c0_15, %c0_16] : memref<9x1x128xf32, #tpu.memory_space<vmem>>, vector<1x1x128xf32>
    %13 = vector.shape_cast %12 : vector<1x1x128xf32> to vector<1x128xf32>
    %c1_17 = arith.constant 1 : index
    %c0_18 = arith.constant 0 : index
    %c0_19 = arith.constant 0 : index
    %14 = vector.load %arg1[%c1_17, %c0_18, %c0_19] : memref<9x1x128xf32, #tpu.memory_space<vmem>>, vector<1x1x128xf32>
    %15 = vector.shape_cast %14 : vector<1x1x128xf32> to vector<1x128xf32>
    %16 = arith.addf %13, %15 : vector<1x128xf32>
    %c2 = arith.constant 2 : index
    %c0_20 = arith.constant 0 : index
    %c0_21 = arith.constant 0 : index
    %17 = vector.load %arg1[%c2, %c0_20, %c0_21] : memref<9x1x128xf32, #tpu.memory_space<vmem>>, vector<1x1x128xf32>
    %18 = vector.shape_cast %17 : vector<1x1x128xf32> to vector<1x128xf32>
    %19 = arith.addf %16, %18 : vector<1x128xf32>
    %c3 = arith.constant 3 : index
    %c0_22 = arith.constant 0 : index
    %c0_23 = arith.constant 0 : index
    %20 = vector.load %arg1[%c3, %c0_22, %c0_23] : memref<9x1x128xf32, #tpu.memory_space<vmem>>, vector<1x1x128xf32>
    %21 = vector.shape_cast %20 : vector<1x1x128xf32> to vector<1x128xf32>
    %22 = arith.addf %19, %21 : vector<1x128xf32>
    %c4 = arith.constant 4 : index
    %c0_24 = arith.constant 0 : index
    %c0_25 = arith.constant 0 : index
    %23 = vector.load %arg1[%c4, %c0_24, %c0_25] : memref<9x1x128xf32, #tpu.memory_space<vmem>>, vector<1x1x128xf32>
    %24 = vector.shape_cast %23 : vector<1x1x128xf32> to vector<1x128xf32>
    %25 = arith.addf %22, %24 : vector<1x128xf32>
    %c5 = arith.constant 5 : index
    %c0_26 = arith.constant 0 : index
    %c0_27 = arith.constant 0 : index
    %26 = vector.load %arg1[%c5, %c0_26, %c0_27] : memref<9x1x128xf32, #tpu.memory_space<vmem>>, vector<1x1x128xf32>
    %27 = vector.shape_cast %26 : vector<1x1x128xf32> to vector<1x128xf32>
    %28 = arith.addf %25, %27 : vector<1x128xf32>
    %c6 = arith.constant 6 : index
    %c0_28 = arith.constant 0 : index
    %c0_29 = arith.constant 0 : index
    %29 = vector.load %arg1[%c6, %c0_28, %c0_29] : memref<9x1x128xf32, #tpu.memory_space<vmem>>, vector<1x1x128xf32>
    %30 = vector.shape_cast %29 : vector<1x1x128xf32> to vector<1x128xf32>
    %31 = arith.addf %28, %30 : vector<1x128xf32>
    %c7 = arith.constant 7 : index
    %c0_30 = arith.constant 0 : index
    %c0_31 = arith.constant 0 : index
    %32 = vector.load %arg1[%c7, %c0_30, %c0_31] : memref<9x1x128xf32, #tpu.memory_space<vmem>>, vector<1x1x128xf32>
    %33 = vector.shape_cast %32 : vector<1x1x128xf32> to vector<1x128xf32>
    %34 = arith.addf %31, %33 : vector<1x128xf32>
    %c8 = arith.constant 8 : index
    %c0_32 = arith.constant 0 : index
    %c0_33 = arith.constant 0 : index
    %35 = vector.load %arg1[%c8, %c0_32, %c0_33] : memref<9x1x128xf32, #tpu.memory_space<vmem>>, vector<1x1x128xf32>
    %36 = vector.shape_cast %35 : vector<1x1x128xf32> to vector<1x128xf32>
    %37 = arith.addf %34, %36 : vector<1x128xf32>
    %cst_34 = arith.constant 1.000000e+00 : f32
    %38 = vector.broadcast %cst_34 : f32 to vector<1x128xf32>
    %39 = arith.divf %38, %37 : vector<1x128xf32>
    %40 = vector.extract_strided_slice %11 {offsets = [0, 0], sizes = [48, 128], strides = [1, 1]} : vector<160x128xf32> to vector<48x128xf32>
    %c0_35 = arith.constant 0 : index
    %c0_36 = arith.constant 0 : index
    %41 = vector.load %arg3[%c0_35, %c0_36] : memref<160x1xf32, #tpu.memory_space<vmem>>, vector<48x1xf32>
    %42 = vector.broadcast %41 : vector<48x1xf32> to vector<48x128xf32>
    %43 = arith.addf %40, %42 : vector<48x128xf32>
    %cst_37 = arith.constant 0.000000e+00 : f32
    %44 = vector.broadcast %cst_37 : f32 to vector<48x128xf32>
    %45 = arith.maximumf %43, %44 : vector<48x128xf32>
    %46 = vector.extract_strided_slice %45 {offsets = [0, 0], sizes = [48, 64], strides = [1, 1]} : vector<48x128xf32> to vector<48x64xf32>
    %c0_38 = arith.constant 0 : index
    %c0_39 = arith.constant 0 : index
    %c0_40 = arith.constant 0 : index
    %47 = vector.load %arg10[%c0_38, %c0_39, %c0_40] : memref<2x192x64xf32, #tpu.memory_space<vmem>>, vector<1x48x64xf32>
    %48 = vector.shape_cast %47 : vector<1x48x64xf32> to vector<48x64xf32>
    %49 = vector.shape_cast %46 : vector<48x64xf32> to vector<1x48x64xf32>
    tpu.vector_store %arg10[%c0_38, %c0_39, %c0_40], %49 {strides = array<i32>} : memref<2x192x64xf32, #tpu.memory_space<vmem>>, vector<1x48x64xf32>,
    %50 = vector.extract_strided_slice %45 {offsets = [0, 64], sizes = [48, 64], strides = [1, 1]} : vector<48x128xf32> to vector<48x64xf32>
    %c1_41 = arith.constant 1 : index
    %c0_42 = arith.constant 0 : index
    %c0_43 = arith.constant 0 : index
    %51 = vector.load %arg10[%c1_41, %c0_42, %c0_43] : memref<2x192x64xf32, #tpu.memory_space<vmem>>, vector<1x48x64xf32>
    %52 = vector.shape_cast %51 : vector<1x48x64xf32> to vector<48x64xf32>
    %53 = vector.shape_cast %50 : vector<48x64xf32> to vector<1x48x64xf32>
    tpu.vector_store %arg10[%c1_41, %c0_42, %c0_43], %53 {strides = array<i32>} : memref<2x192x64xf32, #tpu.memory_space<vmem>>, vector<1x48x64xf32>,
    %54 = vector.extract_strided_slice %11 {offsets = [48, 0], sizes = [32, 128], strides = [1, 1]} : vector<160x128xf32> to vector<32x128xf32>
    %c48 = arith.constant 48 : index
    %c0_44 = arith.constant 0 : index
    %55 = vector.load %arg3[%c48, %c0_44] : memref<160x1xf32, #tpu.memory_space<vmem>>, vector<32x1xf32>
    %56 = vector.broadcast %55 : vector<32x1xf32> to vector<32x128xf32>
    %57 = arith.addf %54, %56 : vector<32x128xf32>
    %cst_45 = arith.constant 0.000000e+00 : f32
    %58 = vector.broadcast %cst_45 : f32 to vector<32x128xf32>
    %59 = arith.maximumf %57, %58 : vector<32x128xf32>
    %c0_46 = arith.constant 0 : index
    %c128 = arith.constant 128 : index
    %60 = vector.load %arg12[%c0_46, %c128] : memref<48x384xf32, #tpu.memory_space<vmem>>, vector<32x128xf32>
    tpu.vector_store %arg12[%c0_46, %c128], %59 {strides = array<i32>} : memref<48x384xf32, #tpu.memory_space<vmem>>, vector<32x128xf32>,
    %cst_47 = arith.constant 0.000000e+00 : f32
    %61 = vector.broadcast %cst_47 : f32 to vector<48x128xf32>
    %c0_48 = arith.constant 0 : index
    %c119 = arith.constant 119 : index
    %62 = vector.load %arg12[%c0_48, %c119] : memref<48x384xf32, #tpu.memory_space<vmem>>, vector<32x128xf32>
    %c0_49 = arith.constant 0 : index
    %c0_50 = arith.constant 0 : index
    %c0_51 = arith.constant 0 : index
    %63 = vector.load %arg1[%c0_49, %c0_50, %c0_51] : memref<9x1x128xf32, #tpu.memory_space<vmem>>, vector<1x1x128xf32>
    %64 = vector.shape_cast %63 : vector<1x1x128xf32> to vector<1x128xf32>
    %65 = vector.broadcast %64 : vector<1x128xf32> to vector<32x128xf32>
    %66 = arith.mulf %62, %65 : vector<32x128xf32>
    %c0_52 = arith.constant 0 : index
    %c0_53 = arith.constant 0 : index
    %c0_54 = arith.constant 0 : index
    %67 = vector.load %arg4[%c0_52, %c0_53, %c0_54] : memref<9x48x32xbf16, #tpu.memory_space<vmem>>, vector<1x48x32xbf16>
    %68 = vector.shape_cast %67 : vector<1x48x32xbf16> to vector<48x32xbf16>
    %69 = arith.truncf %66 : vector<32x128xf32> to vector<32x128xbf16>
    %cst_55 = arith.constant dense<0.000000e+00> : vector<48x128xf32>
    %70 = tpu.matmul %68, %69, %cst_55 {dimension_numbers = #tpu.dot_dimension_numbers<[1], [0], [0], [1], [0, 0, 1, 1], [], []>} : vector<48x32xbf16>, vector<32x128xbf16>, vector<48x128xf32> -> vector<48x128xf32>
    %71 = arith.addf %61, %70 : vector<48x128xf32>
    %c0_56 = arith.constant 0 : index
    %c120 = arith.constant 120 : index
    %72 = vector.load %arg12[%c0_56, %c120] : memref<48x384xf32, #tpu.memory_space<vmem>>, vector<32x128xf32>
    %c1_57 = arith.constant 1 : index
    %c0_58 = arith.constant 0 : index
    %c0_59 = arith.constant 0 : index
    %73 = vector.load %arg1[%c1_57, %c0_58, %c0_59] : memref<9x1x128xf32, #tpu.memory_space<vmem>>, vector<1x1x128xf32>
    %74 = vector.shape_cast %73 : vector<1x1x128xf32> to vector<1x128xf32>
    %75 = vector.broadcast %74 : vector<1x128xf32> to vector<32x128xf32>
    %76 = arith.mulf %72, %75 : vector<32x128xf32>
    %c1_60 = arith.constant 1 : index
    %c0_61 = arith.constant 0 : index
    %c0_62 = arith.constant 0 : index
    %77 = vector.load %arg4[%c1_60, %c0_61, %c0_62] : memref<9x48x32xbf16, #tpu.memory_space<vmem>>, vector<1x48x32xbf16>
    %78 = vector.shape_cast %77 : vector<1x48x32xbf16> to vector<48x32xbf16>
    %79 = arith.truncf %76 : vector<32x128xf32> to vector<32x128xbf16>
    %cst_63 = arith.constant dense<0.000000e+00> : vector<48x128xf32>
    %80 = tpu.matmul %78, %79, %cst_63 {dimension_numbers = #tpu.dot_dimension_numbers<[1], [0], [0], [1], [0, 0, 1, 1], [], []>} : vector<48x32xbf16>, vector<32x128xbf16>, vector<48x128xf32> -> vector<48x128xf32>
    %81 = arith.addf %71, %80 : vector<48x128xf32>
    %c0_64 = arith.constant 0 : index
    %c121 = arith.constant 121 : index
    %82 = vector.load %arg12[%c0_64, %c121] : memref<48x384xf32, #tpu.memory_space<vmem>>, vector<32x128xf32>
    %c2_65 = arith.constant 2 : index
    %c0_66 = arith.constant 0 : index
    %c0_67 = arith.constant 0 : index
    %83 = vector.load %arg1[%c2_65, %c0_66, %c0_67] : memref<9x1x128xf32, #tpu.memory_space<vmem>>, vector<1x1x128xf32>
    %84 = vector.shape_cast %83 : vector<1x1x128xf32> to vector<1x128xf32>
    %85 = vector.broadcast %84 : vector<1x128xf32> to vector<32x128xf32>
    %86 = arith.mulf %82, %85 : vector<32x128xf32>
    %c2_68 = arith.constant 2 : index
    %c0_69 = arith.constant 0 : index
    %c0_70 = arith.constant 0 : index
    %87 = vector.load %arg4[%c2_68, %c0_69, %c0_70] : memref<9x48x32xbf16, #tpu.memory_space<vmem>>, vector<1x48x32xbf16>
    %88 = vector.shape_cast %87 : vector<1x48x32xbf16> to vector<48x32xbf16>
    %89 = arith.truncf %86 : vector<32x128xf32> to vector<32x128xbf16>
    %cst_71 = arith.constant dense<0.000000e+00> : vector<48x128xf32>
    %90 = tpu.matmul %88, %89, %cst_71 {dimension_numbers = #tpu.dot_dimension_numbers<[1], [0], [0], [1], [0, 0, 1, 1], [], []>} : vector<48x32xbf16>, vector<32x128xbf16>, vector<48x128xf32> -> vector<48x128xf32>
    %91 = arith.addf %81, %90 : vector<48x128xf32>
    %c0_72 = arith.constant 0 : index
    %c127 = arith.constant 127 : index
    %92 = vector.load %arg12[%c0_72, %c127] : memref<48x384xf32, #tpu.memory_space<vmem>>, vector<32x128xf32>
    %c3_73 = arith.constant 3 : index
    %c0_74 = arith.constant 0 : index
    %c0_75 = arith.constant 0 : index
    %93 = vector.load %arg1[%c3_73, %c0_74, %c0_75] : memref<9x1x128xf32, #tpu.memory_space<vmem>>, vector<1x1x128xf32>
    %94 = vector.shape_cast %93 : vector<1x1x128xf32> to vector<1x128xf32>
    %95 = vector.broadcast %94 : vector<1x128xf32> to vector<32x128xf32>
    %96 = arith.mulf %92, %95 : vector<32x128xf32>
    %c3_76 = arith.constant 3 : index
    %c0_77 = arith.constant 0 : index
    %c0_78 = arith.constant 0 : index
    %97 = vector.load %arg4[%c3_76, %c0_77, %c0_78] : memref<9x48x32xbf16, #tpu.memory_space<vmem>>, vector<1x48x32xbf16>
    %98 = vector.shape_cast %97 : vector<1x48x32xbf16> to vector<48x32xbf16>
    %99 = arith.truncf %96 : vector<32x128xf32> to vector<32x128xbf16>
    %cst_79 = arith.constant dense<0.000000e+00> : vector<48x128xf32>
    %100 = tpu.matmul %98, %99, %cst_79 {dimension_numbers = #tpu.dot_dimension_numbers<[1], [0], [0], [1], [0, 0, 1, 1], [], []>} : vector<48x32xbf16>, vector<32x128xbf16>, vector<48x128xf32> -> vector<48x128xf32>
    %101 = arith.addf %91, %100 : vector<48x128xf32>
    %c4_80 = arith.constant 4 : index
    %c0_81 = arith.constant 0 : index
    %c0_82 = arith.constant 0 : index
    %102 = vector.load %arg4[%c4_80, %c0_81, %c0_82] : memref<9x48x32xbf16, #tpu.memory_space<vmem>>, vector<1x48x32xbf16>
    %103 = vector.shape_cast %102 : vector<1x48x32xbf16> to vector<48x32xbf16>
    %104 = arith.truncf %59 : vector<32x128xf32> to vector<32x128xbf16>
    %cst_83 = arith.constant dense<0.000000e+00> : vector<48x128xf32>
    %105 = tpu.matmul %103, %104, %cst_83 {dimension_numbers = #tpu.dot_dimension_numbers<[1], [0], [0], [1], [0, 0, 1, 1], [], []>} : vector<48x32xbf16>, vector<32x128xbf16>, vector<48x128xf32> -> vector<48x128xf32>
    %106 = arith.addf %101, %105 : vector<48x128xf32>
    %c0_84 = arith.constant 0 : index
    %c129 = arith.constant 129 : index
    %107 = vector.load %arg12[%c0_84, %c129] : memref<48x384xf32, #tpu.memory_space<vmem>>, vector<32x128xf32>
    %c5_85 = arith.constant 5 : index
    %c0_86 = arith.constant 0 : index
    %c0_87 = arith.constant 0 : index
    %108 = vector.load %arg1[%c5_85, %c0_86, %c0_87] : memref<9x1x128xf32, #tpu.memory_space<vmem>>, vector<1x1x128xf32>
    %109 = vector.shape_cast %108 : vector<1x1x128xf32> to vector<1x128xf32>
    %110 = vector.broadcast %109 : vector<1x128xf32> to vector<32x128xf32>
    %111 = arith.mulf %107, %110 : vector<32x128xf32>
    %c5_88 = arith.constant 5 : index
    %c0_89 = arith.constant 0 : index
    %c0_90 = arith.constant 0 : index
    %112 = vector.load %arg4[%c5_88, %c0_89, %c0_90] : memref<9x48x32xbf16, #tpu.memory_space<vmem>>, vector<1x48x32xbf16>
    %113 = vector.shape_cast %112 : vector<1x48x32xbf16> to vector<48x32xbf16>
    %114 = arith.truncf %111 : vector<32x128xf32> to vector<32x128xbf16>
    %cst_91 = arith.constant dense<0.000000e+00> : vector<48x128xf32>
    %115 = tpu.matmul %113, %114, %cst_91 {dimension_numbers = #tpu.dot_dimension_numbers<[1], [0], [0], [1], [0, 0, 1, 1], [], []>} : vector<48x32xbf16>, vector<32x128xbf16>, vector<48x128xf32> -> vector<48x128xf32>
    %116 = arith.addf %106, %115 : vector<48x128xf32>
    %c0_92 = arith.constant 0 : index
    %c135 = arith.constant 135 : index
    %117 = vector.load %arg12[%c0_92, %c135] : memref<48x384xf32, #tpu.memory_space<vmem>>, vector<32x128xf32>
    %c6_93 = arith.constant 6 : index
    %c0_94 = arith.constant 0 : index
    %c0_95 = arith.constant 0 : index
    %118 = vector.load %arg1[%c6_93, %c0_94, %c0_95] : memref<9x1x128xf32, #tpu.memory_space<vmem>>, vector<1x1x128xf32>
    %119 = vector.shape_cast %118 : vector<1x1x128xf32> to vector<1x128xf32>
    %120 = vector.broadcast %119 : vector<1x128xf32> to vector<32x128xf32>
    %121 = arith.mulf %117, %120 : vector<32x128xf32>
    %c6_96 = arith.constant 6 : index
    %c0_97 = arith.constant 0 : index
    %c0_98 = arith.constant 0 : index
    %122 = vector.load %arg4[%c6_96, %c0_97, %c0_98] : memref<9x48x32xbf16, #tpu.memory_space<vmem>>, vector<1x48x32xbf16>
    %123 = vector.shape_cast %122 : vector<1x48x32xbf16> to vector<48x32xbf16>
    %124 = arith.truncf %121 : vector<32x128xf32> to vector<32x128xbf16>
    %cst_99 = arith.constant dense<0.000000e+00> : vector<48x128xf32>
    %125 = tpu.matmul %123, %124, %cst_99 {dimension_numbers = #tpu.dot_dimension_numbers<[1], [0], [0], [1], [0, 0, 1, 1], [], []>} : vector<48x32xbf16>, vector<32x128xbf16>, vector<48x128xf32> -> vector<48x128xf32>
    %126 = arith.addf %116, %125 : vector<48x128xf32>
    %c0_100 = arith.constant 0 : index
    %c136 = arith.constant 136 : index
    %127 = vector.load %arg12[%c0_100, %c136] : memref<48x384xf32, #tpu.memory_space<vmem>>, vector<32x128xf32>
    %c7_101 = arith.constant 7 : index
    %c0_102 = arith.constant 0 : index
    %c0_103 = arith.constant 0 : index
    %128 = vector.load %arg1[%c7_101, %c0_102, %c0_103] : memref<9x1x128xf32, #tpu.memory_space<vmem>>, vector<1x1x128xf32>
    %129 = vector.shape_cast %128 : vector<1x1x128xf32> to vector<1x128xf32>
    %130 = vector.broadcast %129 : vector<1x128xf32> to vector<32x128xf32>
    %131 = arith.mulf %127, %130 : vector<32x128xf32>
    %c7_104 = arith.constant 7 : index
    %c0_105 = arith.constant 0 : index
    %c0_106 = arith.constant 0 : index
    %132 = vector.load %arg4[%c7_104, %c0_105, %c0_106] : memref<9x48x32xbf16, #tpu.memory_space<vmem>>, vector<1x48x32xbf16>
    %133 = vector.shape_cast %132 : vector<1x48x32xbf16> to vector<48x32xbf16>
    %134 = arith.truncf %131 : vector<32x128xf32> to vector<32x128xbf16>
    %cst_107 = arith.constant dense<0.000000e+00> : vector<48x128xf32>
    %135 = tpu.matmul %133, %134, %cst_107 {dimension_numbers = #tpu.dot_dimension_numbers<[1], [0], [0], [1], [0, 0, 1, 1], [], []>} : vector<48x32xbf16>, vector<32x128xbf16>, vector<48x128xf32> -> vector<48x128xf32>
    %136 = arith.addf %126, %135 : vector<48x128xf32>
    %c0_108 = arith.constant 0 : index
    %c137 = arith.constant 137 : index
    %137 = vector.load %arg12[%c0_108, %c137] : memref<48x384xf32, #tpu.memory_space<vmem>>, vector<32x128xf32>
    %c8_109 = arith.constant 8 : index
    %c0_110 = arith.constant 0 : index
    %c0_111 = arith.constant 0 : index
    %138 = vector.load %arg1[%c8_109, %c0_110, %c0_111] : memref<9x1x128xf32, #tpu.memory_space<vmem>>, vector<1x1x128xf32>
    %139 = vector.shape_cast %138 : vector<1x1x128xf32> to vector<1x128xf32>
    %140 = vector.broadcast %139 : vector<1x128xf32> to vector<32x128xf32>
    %141 = arith.mulf %137, %140 : vector<32x128xf32>
    %c8_112 = arith.constant 8 : index
    %c0_113 = arith.constant 0 : index
    %c0_114 = arith.constant 0 : index
    %142 = vector.load %arg4[%c8_112, %c0_113, %c0_114] : memref<9x48x32xbf16, #tpu.memory_space<vmem>>, vector<1x48x32xbf16>
    %143 = vector.shape_cast %142 : vector<1x48x32xbf16> to vector<48x32xbf16>
    %144 = arith.truncf %141 : vector<32x128xf32> to vector<32x128xbf16>
    %cst_115 = arith.constant dense<0.000000e+00> : vector<48x128xf32>
    %145 = tpu.matmul %143, %144, %cst_115 {dimension_numbers = #tpu.dot_dimension_numbers<[1], [0], [0], [1], [0, 0, 1, 1], [], []>} : vector<48x32xbf16>, vector<32x128xbf16>, vector<48x128xf32> -> vector<48x128xf32>
    %146 = arith.addf %136, %145 : vector<48x128xf32>
    %c0_116 = arith.constant 0 : index
    %c0_117 = arith.constant 0 : index
    %147 = vector.load %arg5[%c0_116, %c0_117] : memref<48x1xf32, #tpu.memory_space<vmem>>, vector<48x1xf32>
    %148 = vector.broadcast %147 : vector<48x1xf32> to vector<48x128xf32>
    %149 = arith.addf %146, %148 : vector<48x128xf32>
    %cst_118 = arith.constant 0.000000e+00 : f32
    %150 = vector.broadcast %cst_118 : f32 to vector<48x128xf32>
    %151 = arith.maximumf %149, %150 : vector<48x128xf32>
    %152 = vector.extract_strided_slice %151 {offsets = [0, 0], sizes = [48, 64], strides = [1, 1]} : vector<48x128xf32> to vector<48x64xf32>
    %c0_119 = arith.constant 0 : index
    %c48_120 = arith.constant 48 : index
    %c0_121 = arith.constant 0 : index
    %153 = vector.load %arg10[%c0_119, %c48_120, %c0_121] : memref<2x192x64xf32, #tpu.memory_space<vmem>>, vector<1x48x64xf32>
    %154 = vector.shape_cast %153 : vector<1x48x64xf32> to vector<48x64xf32>
    %155 = vector.shape_cast %152 : vector<48x64xf32> to vector<1x48x64xf32>
    tpu.vector_store %arg10[%c0_119, %c48_120, %c0_121], %155 {strides = array<i32>} : memref<2x192x64xf32, #tpu.memory_space<vmem>>, vector<1x48x64xf32>,
    %156 = vector.extract_strided_slice %151 {offsets = [0, 64], sizes = [48, 64], strides = [1, 1]} : vector<48x128xf32> to vector<48x64xf32>
    %c1_122 = arith.constant 1 : index
    %c48_123 = arith.constant 48 : index
    %c0_124 = arith.constant 0 : index
    %157 = vector.load %arg10[%c1_122, %c48_123, %c0_124] : memref<2x192x64xf32, #tpu.memory_space<vmem>>, vector<1x48x64xf32>
    %158 = vector.shape_cast %157 : vector<1x48x64xf32> to vector<48x64xf32>
    %159 = vector.shape_cast %156 : vector<48x64xf32> to vector<1x48x64xf32>
    tpu.vector_store %arg10[%c1_122, %c48_123, %c0_124], %159 {strides = array<i32>} : memref<2x192x64xf32, #tpu.memory_space<vmem>>, vector<1x48x64xf32>,
    %160 = vector.extract_strided_slice %11 {offsets = [80, 0], sizes = [32, 128], strides = [1, 1]} : vector<160x128xf32> to vector<32x128xf32>
    %c80 = arith.constant 80 : index
    %c0_125 = arith.constant 0 : index
    %161 = vector.load %arg3[%c80, %c0_125] : memref<160x1xf32, #tpu.memory_space<vmem>>, vector<32x1xf32>
    %162 = vector.broadcast %161 : vector<32x1xf32> to vector<32x128xf32>
    %163 = arith.addf %160, %162 : vector<32x128xf32>
    %cst_126 = arith.constant 0.000000e+00 : f32
    %164 = vector.broadcast %cst_126 : f32 to vector<32x128xf32>
    %165 = arith.maximumf %163, %164 : vector<32x128xf32>
    %c0_127 = arith.constant 0 : index
    %c128_128 = arith.constant 128 : index
    %166 = vector.load %arg12[%c0_127, %c128_128] : memref<48x384xf32, #tpu.memory_space<vmem>>, vector<32x128xf32>
    tpu.vector_store %arg12[%c0_127, %c128_128], %165 {strides = array<i32>} : memref<48x384xf32, #tpu.memory_space<vmem>>, vector<32x128xf32>,
    %cst_129 = arith.constant 0.000000e+00 : f32
    %167 = vector.broadcast %cst_129 : f32 to vector<48x128xf32>
    %c0_130 = arith.constant 0 : index
    %c119_131 = arith.constant 119 : index
    %168 = vector.load %arg12[%c0_130, %c119_131] : memref<48x384xf32, #tpu.memory_space<vmem>>, vector<32x128xf32>
    %c0_132 = arith.constant 0 : index
    %c0_133 = arith.constant 0 : index
    %c0_134 = arith.constant 0 : index
    %169 = vector.load %arg1[%c0_132, %c0_133, %c0_134] : memref<9x1x128xf32, #tpu.memory_space<vmem>>, vector<1x1x128xf32>
    %170 = vector.shape_cast %169 : vector<1x1x128xf32> to vector<1x128xf32>
    %171 = vector.broadcast %170 : vector<1x128xf32> to vector<32x128xf32>
    %172 = arith.mulf %168, %171 : vector<32x128xf32>
    %c0_135 = arith.constant 0 : index
    %c0_136 = arith.constant 0 : index
    %c0_137 = arith.constant 0 : index
    %173 = vector.load %arg6[%c0_135, %c0_136, %c0_137] : memref<9x48x32xbf16, #tpu.memory_space<vmem>>, vector<1x48x32xbf16>
    %174 = vector.shape_cast %173 : vector<1x48x32xbf16> to vector<48x32xbf16>
    %175 = arith.truncf %172 : vector<32x128xf32> to vector<32x128xbf16>
    %cst_138 = arith.constant dense<0.000000e+00> : vector<48x128xf32>
    %176 = tpu.matmul %174, %175, %cst_138 {dimension_numbers = #tpu.dot_dimension_numbers<[1], [0], [0], [1], [0, 0, 1, 1], [], []>} : vector<48x32xbf16>, vector<32x128xbf16>, vector<48x128xf32> -> vector<48x128xf32>
    %177 = arith.addf %167, %176 : vector<48x128xf32>
    %c0_139 = arith.constant 0 : index
    %c120_140 = arith.constant 120 : index
    %178 = vector.load %arg12[%c0_139, %c120_140] : memref<48x384xf32, #tpu.memory_space<vmem>>, vector<32x128xf32>
    %c1_141 = arith.constant 1 : index
    %c0_142 = arith.constant 0 : index
    %c0_143 = arith.constant 0 : index
    %179 = vector.load %arg1[%c1_141, %c0_142, %c0_143] : memref<9x1x128xf32, #tpu.memory_space<vmem>>, vector<1x1x128xf32>
    %180 = vector.shape_cast %179 : vector<1x1x128xf32> to vector<1x128xf32>
    %181 = vector.broadcast %180 : vector<1x128xf32> to vector<32x128xf32>
    %182 = arith.mulf %178, %181 : vector<32x128xf32>
    %c1_144 = arith.constant 1 : index
    %c0_145 = arith.constant 0 : index
    %c0_146 = arith.constant 0 : index
    %183 = vector.load %arg6[%c1_144, %c0_145, %c0_146] : memref<9x48x32xbf16, #tpu.memory_space<vmem>>, vector<1x48x32xbf16>
    %184 = vector.shape_cast %183 : vector<1x48x32xbf16> to vector<48x32xbf16>
    %185 = arith.truncf %182 : vector<32x128xf32> to vector<32x128xbf16>
    %cst_147 = arith.constant dense<0.000000e+00> : vector<48x128xf32>
    %186 = tpu.matmul %184, %185, %cst_147 {dimension_numbers = #tpu.dot_dimension_numbers<[1], [0], [0], [1], [0, 0, 1, 1], [], []>} : vector<48x32xbf16>, vector<32x128xbf16>, vector<48x128xf32> -> vector<48x128xf32>
    %187 = arith.addf %177, %186 : vector<48x128xf32>
    %c0_148 = arith.constant 0 : index
    %c121_149 = arith.constant 121 : index
    %188 = vector.load %arg12[%c0_148, %c121_149] : memref<48x384xf32, #tpu.memory_space<vmem>>, vector<32x128xf32>
    %c2_150 = arith.constant 2 : index
    %c0_151 = arith.constant 0 : index
    %c0_152 = arith.constant 0 : index
    %189 = vector.load %arg1[%c2_150, %c0_151, %c0_152] : memref<9x1x128xf32, #tpu.memory_space<vmem>>, vector<1x1x128xf32>
    %190 = vector.shape_cast %189 : vector<1x1x128xf32> to vector<1x128xf32>
    %191 = vector.broadcast %190 : vector<1x128xf32> to vector<32x128xf32>
    %192 = arith.mulf %188, %191 : vector<32x128xf32>
    %c2_153 = arith.constant 2 : index
    %c0_154 = arith.constant 0 : index
    %c0_155 = arith.constant 0 : index
    %193 = vector.load %arg6[%c2_153, %c0_154, %c0_155] : memref<9x48x32xbf16, #tpu.memory_space<vmem>>, vector<1x48x32xbf16>
    %194 = vector.shape_cast %193 : vector<1x48x32xbf16> to vector<48x32xbf16>
    %195 = arith.truncf %192 : vector<32x128xf32> to vector<32x128xbf16>
    %cst_156 = arith.constant dense<0.000000e+00> : vector<48x128xf32>
    %196 = tpu.matmul %194, %195, %cst_156 {dimension_numbers = #tpu.dot_dimension_numbers<[1], [0], [0], [1], [0, 0, 1, 1], [], []>} : vector<48x32xbf16>, vector<32x128xbf16>, vector<48x128xf32> -> vector<48x128xf32>
    %197 = arith.addf %187, %196 : vector<48x128xf32>
    %c0_157 = arith.constant 0 : index
    %c127_158 = arith.constant 127 : index
    %198 = vector.load %arg12[%c0_157, %c127_158] : memref<48x384xf32, #tpu.memory_space<vmem>>, vector<32x128xf32>
    %c3_159 = arith.constant 3 : index
    %c0_160 = arith.constant 0 : index
    %c0_161 = arith.constant 0 : index
    %199 = vector.load %arg1[%c3_159, %c0_160, %c0_161] : memref<9x1x128xf32, #tpu.memory_space<vmem>>, vector<1x1x128xf32>
    %200 = vector.shape_cast %199 : vector<1x1x128xf32> to vector<1x128xf32>
    %201 = vector.broadcast %200 : vector<1x128xf32> to vector<32x128xf32>
    %202 = arith.mulf %198, %201 : vector<32x128xf32>
    %c3_162 = arith.constant 3 : index
    %c0_163 = arith.constant 0 : index
    %c0_164 = arith.constant 0 : index
    %203 = vector.load %arg6[%c3_162, %c0_163, %c0_164] : memref<9x48x32xbf16, #tpu.memory_space<vmem>>, vector<1x48x32xbf16>
    %204 = vector.shape_cast %203 : vector<1x48x32xbf16> to vector<48x32xbf16>
    %205 = arith.truncf %202 : vector<32x128xf32> to vector<32x128xbf16>
    %cst_165 = arith.constant dense<0.000000e+00> : vector<48x128xf32>
    %206 = tpu.matmul %204, %205, %cst_165 {dimension_numbers = #tpu.dot_dimension_numbers<[1], [0], [0], [1], [0, 0, 1, 1], [], []>} : vector<48x32xbf16>, vector<32x128xbf16>, vector<48x128xf32> -> vector<48x128xf32>
    %207 = arith.addf %197, %206 : vector<48x128xf32>
    %c4_166 = arith.constant 4 : index
    %c0_167 = arith.constant 0 : index
    %c0_168 = arith.constant 0 : index
    %208 = vector.load %arg6[%c4_166, %c0_167, %c0_168] : memref<9x48x32xbf16, #tpu.memory_space<vmem>>, vector<1x48x32xbf16>
    %209 = vector.shape_cast %208 : vector<1x48x32xbf16> to vector<48x32xbf16>
    %210 = arith.truncf %165 : vector<32x128xf32> to vector<32x128xbf16>
    %cst_169 = arith.constant dense<0.000000e+00> : vector<48x128xf32>
    %211 = tpu.matmul %209, %210, %cst_169 {dimension_numbers = #tpu.dot_dimension_numbers<[1], [0], [0], [1], [0, 0, 1, 1], [], []>} : vector<48x32xbf16>, vector<32x128xbf16>, vector<48x128xf32> -> vector<48x128xf32>
    %212 = arith.addf %207, %211 : vector<48x128xf32>
    %c0_170 = arith.constant 0 : index
    %c129_171 = arith.constant 129 : index
    %213 = vector.load %arg12[%c0_170, %c129_171] : memref<48x384xf32, #tpu.memory_space<vmem>>, vector<32x128xf32>
    %c5_172 = arith.constant 5 : index
    %c0_173 = arith.constant 0 : index
    %c0_174 = arith.constant 0 : index
    %214 = vector.load %arg1[%c5_172, %c0_173, %c0_174] : memref<9x1x128xf32, #tpu.memory_space<vmem>>, vector<1x1x128xf32>
    %215 = vector.shape_cast %214 : vector<1x1x128xf32> to vector<1x128xf32>
    %216 = vector.broadcast %215 : vector<1x128xf32> to vector<32x128xf32>
    %217 = arith.mulf %213, %216 : vector<32x128xf32>
    %c5_175 = arith.constant 5 : index
    %c0_176 = arith.constant 0 : index
    %c0_177 = arith.constant 0 : index
    %218 = vector.load %arg6[%c5_175, %c0_176, %c0_177] : memref<9x48x32xbf16, #tpu.memory_space<vmem>>, vector<1x48x32xbf16>
    %219 = vector.shape_cast %218 : vector<1x48x32xbf16> to vector<48x32xbf16>
    %220 = arith.truncf %217 : vector<32x128xf32> to vector<32x128xbf16>
    %cst_178 = arith.constant dense<0.000000e+00> : vector<48x128xf32>
    %221 = tpu.matmul %219, %220, %cst_178 {dimension_numbers = #tpu.dot_dimension_numbers<[1], [0], [0], [1], [0, 0, 1, 1], [], []>} : vector<48x32xbf16>, vector<32x128xbf16>, vector<48x128xf32> -> vector<48x128xf32>
    %222 = arith.addf %212, %221 : vector<48x128xf32>
    %c0_179 = arith.constant 0 : index
    %c135_180 = arith.constant 135 : index
    %223 = vector.load %arg12[%c0_179, %c135_180] : memref<48x384xf32, #tpu.memory_space<vmem>>, vector<32x128xf32>
    %c6_181 = arith.constant 6 : index
    %c0_182 = arith.constant 0 : index
    %c0_183 = arith.constant 0 : index
    %224 = vector.load %arg1[%c6_181, %c0_182, %c0_183] : memref<9x1x128xf32, #tpu.memory_space<vmem>>, vector<1x1x128xf32>
    %225 = vector.shape_cast %224 : vector<1x1x128xf32> to vector<1x128xf32>
    %226 = vector.broadcast %225 : vector<1x128xf32> to vector<32x128xf32>
    %227 = arith.mulf %223, %226 : vector<32x128xf32>
    %c6_184 = arith.constant 6 : index
    %c0_185 = arith.constant 0 : index
    %c0_186 = arith.constant 0 : index
    %228 = vector.load %arg6[%c6_184, %c0_185, %c0_186] : memref<9x48x32xbf16, #tpu.memory_space<vmem>>, vector<1x48x32xbf16>
    %229 = vector.shape_cast %228 : vector<1x48x32xbf16> to vector<48x32xbf16>
    %230 = arith.truncf %227 : vector<32x128xf32> to vector<32x128xbf16>
    %cst_187 = arith.constant dense<0.000000e+00> : vector<48x128xf32>
    %231 = tpu.matmul %229, %230, %cst_187 {dimension_numbers = #tpu.dot_dimension_numbers<[1], [0], [0], [1], [0, 0, 1, 1], [], []>} : vector<48x32xbf16>, vector<32x128xbf16>, vector<48x128xf32> -> vector<48x128xf32>
    %232 = arith.addf %222, %231 : vector<48x128xf32>
    %c0_188 = arith.constant 0 : index
    %c136_189 = arith.constant 136 : index
    %233 = vector.load %arg12[%c0_188, %c136_189] : memref<48x384xf32, #tpu.memory_space<vmem>>, vector<32x128xf32>
    %c7_190 = arith.constant 7 : index
    %c0_191 = arith.constant 0 : index
    %c0_192 = arith.constant 0 : index
    %234 = vector.load %arg1[%c7_190, %c0_191, %c0_192] : memref<9x1x128xf32, #tpu.memory_space<vmem>>, vector<1x1x128xf32>
    %235 = vector.shape_cast %234 : vector<1x1x128xf32> to vector<1x128xf32>
    %236 = vector.broadcast %235 : vector<1x128xf32> to vector<32x128xf32>
    %237 = arith.mulf %233, %236 : vector<32x128xf32>
    %c7_193 = arith.constant 7 : index
    %c0_194 = arith.constant 0 : index
    %c0_195 = arith.constant 0 : index
    %238 = vector.load %arg6[%c7_193, %c0_194, %c0_195] : memref<9x48x32xbf16, #tpu.memory_space<vmem>>, vector<1x48x32xbf16>
    %239 = vector.shape_cast %238 : vector<1x48x32xbf16> to vector<48x32xbf16>
    %240 = arith.truncf %237 : vector<32x128xf32> to vector<32x128xbf16>
    %cst_196 = arith.constant dense<0.000000e+00> : vector<48x128xf32>
    %241 = tpu.matmul %239, %240, %cst_196 {dimension_numbers = #tpu.dot_dimension_numbers<[1], [0], [0], [1], [0, 0, 1, 1], [], []>} : vector<48x32xbf16>, vector<32x128xbf16>, vector<48x128xf32> -> vector<48x128xf32>
    %242 = arith.addf %232, %241 : vector<48x128xf32>
    %c0_197 = arith.constant 0 : index
    %c137_198 = arith.constant 137 : index
    %243 = vector.load %arg12[%c0_197, %c137_198] : memref<48x384xf32, #tpu.memory_space<vmem>>, vector<32x128xf32>
    %c8_199 = arith.constant 8 : index
    %c0_200 = arith.constant 0 : index
    %c0_201 = arith.constant 0 : index
    %244 = vector.load %arg1[%c8_199, %c0_200, %c0_201] : memref<9x1x128xf32, #tpu.memory_space<vmem>>, vector<1x1x128xf32>
    %245 = vector.shape_cast %244 : vector<1x1x128xf32> to vector<1x128xf32>
    %246 = vector.broadcast %245 : vector<1x128xf32> to vector<32x128xf32>
    %247 = arith.mulf %243, %246 : vector<32x128xf32>
    %c8_202 = arith.constant 8 : index
    %c0_203 = arith.constant 0 : index
    %c0_204 = arith.constant 0 : index
    %248 = vector.load %arg6[%c8_202, %c0_203, %c0_204] : memref<9x48x32xbf16, #tpu.memory_space<vmem>>, vector<1x48x32xbf16>
    %249 = vector.shape_cast %248 : vector<1x48x32xbf16> to vector<48x32xbf16>
    %250 = arith.truncf %247 : vector<32x128xf32> to vector<32x128xbf16>
    %cst_205 = arith.constant dense<0.000000e+00> : vector<48x128xf32>
    %251 = tpu.matmul %249, %250, %cst_205 {dimension_numbers = #tpu.dot_dimension_numbers<[1], [0], [0], [1], [0, 0, 1, 1], [], []>} : vector<48x32xbf16>, vector<32x128xbf16>, vector<48x128xf32> -> vector<48x128xf32>
    %252 = arith.addf %242, %251 : vector<48x128xf32>
    %c0_206 = arith.constant 0 : index
    %c0_207 = arith.constant 0 : index
    %253 = vector.load %arg7[%c0_206, %c0_207] : memref<48x1xf32, #tpu.memory_space<vmem>>, vector<48x1xf32>
    %254 = vector.broadcast %253 : vector<48x1xf32> to vector<48x128xf32>
    %255 = arith.addf %252, %254 : vector<48x128xf32>
    %cst_208 = arith.constant 0.000000e+00 : f32
    %256 = vector.broadcast %cst_208 : f32 to vector<48x128xf32>
    %257 = arith.maximumf %255, %256 : vector<48x128xf32>
    %c0_209 = arith.constant 0 : index
    %c128_210 = arith.constant 128 : index
    %258 = vector.load %arg12[%c0_209, %c128_210] : memref<48x384xf32, #tpu.memory_space<vmem>>, vector<48x128xf32>
    tpu.vector_store %arg12[%c0_209, %c128_210], %257 {strides = array<i32>} : memref<48x384xf32, #tpu.memory_space<vmem>>, vector<48x128xf32>,
    %cst_211 = arith.constant 0.000000e+00 : f32
    %259 = vector.broadcast %cst_211 : f32 to vector<48x128xf32>
    %c0_212 = arith.constant 0 : index
    %c119_213 = arith.constant 119 : index
    %260 = vector.load %arg12[%c0_212, %c119_213] : memref<48x384xf32, #tpu.memory_space<vmem>>, vector<48x128xf32>
    %c0_214 = arith.constant 0 : index
    %c0_215 = arith.constant 0 : index
    %c0_216 = arith.constant 0 : index
    %261 = vector.load %arg1[%c0_214, %c0_215, %c0_216] : memref<9x1x128xf32, #tpu.memory_space<vmem>>, vector<1x1x128xf32>
    %262 = vector.shape_cast %261 : vector<1x1x128xf32> to vector<1x128xf32>
    %263 = vector.broadcast %262 : vector<1x128xf32> to vector<48x128xf32>
    %264 = arith.mulf %260, %263 : vector<48x128xf32>
    %c0_217 = arith.constant 0 : index
    %c0_218 = arith.constant 0 : index
    %c0_219 = arith.constant 0 : index
    %265 = vector.load %arg8[%c0_217, %c0_218, %c0_219] : memref<9x48x48xbf16, #tpu.memory_space<vmem>>, vector<1x48x48xbf16>
    %266 = vector.shape_cast %265 : vector<1x48x48xbf16> to vector<48x48xbf16>
    %267 = arith.truncf %264 : vector<48x128xf32> to vector<48x128xbf16>
    %cst_220 = arith.constant dense<0.000000e+00> : vector<48x128xf32>
    %268 = tpu.matmul %266, %267, %cst_220 {dimension_numbers = #tpu.dot_dimension_numbers<[1], [0], [0], [1], [0, 0, 1, 1], [], []>} : vector<48x48xbf16>, vector<48x128xbf16>, vector<48x128xf32> -> vector<48x128xf32>
    %269 = arith.addf %259, %268 : vector<48x128xf32>
    %c0_221 = arith.constant 0 : index
    %c120_222 = arith.constant 120 : index
    %270 = vector.load %arg12[%c0_221, %c120_222] : memref<48x384xf32, #tpu.memory_space<vmem>>, vector<48x128xf32>
    %c1_223 = arith.constant 1 : index
    %c0_224 = arith.constant 0 : index
    %c0_225 = arith.constant 0 : index
    %271 = vector.load %arg1[%c1_223, %c0_224, %c0_225] : memref<9x1x128xf32, #tpu.memory_space<vmem>>, vector<1x1x128xf32>
    %272 = vector.shape_cast %271 : vector<1x1x128xf32> to vector<1x128xf32>
    %273 = vector.broadcast %272 : vector<1x128xf32> to vector<48x128xf32>
    %274 = arith.mulf %270, %273 : vector<48x128xf32>
    %c1_226 = arith.constant 1 : index
    %c0_227 = arith.constant 0 : index
    %c0_228 = arith.constant 0 : index
    %275 = vector.load %arg8[%c1_226, %c0_227, %c0_228] : memref<9x48x48xbf16, #tpu.memory_space<vmem>>, vector<1x48x48xbf16>
    %276 = vector.shape_cast %275 : vector<1x48x48xbf16> to vector<48x48xbf16>
    %277 = arith.truncf %274 : vector<48x128xf32> to vector<48x128xbf16>
    %cst_229 = arith.constant dense<0.000000e+00> : vector<48x128xf32>
    %278 = tpu.matmul %276, %277, %cst_229 {dimension_numbers = #tpu.dot_dimension_numbers<[1], [0], [0], [1], [0, 0, 1, 1], [], []>} : vector<48x48xbf16>, vector<48x128xbf16>, vector<48x128xf32> -> vector<48x128xf32>
    %279 = arith.addf %269, %278 : vector<48x128xf32>
    %c0_230 = arith.constant 0 : index
    %c121_231 = arith.constant 121 : index
    %280 = vector.load %arg12[%c0_230, %c121_231] : memref<48x384xf32, #tpu.memory_space<vmem>>, vector<48x128xf32>
    %c2_232 = arith.constant 2 : index
    %c0_233 = arith.constant 0 : index
    %c0_234 = arith.constant 0 : index
    %281 = vector.load %arg1[%c2_232, %c0_233, %c0_234] : memref<9x1x128xf32, #tpu.memory_space<vmem>>, vector<1x1x128xf32>
    %282 = vector.shape_cast %281 : vector<1x1x128xf32> to vector<1x128xf32>
    %283 = vector.broadcast %282 : vector<1x128xf32> to vector<48x128xf32>
    %284 = arith.mulf %280, %283 : vector<48x128xf32>
    %c2_235 = arith.constant 2 : index
    %c0_236 = arith.constant 0 : index
    %c0_237 = arith.constant 0 : index
    %285 = vector.load %arg8[%c2_235, %c0_236, %c0_237] : memref<9x48x48xbf16, #tpu.memory_space<vmem>>, vector<1x48x48xbf16>
    %286 = vector.shape_cast %285 : vector<1x48x48xbf16> to vector<48x48xbf16>
    %287 = arith.truncf %284 : vector<48x128xf32> to vector<48x128xbf16>
    %cst_238 = arith.constant dense<0.000000e+00> : vector<48x128xf32>
    %288 = tpu.matmul %286, %287, %cst_238 {dimension_numbers = #tpu.dot_dimension_numbers<[1], [0], [0], [1], [0, 0, 1, 1], [], []>} : vector<48x48xbf16>, vector<48x128xbf16>, vector<48x128xf32> -> vector<48x128xf32>
    %289 = arith.addf %279, %288 : vector<48x128xf32>
    %c0_239 = arith.constant 0 : index
    %c127_240 = arith.constant 127 : index
    %290 = vector.load %arg12[%c0_239, %c127_240] : memref<48x384xf32, #tpu.memory_space<vmem>>, vector<48x128xf32>
    %c3_241 = arith.constant 3 : index
    %c0_242 = arith.constant 0 : index
    %c0_243 = arith.constant 0 : index
    %291 = vector.load %arg1[%c3_241, %c0_242, %c0_243] : memref<9x1x128xf32, #tpu.memory_space<vmem>>, vector<1x1x128xf32>
    %292 = vector.shape_cast %291 : vector<1x1x128xf32> to vector<1x128xf32>
    %293 = vector.broadcast %292 : vector<1x128xf32> to vector<48x128xf32>
    %294 = arith.mulf %290, %293 : vector<48x128xf32>
    %c3_244 = arith.constant 3 : index
    %c0_245 = arith.constant 0 : index
    %c0_246 = arith.constant 0 : index
    %295 = vector.load %arg8[%c3_244, %c0_245, %c0_246] : memref<9x48x48xbf16, #tpu.memory_space<vmem>>, vector<1x48x48xbf16>
    %296 = vector.shape_cast %295 : vector<1x48x48xbf16> to vector<48x48xbf16>
    %297 = arith.truncf %294 : vector<48x128xf32> to vector<48x128xbf16>
    %cst_247 = arith.constant dense<0.000000e+00> : vector<48x128xf32>
    %298 = tpu.matmul %296, %297, %cst_247 {dimension_numbers = #tpu.dot_dimension_numbers<[1], [0], [0], [1], [0, 0, 1, 1], [], []>} : vector<48x48xbf16>, vector<48x128xbf16>, vector<48x128xf32> -> vector<48x128xf32>
    %299 = arith.addf %289, %298 : vector<48x128xf32>
    %c4_248 = arith.constant 4 : index
    %c0_249 = arith.constant 0 : index
    %c0_250 = arith.constant 0 : index
    %300 = vector.load %arg8[%c4_248, %c0_249, %c0_250] : memref<9x48x48xbf16, #tpu.memory_space<vmem>>, vector<1x48x48xbf16>
    %301 = vector.shape_cast %300 : vector<1x48x48xbf16> to vector<48x48xbf16>
    %302 = arith.truncf %257 : vector<48x128xf32> to vector<48x128xbf16>
    %cst_251 = arith.constant dense<0.000000e+00> : vector<48x128xf32>
    %303 = tpu.matmul %301, %302, %cst_251 {dimension_numbers = #tpu.dot_dimension_numbers<[1], [0], [0], [1], [0, 0, 1, 1], [], []>} : vector<48x48xbf16>, vector<48x128xbf16>, vector<48x128xf32> -> vector<48x128xf32>
    %304 = arith.addf %299, %303 : vector<48x128xf32>
    %c0_252 = arith.constant 0 : index
    %c129_253 = arith.constant 129 : index
    %305 = vector.load %arg12[%c0_252, %c129_253] : memref<48x384xf32, #tpu.memory_space<vmem>>, vector<48x128xf32>
    %c5_254 = arith.constant 5 : index
    %c0_255 = arith.constant 0 : index
    %c0_256 = arith.constant 0 : index
    %306 = vector.load %arg1[%c5_254, %c0_255, %c0_256] : memref<9x1x128xf32, #tpu.memory_space<vmem>>, vector<1x1x128xf32>
    %307 = vector.shape_cast %306 : vector<1x1x128xf32> to vector<1x128xf32>
    %308 = vector.broadcast %307 : vector<1x128xf32> to vector<48x128xf32>
    %309 = arith.mulf %305, %308 : vector<48x128xf32>
    %c5_257 = arith.constant 5 : index
    %c0_258 = arith.constant 0 : index
    %c0_259 = arith.constant 0 : index
    %310 = vector.load %arg8[%c5_257, %c0_258, %c0_259] : memref<9x48x48xbf16, #tpu.memory_space<vmem>>, vector<1x48x48xbf16>
    %311 = vector.shape_cast %310 : vector<1x48x48xbf16> to vector<48x48xbf16>
    %312 = arith.truncf %309 : vector<48x128xf32> to vector<48x128xbf16>
    %cst_260 = arith.constant dense<0.000000e+00> : vector<48x128xf32>
    %313 = tpu.matmul %311, %312, %cst_260 {dimension_numbers = #tpu.dot_dimension_numbers<[1], [0], [0], [1], [0, 0, 1, 1], [], []>} : vector<48x48xbf16>, vector<48x128xbf16>, vector<48x128xf32> -> vector<48x128xf32>
    %314 = arith.addf %304, %313 : vector<48x128xf32>
    %c0_261 = arith.constant 0 : index
    %c135_262 = arith.constant 135 : index
    %315 = vector.load %arg12[%c0_261, %c135_262] : memref<48x384xf32, #tpu.memory_space<vmem>>, vector<48x128xf32>
    %c6_263 = arith.constant 6 : index
    %c0_264 = arith.constant 0 : index
    %c0_265 = arith.constant 0 : index
    %316 = vector.load %arg1[%c6_263, %c0_264, %c0_265] : memref<9x1x128xf32, #tpu.memory_space<vmem>>, vector<1x1x128xf32>
    %317 = vector.shape_cast %316 : vector<1x1x128xf32> to vector<1x128xf32>
    %318 = vector.broadcast %317 : vector<1x128xf32> to vector<48x128xf32>
    %319 = arith.mulf %315, %318 : vector<48x128xf32>
    %c6_266 = arith.constant 6 : index
    %c0_267 = arith.constant 0 : index
    %c0_268 = arith.constant 0 : index
    %320 = vector.load %arg8[%c6_266, %c0_267, %c0_268] : memref<9x48x48xbf16, #tpu.memory_space<vmem>>, vector<1x48x48xbf16>
    %321 = vector.shape_cast %320 : vector<1x48x48xbf16> to vector<48x48xbf16>
    %322 = arith.truncf %319 : vector<48x128xf32> to vector<48x128xbf16>
    %cst_269 = arith.constant dense<0.000000e+00> : vector<48x128xf32>
    %323 = tpu.matmul %321, %322, %cst_269 {dimension_numbers = #tpu.dot_dimension_numbers<[1], [0], [0], [1], [0, 0, 1, 1], [], []>} : vector<48x48xbf16>, vector<48x128xbf16>, vector<48x128xf32> -> vector<48x128xf32>
    %324 = arith.addf %314, %323 : vector<48x128xf32>
    %c0_270 = arith.constant 0 : index
    %c136_271 = arith.constant 136 : index
    %325 = vector.load %arg12[%c0_270, %c136_271] : memref<48x384xf32, #tpu.memory_space<vmem>>, vector<48x128xf32>
    %c7_272 = arith.constant 7 : index
    %c0_273 = arith.constant 0 : index
    %c0_274 = arith.constant 0 : index
    %326 = vector.load %arg1[%c7_272, %c0_273, %c0_274] : memref<9x1x128xf32, #tpu.memory_space<vmem>>, vector<1x1x128xf32>
    %327 = vector.shape_cast %326 : vector<1x1x128xf32> to vector<1x128xf32>
    %328 = vector.broadcast %327 : vector<1x128xf32> to vector<48x128xf32>
    %329 = arith.mulf %325, %328 : vector<48x128xf32>
    %c7_275 = arith.constant 7 : index
    %c0_276 = arith.constant 0 : index
    %c0_277 = arith.constant 0 : index
    %330 = vector.load %arg8[%c7_275, %c0_276, %c0_277] : memref<9x48x48xbf16, #tpu.memory_space<vmem>>, vector<1x48x48xbf16>
    %331 = vector.shape_cast %330 : vector<1x48x48xbf16> to vector<48x48xbf16>
    %332 = arith.truncf %329 : vector<48x128xf32> to vector<48x128xbf16>
    %cst_278 = arith.constant dense<0.000000e+00> : vector<48x128xf32>
    %333 = tpu.matmul %331, %332, %cst_278 {dimension_numbers = #tpu.dot_dimension_numbers<[1], [0], [0], [1], [0, 0, 1, 1], [], []>} : vector<48x48xbf16>, vector<48x128xbf16>, vector<48x128xf32> -> vector<48x128xf32>
    %334 = arith.addf %324, %333 : vector<48x128xf32>
    %c0_279 = arith.constant 0 : index
    %c137_280 = arith.constant 137 : index
    %335 = vector.load %arg12[%c0_279, %c137_280] : memref<48x384xf32, #tpu.memory_space<vmem>>, vector<48x128xf32>
    %c8_281 = arith.constant 8 : index
    %c0_282 = arith.constant 0 : index
    %c0_283 = arith.constant 0 : index
    %336 = vector.load %arg1[%c8_281, %c0_282, %c0_283] : memref<9x1x128xf32, #tpu.memory_space<vmem>>, vector<1x1x128xf32>
    %337 = vector.shape_cast %336 : vector<1x1x128xf32> to vector<1x128xf32>
    %338 = vector.broadcast %337 : vector<1x128xf32> to vector<48x128xf32>
    %339 = arith.mulf %335, %338 : vector<48x128xf32>
    %c8_284 = arith.constant 8 : index
    %c0_285 = arith.constant 0 : index
    %c0_286 = arith.constant 0 : index
    %340 = vector.load %arg8[%c8_284, %c0_285, %c0_286] : memref<9x48x48xbf16, #tpu.memory_space<vmem>>, vector<1x48x48xbf16>
    %341 = vector.shape_cast %340 : vector<1x48x48xbf16> to vector<48x48xbf16>
    %342 = arith.truncf %339 : vector<48x128xf32> to vector<48x128xbf16>
    %cst_287 = arith.constant dense<0.000000e+00> : vector<48x128xf32>
    %343 = tpu.matmul %341, %342, %cst_287 {dimension_numbers = #tpu.dot_dimension_numbers<[1], [0], [0], [1], [0, 0, 1, 1], [], []>} : vector<48x48xbf16>, vector<48x128xbf16>, vector<48x128xf32> -> vector<48x128xf32>
    %344 = arith.addf %334, %343 : vector<48x128xf32>
    %c0_288 = arith.constant 0 : index
    %c0_289 = arith.constant 0 : index
    %345 = vector.load %arg9[%c0_288, %c0_289] : memref<48x1xf32, #tpu.memory_space<vmem>>, vector<48x1xf32>
    %346 = vector.broadcast %345 : vector<48x1xf32> to vector<48x128xf32>
    %347 = arith.addf %344, %346 : vector<48x128xf32>
    %cst_290 = arith.constant 0.000000e+00 : f32
    %348 = vector.broadcast %cst_290 : f32 to vector<48x128xf32>
    %349 = arith.maximumf %347, %348 : vector<48x128xf32>
    %350 = vector.extract_strided_slice %349 {offsets = [0, 0], sizes = [48, 64], strides = [1, 1]} : vector<48x128xf32> to vector<48x64xf32>
    %c0_291 = arith.constant 0 : index
    %c96 = arith.constant 96 : index
    %c0_292 = arith.constant 0 : index
    %351 = vector.load %arg10[%c0_291, %c96, %c0_292] : memref<2x192x64xf32, #tpu.memory_space<vmem>>, vector<1x48x64xf32>
    %352 = vector.shape_cast %351 : vector<1x48x64xf32> to vector<48x64xf32>
    %353 = vector.shape_cast %350 : vector<48x64xf32> to vector<1x48x64xf32>
    tpu.vector_store %arg10[%c0_291, %c96, %c0_292], %353 {strides = array<i32>} : memref<2x192x64xf32, #tpu.memory_space<vmem>>, vector<1x48x64xf32>,
    %354 = vector.extract_strided_slice %349 {offsets = [0, 64], sizes = [48, 64], strides = [1, 1]} : vector<48x128xf32> to vector<48x64xf32>
    %c1_293 = arith.constant 1 : index
    %c96_294 = arith.constant 96 : index
    %c0_295 = arith.constant 0 : index
    %355 = vector.load %arg10[%c1_293, %c96_294, %c0_295] : memref<2x192x64xf32, #tpu.memory_space<vmem>>, vector<1x48x64xf32>
    %356 = vector.shape_cast %355 : vector<1x48x64xf32> to vector<48x64xf32>
    %357 = vector.shape_cast %354 : vector<48x64xf32> to vector<1x48x64xf32>
    tpu.vector_store %arg10[%c1_293, %c96_294, %c0_295], %357 {strides = array<i32>} : memref<2x192x64xf32, #tpu.memory_space<vmem>>, vector<1x48x64xf32>,
    %358 = vector.extract_strided_slice %11 {offsets = [112, 0], sizes = [48, 128], strides = [1, 1]} : vector<160x128xf32> to vector<48x128xf32>
    %c0_296 = arith.constant 0 : index
    %c128_297 = arith.constant 128 : index
    %359 = vector.load %arg12[%c0_296, %c128_297] : memref<48x384xf32, #tpu.memory_space<vmem>>, vector<48x128xf32>
    tpu.vector_store %arg12[%c0_296, %c128_297], %358 {strides = array<i32>} : memref<48x384xf32, #tpu.memory_space<vmem>>, vector<48x128xf32>,
    %c0_298 = arith.constant 0 : index
    %c119_299 = arith.constant 119 : index
    %360 = vector.load %arg12[%c0_298, %c119_299] : memref<48x384xf32, #tpu.memory_space<vmem>>, vector<48x128xf32>
    %c0_300 = arith.constant 0 : index
    %c0_301 = arith.constant 0 : index
    %c0_302 = arith.constant 0 : index
    %361 = vector.load %arg1[%c0_300, %c0_301, %c0_302] : memref<9x1x128xf32, #tpu.memory_space<vmem>>, vector<1x1x128xf32>
    %362 = vector.shape_cast %361 : vector<1x1x128xf32> to vector<1x128xf32>
    %363 = vector.broadcast %362 : vector<1x128xf32> to vector<48x128xf32>
    %364 = arith.mulf %360, %363 : vector<48x128xf32>
    %365 = arith.addf %358, %364 : vector<48x128xf32>
    %c0_303 = arith.constant 0 : index
    %c120_304 = arith.constant 120 : index
    %366 = vector.load %arg12[%c0_303, %c120_304] : memref<48x384xf32, #tpu.memory_space<vmem>>, vector<48x128xf32>
    %c1_305 = arith.constant 1 : index
    %c0_306 = arith.constant 0 : index
    %c0_307 = arith.constant 0 : index
    %367 = vector.load %arg1[%c1_305, %c0_306, %c0_307] : memref<9x1x128xf32, #tpu.memory_space<vmem>>, vector<1x1x128xf32>
    %368 = vector.shape_cast %367 : vector<1x1x128xf32> to vector<1x128xf32>
    %369 = vector.broadcast %368 : vector<1x128xf32> to vector<48x128xf32>
    %370 = arith.mulf %366, %369 : vector<48x128xf32>
    %371 = arith.addf %365, %370 : vector<48x128xf32>
    %c0_308 = arith.constant 0 : index
    %c121_309 = arith.constant 121 : index
    %372 = vector.load %arg12[%c0_308, %c121_309] : memref<48x384xf32, #tpu.memory_space<vmem>>, vector<48x128xf32>
    %c2_310 = arith.constant 2 : index
    %c0_311 = arith.constant 0 : index
    %c0_312 = arith.constant 0 : index
    %373 = vector.load %arg1[%c2_310, %c0_311, %c0_312] : memref<9x1x128xf32, #tpu.memory_space<vmem>>, vector<1x1x128xf32>
    %374 = vector.shape_cast %373 : vector<1x1x128xf32> to vector<1x128xf32>
    %375 = vector.broadcast %374 : vector<1x128xf32> to vector<48x128xf32>
    %376 = arith.mulf %372, %375 : vector<48x128xf32>
    %377 = arith.addf %371, %376 : vector<48x128xf32>
    %c0_313 = arith.constant 0 : index
    %c127_314 = arith.constant 127 : index
    %378 = vector.load %arg12[%c0_313, %c127_314] : memref<48x384xf32, #tpu.memory_space<vmem>>, vector<48x128xf32>
    %c3_315 = arith.constant 3 : index
    %c0_316 = arith.constant 0 : index
    %c0_317 = arith.constant 0 : index
    %379 = vector.load %arg1[%c3_315, %c0_316, %c0_317] : memref<9x1x128xf32, #tpu.memory_space<vmem>>, vector<1x1x128xf32>
    %380 = vector.shape_cast %379 : vector<1x1x128xf32> to vector<1x128xf32>
    %381 = vector.broadcast %380 : vector<1x128xf32> to vector<48x128xf32>
    %382 = arith.mulf %378, %381 : vector<48x128xf32>
    %383 = arith.addf %377, %382 : vector<48x128xf32>
    %c0_318 = arith.constant 0 : index
    %c129_319 = arith.constant 129 : index
    %384 = vector.load %arg12[%c0_318, %c129_319] : memref<48x384xf32, #tpu.memory_space<vmem>>, vector<48x128xf32>
    %c5_320 = arith.constant 5 : index
    %c0_321 = arith.constant 0 : index
    %c0_322 = arith.constant 0 : index
    %385 = vector.load %arg1[%c5_320, %c0_321, %c0_322] : memref<9x1x128xf32, #tpu.memory_space<vmem>>, vector<1x1x128xf32>
    %386 = vector.shape_cast %385 : vector<1x1x128xf32> to vector<1x128xf32>
    %387 = vector.broadcast %386 : vector<1x128xf32> to vector<48x128xf32>
    %388 = arith.mulf %384, %387 : vector<48x128xf32>
    %389 = arith.addf %383, %388 : vector<48x128xf32>
    %c0_323 = arith.constant 0 : index
    %c135_324 = arith.constant 135 : index
    %390 = vector.load %arg12[%c0_323, %c135_324] : memref<48x384xf32, #tpu.memory_space<vmem>>, vector<48x128xf32>
    %c6_325 = arith.constant 6 : index
    %c0_326 = arith.constant 0 : index
    %c0_327 = arith.constant 0 : index
    %391 = vector.load %arg1[%c6_325, %c0_326, %c0_327] : memref<9x1x128xf32, #tpu.memory_space<vmem>>, vector<1x1x128xf32>
    %392 = vector.shape_cast %391 : vector<1x1x128xf32> to vector<1x128xf32>
    %393 = vector.broadcast %392 : vector<1x128xf32> to vector<48x128xf32>
    %394 = arith.mulf %390, %393 : vector<48x128xf32>
    %395 = arith.addf %389, %394 : vector<48x128xf32>
    %c0_328 = arith.constant 0 : index
    %c136_329 = arith.constant 136 : index
    %396 = vector.load %arg12[%c0_328, %c136_329] : memref<48x384xf32, #tpu.memory_space<vmem>>, vector<48x128xf32>
    %c7_330 = arith.constant 7 : index
    %c0_331 = arith.constant 0 : index
    %c0_332 = arith.constant 0 : index
    %397 = vector.load %arg1[%c7_330, %c0_331, %c0_332] : memref<9x1x128xf32, #tpu.memory_space<vmem>>, vector<1x1x128xf32>
    %398 = vector.shape_cast %397 : vector<1x1x128xf32> to vector<1x128xf32>
    %399 = vector.broadcast %398 : vector<1x128xf32> to vector<48x128xf32>
    %400 = arith.mulf %396, %399 : vector<48x128xf32>
    %401 = arith.addf %395, %400 : vector<48x128xf32>
    %c0_333 = arith.constant 0 : index
    %c137_334 = arith.constant 137 : index
    %402 = vector.load %arg12[%c0_333, %c137_334] : memref<48x384xf32, #tpu.memory_space<vmem>>, vector<48x128xf32>
    %c8_335 = arith.constant 8 : index
    %c0_336 = arith.constant 0 : index
    %c0_337 = arith.constant 0 : index
    %403 = vector.load %arg1[%c8_335, %c0_336, %c0_337] : memref<9x1x128xf32, #tpu.memory_space<vmem>>, vector<1x1x128xf32>
    %404 = vector.shape_cast %403 : vector<1x1x128xf32> to vector<1x128xf32>
    %405 = vector.broadcast %404 : vector<1x128xf32> to vector<48x128xf32>
    %406 = arith.mulf %402, %405 : vector<48x128xf32>
    %407 = arith.addf %401, %406 : vector<48x128xf32>
    %408 = vector.broadcast %39 : vector<1x128xf32> to vector<48x128xf32>
    %409 = arith.mulf %407, %408 : vector<48x128xf32>
    %c112 = arith.constant 112 : index
    %c0_338 = arith.constant 0 : index
    %410 = vector.load %arg3[%c112, %c0_338] : memref<160x1xf32, #tpu.memory_space<vmem>>, vector<48x1xf32>
    %411 = vector.broadcast %410 : vector<48x1xf32> to vector<48x128xf32>
    %412 = arith.addf %409, %411 : vector<48x128xf32>
    %cst_339 = arith.constant 0.000000e+00 : f32
    %413 = vector.broadcast %cst_339 : f32 to vector<48x128xf32>
    %414 = arith.maximumf %412, %413 : vector<48x128xf32>
    %415 = vector.extract_strided_slice %414 {offsets = [0, 0], sizes = [48, 64], strides = [1, 1]} : vector<48x128xf32> to vector<48x64xf32>
    %c0_340 = arith.constant 0 : index
    %c144 = arith.constant 144 : index
    %c0_341 = arith.constant 0 : index
    %416 = vector.load %arg10[%c0_340, %c144, %c0_341] : memref<2x192x64xf32, #tpu.memory_space<vmem>>, vector<1x48x64xf32>
    %417 = vector.shape_cast %416 : vector<1x48x64xf32> to vector<48x64xf32>
    %418 = vector.shape_cast %415 : vector<48x64xf32> to vector<1x48x64xf32>
    tpu.vector_store %arg10[%c0_340, %c144, %c0_341], %418 {strides = array<i32>} : memref<2x192x64xf32, #tpu.memory_space<vmem>>, vector<1x48x64xf32>,
    %419 = vector.extract_strided_slice %414 {offsets = [0, 64], sizes = [48, 64], strides = [1, 1]} : vector<48x128xf32> to vector<48x64xf32>
    %c1_342 = arith.constant 1 : index
    %c144_343 = arith.constant 144 : index
    %c0_344 = arith.constant 0 : index
    %420 = vector.load %arg10[%c1_342, %c144_343, %c0_344] : memref<2x192x64xf32, #tpu.memory_space<vmem>>, vector<1x48x64xf32>
    %421 = vector.shape_cast %420 : vector<1x48x64xf32> to vector<48x64xf32>
    %422 = vector.shape_cast %419 : vector<48x64xf32> to vector<1x48x64xf32>
    tpu.vector_store %arg10[%c1_342, %c144_343, %c0_344], %422 {strides = array<i32>} : memref<2x192x64xf32, #tpu.memory_space<vmem>>, vector<1x48x64xf32>,
    return
  }
}

</mosaic_0001>

<bundles_post_ra>
// kernel: tile.59
= control target key start
LH: loop header
LB: loop body
LE: loop exit
PB: predicated region body
PF: predicated region fallthrough
CT: control target
= control target key end

     0   :  { %s22_s0 = inlined_call_operand.vmem [shape: f32[64], index: 0, kind: input, shape index: {}]   ;;  %s23_s1 = inlined_call_operand.vmem [shape: f32[2,64], index: 1, kind: output, shape index: {}]  }
   0x1   :  { %v4_v0 = vld [vmem:[%s22_s0] ss:$0 sm:$0xff] }
   0x2   :  { %5 = vst [vmem:[%s23_s1] sm:$0x3] %v4_v0 }

// kernel: tile.70
= control target key start
LH: loop header
LB: loop body
LE: loop exit
PB: predicated region body
PF: predicated region fallthrough
CT: control target
= control target key end

     0   :  { %vm7_vm0 = vcmask 523264   ;;  %vm13_vm1 = vcmask 1048064   ;;  %s39_s0 = inlined_call_operand.vmem [shape: f32[2,64], index: 0, kind: input, shape index: {}]   ;;  %s40_s1 = inlined_call_operand.vmem [shape: f32[1,128], index: 1, kind: output, shape index: {}]  }
   0x1   :  { %v4_v0 = vld [vmem:[%s39_s0] sm:$0x3]  ;;  %s22_s0 = smov 64  }
   0x2   :  { %5 = vst [vmem:[#allocation1] sm:$0x3] %v4_v0 }
   0x9   :  { %v10_v1 = vld [vmem:[#allocation1 + $0x1] sm:$0x1]   ;;  %v6_v2 = vld [vmem:[#allocation1] sm:$0x1]  }
   0xa   :  { %11 = vrot.lane.b32.xlu0 %v10_v1, %s22_s0  ;;  %8 = vst.msk [vmem:[#allocation0] sm:$0x1] %vm7_vm0, %v6_v2  }
  0x7c   :  { %v12_v3 = vpop.permute.xlu0 %11  }
  0x7d   :  { %14 = vst.msk [vmem:[#allocation0] sm:$0x1] %vm13_vm1, %v12_v3  }
  0x84   :  { %v18_v4 = vld [vmem:[#allocation0] sm:$0x1] }
  0x85   :  { %20 = vst [vmem:[%s40_s1] sm:$0x1] %v18_v4 }

// kernel: inception_a_forward.1
= control target key start
LH: loop header
LB: loop body
LE: loop exit
PB: predicated region body
PF: predicated region fallthrough
CT: control target
= control target key end

     0   :  { %v6427_v2 = vmov 0   ;;  %s6428_s17 = smov 64   ;;  %vm78_vm0 = vcmask 523264   ;;  %s6429_s22 = smov 120   ;;  %vm224_vm1 = vcmask 1048064   ;;  %vm6435_vm2 = vmmov 0   ;;  %s9022_s0 = inlined_call_operand.vmem [shape: f32[2,192,64], index: 0, kind: input, shape index: {}]   ;;  %s9023_s3 = inlined_call_operand.vmem [shape: f32[160,1], index: 3, kind: input, shape index: {}]   ;;  %s9024_s2 = inlined_call_operand.vmem [shape: bf16[160,192], index: 2, kind: input, shape index: {}]   ;;  %s9025_s1 = inlined_call_operand.vmem [shape: f32[9,1,128], index: 1, kind: input, shape index: {}]   ;;  %s9026_s4 = inlined_call_operand.vmem [shape: bf16[9,48,32], index: 4, kind: input, shape index: {}]   ;;  %s9027_s6 = inlined_call_operand.vmem [shape: bf16[9,48,32], index: 6, kind: input, shape index: {}]   ;;  %s9028_s7 = inlined_call_operand.vmem [shape: f32[48,1], index: 7, kind: input, shape index: {}]   ;;  %s9029_s10 = inlined_call_operand.vmem [shape: f32[2,192,64], index: 10, kind: output, shape index: {}]   ;;  %s9030_s8 = inlined_call_operand.vmem [shape: bf16[9,48,48], index: 8, kind: input, shape index: {}]   ;;  %s9031_s5 = inlined_call_operand.vmem [shape: f32[48,1], index: 5, kind: input, shape index: {}]   ;;  %s9032_s9 = inlined_call_operand.vmem [shape: f32[48,1], index: 9, kind: input, shape index: {}]  }
   0x1   :  { %v5256_v0 = vld [vmem:[%s9022_s0 + $0xd0] sm:$0xff]  ;;  %v5254_v1 = vld [vmem:[%s9022_s0 + $0xc0] sm:$0xff]  ;;  %425 = vmatprep.subr.bf16.mxu0 %v6427_v2  ;;  %6313 = vset.pattern.permute.xlu1 %v6427_v2  ;;  %v5257_v3 = vld [vmem:[%s9022_s0 + $0xd8] sm:$0xff]  ;;  %s6430_s29 = smov 121   ;;  %s6431_s12 = smov 119   ;;  %vm776_vm3 = vcmask 64512  }
   0x2   :  { %156 = vrot.lane.b32.xlu1 %v5256_v0, %s6428_s17  ;;  %152 = vrot.lane.b32.xlu0 %v5254_v1, %s6428_s17  ;;  %v5255_v4 = vld [vmem:[%s9022_s0 + $0xc8] sm:$0xff]  ;;  %v5258_v6 = vld [vmem:[%s9022_s0 + $0xe0] sm:$0xff]  ;;  %s6432_s24 = smov 8   ;;  %s6433_s13 = smov 127   ;;  %vm875_vm4 = vcmask 72704   ;;  %vm781_vm5 = vcmask 261120  }
   0x3   :  { %6312 = vset.pattern.permute.xlu0 %v6427_v2  ;;  %v5259_v5 = vld [vmem:[%s9022_s0 + $0xe8] sm:$0xff]  ;;  %v5261_v7 = vld [vmem:[%s9022_s0 + $0xf8] sm:$0xff]  ;;  %v5260_v8 = vld [vmem:[%s9022_s0 + $0xf0] sm:$0xff]  ;;  %s6436_s28 = smov 9   ;;  %s6437_s30 = smov 7   ;;  %vm1001_vm6 = vcmask 56320  }
   0x4   :  { %v56_v9 = vld [vmem:[%s9022_s0 + $0x10] sm:$0xff]  ;;  %v54_v10 = vld [vmem:[%s9022_s0] sm:$0xff]  ;;  %v57_v11 = vld [vmem:[%s9022_s0 + $0x18] sm:$0xff]  ;;  %s6438_s18 = smov 1   ;;  %vm1133_vm7 = vcmask 7168   ;;  %vm1369_vm8 = vcmask 1039360  }
   0x5   :  { %81 = vst.msk [vmem:[#allocation2 + $0x10] sm:$0xff] %vm78_vm0, %v56_v9  ;;  %79 = vst.msk [vmem:[#allocation2] sm:$0xff] %vm78_vm0, %v54_v10  ;;  %v55_v12 = vld [vmem:[%s9022_s0 + $0x8] sm:$0xff]  ;;  %v58_v14 = vld [vmem:[%s9022_s0 + $0x20] sm:$0xff]  ;;  %vm1501_vm9 = vcmask 990208   ;;  %vm1633_vm10 = vcmask 982016  }
   0x6   :  { %158 = vrot.lane.b32.xlu1 %v5257_v3, %s6428_s17  ;;  %154 = vrot.lane.b32.xlu0 %v5255_v4, %s6428_s17  ;;  %82 = vst.msk [vmem:[#allocation2 + $0x18] sm:$0xff] %vm78_vm0, %v57_v11  ;;  %v59_v13 = vld [vmem:[%s9022_s0 + $0x28] sm:$0xff]  ;;  %80 = vst.msk [vmem:[#allocation2 + $0x8] sm:$0xff] %vm78_vm0, %v55_v12  ;;  %v61_v15 = vld [vmem:[%s9022_s0 + $0x38] sm:$0xff]  ;;  %vm1765_vm11 = vcmask 973824   ;;  %vm3281_vm12 = vcmask 392192  }
   0x7   :  { %84 = vst.msk [vmem:[#allocation2 + $0x28] sm:$0xff] %vm78_vm0, %v59_v13  ;;  %83 = vst.msk [vmem:[#allocation2 + $0x20] sm:$0xff] %vm78_vm0, %v58_v14  ;;  %v60_v16 = vld [vmem:[%s9022_s0 + $0x30] sm:$0xff]  ;;  %v63_v17 = vld [vmem:[%s9022_s0 + $0x48] sm:$0xff] }
   0x8   :  { %86 = vst.msk [vmem:[#allocation2 + $0x38] sm:$0xff] %vm78_vm0, %v61_v15  ;;  %85 = vst.msk [vmem:[#allocation2 + $0x30] sm:$0xff] %vm78_vm0, %v60_v16  ;;  %v62_v18 = vld [vmem:[%s9022_s0 + $0x40] sm:$0xff]  ;;  %v65_v19 = vld [vmem:[%s9022_s0 + $0x58] sm:$0xff] }
   0x9   :  { %88 = vst.msk [vmem:[#allocation2 + $0x48] sm:$0xff] %vm78_vm0, %v63_v17  ;;  %v64_v20 = vld [vmem:[%s9022_s0 + $0x50] sm:$0xff]  ;;  %v5263_v21 = vld [vmem:[%s9022_s0 + $0x108] sm:$0xff]  ;;  %87 = vst.msk [vmem:[#allocation2 + $0x40] sm:$0xff] %vm78_vm0, %v62_v18 }
   0xa   :  { %162 = vrot.lane.b32.xlu1 %v5259_v5, %s6428_s17  ;;  %160 = vrot.lane.b32.xlu0 %v5258_v6, %s6428_s17  ;;  %90 = vst.msk [vmem:[#allocation2 + $0x58] sm:$0xff] %vm78_vm0, %v65_v19  ;;  %89 = vst.msk [vmem:[#allocation2 + $0x50] sm:$0xff] %vm78_vm0, %v64_v20  ;;  %v5262_v22 = vld [vmem:[%s9022_s0 + $0x100] sm:$0xff]  ;;  %v67_v23 = vld [vmem:[%s9022_s0 + $0x68] sm:$0xff] }
   0xb   :  { %v66_v24 = vld [vmem:[%s9022_s0 + $0x60] sm:$0xff]  ;;  %92 = vst.msk [vmem:[#allocation2 + $0x68] sm:$0xff] %vm78_vm0, %v67_v23  ;;  %v5265_v25 = vld [vmem:[%s9022_s0 + $0x118] sm:$0xff]  ;;  %v5264_v26 = vld [vmem:[%s9022_s0 + $0x110] sm:$0xff] }
   0xc   :  { %91 = vst.msk [vmem:[#allocation2 + $0x60] sm:$0xff] %vm78_vm0, %v66_v24  ;;  %v69_v27 = vld [vmem:[%s9022_s0 + $0x78] sm:$0xff]  ;;  %v68_v28 = vld [vmem:[%s9022_s0 + $0x70] sm:$0xff]  ;;  %v5267_v29 = vld [vmem:[%s9022_s0 + $0x128] sm:$0xff] }
   0xd   :  { %94 = vst.msk [vmem:[#allocation2 + $0x78] sm:$0xff] %vm78_vm0, %v69_v27  ;;  %93 = vst.msk [vmem:[#allocation2 + $0x70] sm:$0xff] %vm78_vm0, %v68_v28  ;;  %v5266_v30 = vld [vmem:[%s9022_s0 + $0x120] sm:$0xff]  ;;  %v71_v31 = vld [vmem:[%s9022_s0 + $0x88] sm:$0xff] }
   0xe   :  { %166 = vrot.lane.b32.xlu1 %v5261_v7, %s6428_s17  ;;  %164 = vrot.lane.b32.xlu0 %v5260_v8, %s6428_s17  ;;  %v70_v32 = vld [vmem:[%s9022_s0 + $0x80] sm:$0xff]  ;;  %96 = vst.msk [vmem:[#allocation2 + $0x88] sm:$0xff] %vm78_vm0, %v71_v31  ;;  %v5269_v33 = vld [vmem:[%s9022_s0 + $0x138] sm:$0xff] }
   0xf   :  { %95 = vst.msk [vmem:[#allocation2 + $0x80] sm:$0xff] %vm78_vm0, %v70_v32  ;;  %v5268_v34 = vld [vmem:[%s9022_s0 + $0x130] sm:$0xff]  ;;  %v73_v35 = vld [vmem:[%s9022_s0 + $0x98] sm:$0xff]  ;;  %v5271_v37 = vld [vmem:[%s9022_s0 + $0x148] sm:$0xff] }
  0x10   :  { %v72_v36 = vld [vmem:[%s9022_s0 + $0x90] sm:$0xff]  ;;  %98 = vst.msk [vmem:[#allocation2 + $0x98] sm:$0xff] %vm78_vm0, %v73_v35  ;;  %v5270_v38 = vld [vmem:[%s9022_s0 + $0x140] sm:$0xff]  ;;  %v75_v39 = vld [vmem:[%s9022_s0 + $0xa8] sm:$0xff] }
  0x11   :  { %97 = vst.msk [vmem:[#allocation2 + $0x90] sm:$0xff] %vm78_vm0, %v72_v36  ;;  %v74_v40 = vld [vmem:[%s9022_s0 + $0xa0] sm:$0xff]  ;;  %100 = vst.msk [vmem:[#allocation2 + $0xa8] sm:$0xff] %vm78_vm0, %v75_v39  ;;  %v5273_v41 = vld [vmem:[%s9022_s0 + $0x158] sm:$0xff] }
  0x12   :  { %170 = vrot.lane.b32.xlu1 %v5263_v21, %s6428_s17  ;;  %168 = vrot.lane.b32.xlu0 %v5262_v22, %s6428_s17  ;;  %99 = vst.msk [vmem:[#allocation2 + $0xa0] sm:$0xff] %vm78_vm0, %v74_v40  ;;  %v5272_v42 = vld [vmem:[%s9022_s0 + $0x150] sm:$0xff]  ;;  %v77_v43 = vld [vmem:[%s9022_s0 + $0xb8] sm:$0xff] }
  0x13   :  { %v76_v44 = vld [vmem:[%s9022_s0 + $0xb0] sm:$0xff]  ;;  %102 = vst.msk [vmem:[#allocation2 + $0xb8] sm:$0xff] %vm78_vm0, %v77_v43  ;;  %v5275_v45 = vld [vmem:[%s9022_s0 + $0x168] sm:$0xff]  ;;  %v5274_v46 = vld [vmem:[%s9022_s0 + $0x160] sm:$0xff] }
  0x14   :  { %101 = vst.msk [vmem:[#allocation2 + $0xb0] sm:$0xff] %vm78_vm0, %v76_v44  ;;  %v5277_v47 = vld [vmem:[%s9022_s0 + $0x178] sm:$0xff]  ;;  %v5276_v48 = vld [vmem:[%s9022_s0 + $0x170] sm:$0xff]  ;;  %v6316_v50 = vld [vmem:[%s9024_s2 + $0x4] ss:$8 sps:$4 sm:$0xff]  }
  0x15   :  { %v651_v49 = vld [vmem:[%s9023_s3 + $0x38] sm:$0xff]  ;;  %5298 = vmatprep.mubr.msk.bf16.mxu0 %vm78_vm0, %v6316_v50  ;;  %v652_v51 = vld [vmem:[%s9023_s3 + $0x40] sm:$0xff]  ;;  %v650_v53 = vld [vmem:[%s9023_s3 + $0x30] sm:$0xff] }
  0x16   :  { %174 = vrot.lane.b32.xlu1 %v5265_v25, %s6428_s17  ;;  %172 = vrot.lane.b32.xlu0 %v5264_v26, %s6428_s17  ;;  %v6702_v52 = vld [vmem:[%s9025_s1 + $0x1] ss:$0 sm:$0xff]  ;;  %v6712_v54 = vld [vmem:[%s9025_s1 + $0x2] ss:$0 sm:$0xff] }
  0x17   :  { %v653_v55 = vld [vmem:[%s9023_s3 + $0x48] sm:$0xff]  ;;  %v6722_v56 = vld [vmem:[%s9025_s1] ss:$0 sm:$0xff] }
  0x1a   :  { %178 = vrot.lane.b32.xlu1 %v5267_v29, %s6428_s17  ;;  %176 = vrot.lane.b32.xlu0 %v5266_v30, %s6428_s17 }
  0x1e   :  { %182 = vrot.lane.b32.xlu1 %v5269_v33, %s6428_s17  ;;  %180 = vrot.lane.b32.xlu0 %v5268_v34, %s6428_s17 }
  0x22   :  { %186 = vrot.lane.b32.xlu1 %v5271_v37, %s6428_s17  ;;  %184 = vrot.lane.b32.xlu0 %v5270_v38, %s6428_s17 }
  0x26   :  { %190 = vrot.lane.b32.xlu1 %v5273_v41, %s6428_s17  ;;  %188 = vrot.lane.b32.xlu0 %v5272_v42, %s6428_s17 }
  0x2a   :  { %194 = vrot.lane.b32.xlu1 %v5275_v45, %s6428_s17  ;;  %192 = vrot.lane.b32.xlu0 %v5274_v46, %s6428_s17 }
  0x2e   :  { %198 = vrot.lane.b32.xlu1 %v5277_v47, %s6428_s17  ;;  %196 = vrot.lane.b32.xlu0 %v5276_v48, %s6428_s17 }
  0x32   :  { %661 = vperm.xlu1 %6313, %v651_v49   ;;  %656 = vperm.xlu0 %6312, %v650_v53  }
  0x36   :  { %666 = vperm.xlu1 %6313, %v652_v51   ;;  %671 = vperm.xlu0 %6312, %v653_v55  }
  0x3a   :  { %727 = vrot.lane.b32.xlu1 %v6702_v52, %s6429_s22  ;;  %700 = vrot.lane.b32.xlu0 %v6722_v56, %s6431_s12 }
  0x3e   :  { %952 = vrot.lane.b32.xlu1 %v6712_v54, %s6430_s29 }
  0x74   :  { %v157_v57 = vpop.permute.xlu1 %156  ;;  %v153_v58 = vpop.permute.xlu0 %152 }
  0x75   :  { %227 = vst.msk [vmem:[#allocation2 + $0x10] sm:$0xff] %vm224_vm1, %v157_v57  ;;  %225 = vst.msk [vmem:[#allocation2] sm:$0xff] %vm224_vm1, %v153_v58  ;;  %v6314_v57 = vld [vmem:[%s9024_s2] ss:$8 sps:$4 sm:$0xff]   ;;  %v6317_v58 = vld [vmem:[%s9024_s2 + $0x14] ss:$8 sps:$4 sm:$0xff]  }
  0x78   :  { %v159_v59 = vpop.permute.xlu1 %158  ;;  %v155_v60 = vpop.permute.xlu0 %154 }
  0x79   :  { %228 = vst.msk [vmem:[#allocation2 + $0x18] sm:$0xff] %vm224_vm1, %v159_v59  ;;  %226 = vst.msk [vmem:[#allocation2 + $0x8] sm:$0xff] %vm224_vm1, %v155_v60 }
  0x7c   :  { %v163_v61 = vpop.permute.xlu1 %162  ;;  %v161_v62 = vpop.permute.xlu0 %160  ;;  %v249_v63 = vld [vmem:[#allocation2] sm:$0xff]  ;;  %v251_v5 = vld [vmem:[#allocation2 + $0x10] sm:$0xff] }
  0x7d   :  { %230 = vst.msk [vmem:[#allocation2 + $0x28] sm:$0xff] %vm224_vm1, %v163_v61  ;;  %229 = vst.msk [vmem:[#allocation2 + $0x20] sm:$0xff] %vm224_vm1, %v161_v62  ;;  %v6319_v61 = vld [vmem:[%s9024_s2 + $0x10] ss:$8 sps:$4 sm:$0xff]  }
  0x80   :  { %v250_v0 = vld [vmem:[#allocation2 + $0x8] sm:$0xff]  ;;  %v167_v1 = vpop.permute.xlu1 %166  ;;  %v165_v3 = vpop.permute.xlu0 %164  ;;  %v252_v6 = vld [vmem:[#allocation2 + $0x18] sm:$0xff] }
  0x81   :  { %v293_v4 = vpack.c.bf16 %v250_v0, %v249_v63  ;;  %232 = vst.msk [vmem:[#allocation2 + $0x38] sm:$0xff] %vm224_vm1, %v167_v1  ;;  %231 = vst.msk [vmem:[#allocation2 + $0x30] sm:$0xff] %vm224_vm1, %v165_v3  ;;  %v294_v11 = vpack.c.bf16 %v252_v6, %v251_v5  ;;  %v6322_v1 = vld [vmem:[%s9024_s2 + $0x20] ss:$8 sps:$4 sm:$0xff]   ;;  %v6323_v3 = vld [vmem:[%s9024_s2 + $0x34] ss:$8 sps:$4 sm:$0xff]  }
  0x82   :  { %v6325_v5 = vld [vmem:[%s9024_s2 + $0x30] ss:$8 sps:$4 sm:$0xff]   ;;  %v6326_v6 = vld [vmem:[%s9024_s2 + $0x44] ss:$8 sps:$4 sm:$0xff]  }
  0x83   :  { %426 = vmatpush1.bf16.msra.mxu0 %v293_v4  ;;  %v6792_v4 = vld [vmem:[%s9025_s1 + $0x3] ss:$0 sm:$0xff] }
  0x84   :  { %427 = vmatprep.subr.bf16.mxu0 %v6427_v2  ;;  %v171_v7 = vpop.permute.xlu1 %170  ;;  %v169_v8 = vpop.permute.xlu0 %168  ;;  %v253_v9 = vld [vmem:[#allocation2 + $0x20] sm:$0xff]  ;;  %v254_v10 = vld [vmem:[#allocation2 + $0x28] sm:$0xff] }
  0x85   :  { %234 = vst.msk [vmem:[#allocation2 + $0x48] sm:$0xff] %vm224_vm1, %v171_v7  ;;  %233 = vst.msk [vmem:[#allocation2 + $0x40] sm:$0xff] %vm224_vm1, %v169_v8  ;;  %v295_v12 = vpack.c.bf16 %v254_v10, %v253_v9  ;;  %v6328_v7 = vld [vmem:[%s9024_s2 + $0x40] ss:$8 sps:$4 sm:$0xff]   ;;  %v6329_v8 = vld [vmem:[%s9024_s2 + $0x54] ss:$8 sps:$4 sm:$0xff]  }
  0x86   :  { %v6331_v9 = vld [vmem:[%s9024_s2 + $0x50] ss:$8 sps:$4 sm:$0xff]   ;;  %v6332_v10 = vld [vmem:[%s9024_s2 + $0x64] ss:$8 sps:$4 sm:$0xff]  }
  0x87   :  { %428 = vmatpush1.bf16.msra.mxu0 %v294_v11  ;;  %v6334_v11 = vld [vmem:[%s9024_s2 + $0x60] ss:$8 sps:$4 sm:$0xff]  }
  0x88   :  { %429 = vmatprep.subr.bf16.mxu0 %v6427_v2  ;;  %v175_v13 = vpop.permute.xlu1 %174  ;;  %v173_v14 = vpop.permute.xlu0 %172  ;;  %v255_v15 = vld [vmem:[#allocation2 + $0x30] sm:$0xff]  ;;  %v256_v16 = vld [vmem:[#allocation2 + $0x38] sm:$0xff] }
  0x89   :  { %236 = vst.msk [vmem:[#allocation2 + $0x58] sm:$0xff] %vm224_vm1, %v175_v13  ;;  %235 = vst.msk [vmem:[#allocation2 + $0x50] sm:$0xff] %vm224_vm1, %v173_v14  ;;  %v296_v17 = vpack.c.bf16 %v256_v16, %v255_v15 }
  0x8b   :  { %430 = vmatpush1.bf16.msra.mxu0 %v295_v12 }
  0x8c   :  { %431 = vmatprep.subr.bf16.mxu0 %v6427_v2  ;;  %v179_v18 = vpop.permute.xlu1 %178  ;;  %v177_v19 = vpop.permute.xlu0 %176  ;;  %v257_v20 = vld [vmem:[#allocation2 + $0x40] sm:$0xff]  ;;  %v258_v21 = vld [vmem:[#allocation2 + $0x48] sm:$0xff] }
  0x8d   :  { %238 = vst.msk [vmem:[#allocation2 + $0x68] sm:$0xff] %vm224_vm1, %v179_v18  ;;  %237 = vst.msk [vmem:[#allocation2 + $0x60] sm:$0xff] %vm224_vm1, %v177_v19  ;;  %v297_v22 = vpack.c.bf16 %v258_v21, %v257_v20 }
  0x8f   :  { %432 = vmatpush1.bf16.msra.mxu0 %v296_v17 }
  0x90   :  { %433 = vmatprep.subr.bf16.mxu0 %v6427_v2  ;;  %v183_v23 = vpop.permute.xlu1 %182  ;;  %v181_v24 = vpop.permute.xlu0 %180  ;;  %v259_v25 = vld [vmem:[#allocation2 + $0x50] sm:$0xff]  ;;  %v260_v26 = vld [vmem:[#allocation2 + $0x58] sm:$0xff] }
  0x91   :  { %240 = vst.msk [vmem:[#allocation2 + $0x78] sm:$0xff] %vm224_vm1, %v183_v23  ;;  %239 = vst.msk [vmem:[#allocation2 + $0x70] sm:$0xff] %vm224_vm1, %v181_v24  ;;  %v298_v27 = vpack.c.bf16 %v260_v26, %v259_v25  ;;  %v9033_v25 = vmov 0.0  }
  0x92   :  { %5850 = vmatprep.subr.bf16.mxu1 %v9033_v25  ;;  %5854 = vmatprep.mubr.msk.bf16.mxu1 %vm6435_vm2, %v9033_v25 }
  0x93   :  { %434 = vmatpush1.bf16.msra.mxu0 %v297_v22 }
  0x94   :  { %435 = vmatprep.subr.bf16.mxu0 %v6427_v2  ;;  %v187_v28 = vpop.permute.xlu1 %186  ;;  %v185_v29 = vpop.permute.xlu0 %184  ;;  %v261_v30 = vld [vmem:[#allocation2 + $0x60] sm:$0xff]  ;;  %v262_v31 = vld [vmem:[#allocation2 + $0x68] sm:$0xff] }
  0x95   :  { %242 = vst.msk [vmem:[#allocation2 + $0x88] sm:$0xff] %vm224_vm1, %v187_v28  ;;  %241 = vst.msk [vmem:[#allocation2 + $0x80] sm:$0xff] %vm224_vm1, %v185_v29  ;;  %v299_v32 = vpack.c.bf16 %v262_v31, %v261_v30 }
  0x97   :  { %436 = vmatpush1.bf16.msra.mxu0 %v298_v27 }
  0x98   :  { %437 = vmatprep.subr.bf16.mxu0 %v6427_v2  ;;  %v191_v33 = vpop.permute.xlu1 %190  ;;  %v189_v34 = vpop.permute.xlu0 %188  ;;  %v263_v35 = vld [vmem:[#allocation2 + $0x70] sm:$0xff]  ;;  %v264_v36 = vld [vmem:[#allocation2 + $0x78] sm:$0xff] }
  0x99   :  { %244 = vst.msk [vmem:[#allocation2 + $0x98] sm:$0xff] %vm224_vm1, %v191_v33  ;;  %243 = vst.msk [vmem:[#allocation2 + $0x90] sm:$0xff] %vm224_vm1, %v189_v34  ;;  %v300_v37 = vpack.c.bf16 %v264_v36, %v263_v35 }
  0x9b   :  { %438 = vmatpush1.bf16.msra.mxu0 %v299_v32 }
  0x9c   :  { %439 = vmatprep.subr.bf16.mxu0 %v6427_v2  ;;  %v195_v38 = vpop.permute.xlu1 %194  ;;  %v193_v39 = vpop.permute.xlu0 %192  ;;  %v265_v40 = vld [vmem:[#allocation2 + $0x80] sm:$0xff]  ;;  %v266_v41 = vld [vmem:[#allocation2 + $0x88] sm:$0xff] }
  0x9d   :  { %246 = vst.msk [vmem:[#allocation2 + $0xa8] sm:$0xff] %vm224_vm1, %v195_v38  ;;  %245 = vst.msk [vmem:[#allocation2 + $0xa0] sm:$0xff] %vm224_vm1, %v193_v39  ;;  %v301_v42 = vpack.c.bf16 %v266_v41, %v265_v40 }
  0x9f   :  { %440 = vmatpush1.bf16.msra.mxu0 %v300_v37 }
  0xa0   :  { %441 = vmatprep.subr.bf16.mxu0 %v6427_v2  ;;  %v199_v43 = vpop.permute.xlu1 %198  ;;  %v197_v44 = vpop.permute.xlu0 %196  ;;  %v267_v45 = vld [vmem:[#allocation2 + $0x90] sm:$0xff]  ;;  %v268_v46 = vld [vmem:[#allocation2 + $0x98] sm:$0xff] }
  0xa1   :  { %248 = vst.msk [vmem:[#allocation2 + $0xb8] sm:$0xff] %vm224_vm1, %v199_v43  ;;  %247 = vst.msk [vmem:[#allocation2 + $0xb0] sm:$0xff] %vm224_vm1, %v197_v44  ;;  %v302_v47 = vpack.c.bf16 %v268_v46, %v267_v45 }
  0xa3   :  { %442 = vmatpush1.bf16.msra.mxu0 %v301_v42 }
  0xa4   :  { %443 = vmatprep.subr.bf16.mxu0 %v6427_v2  ;;  %v269_v48 = vld [vmem:[#allocation2 + $0xa0] sm:$0xff]  ;;  %v270_v49 = vld [vmem:[#allocation2 + $0xa8] sm:$0xff] }
  0xa5   :  { %v303_v50 = vpack.c.bf16 %v270_v49, %v269_v48 }
  0xa7   :  { %444 = vmatpush1.bf16.msra.mxu0 %v302_v47 }
  0xa8   :  { %445 = vmatprep.subr.bf16.mxu0 %v6427_v2  ;;  %v271_v51 = vld [vmem:[#allocation2 + $0xb0] sm:$0xff]  ;;  %v272_v53 = vld [vmem:[#allocation2 + $0xb8] sm:$0xff] }
  0xa9   :  { %v304_v55 = vpack.c.bf16 %v272_v53, %v271_v51 }
  0xab   :  { %446 = vmatpush1.bf16.msra.mxu0 %v303_v50 }
  0xac   :  { %447 = vmatprep.subr.bf16.mxu0 %v6427_v2  ;;  %v6320_v2 = vld [vmem:[%s9024_s2 + $0x24] ss:$8 sps:$4 sm:$0xff]  }
  0xaf   :  { %448 = vmatpush1.bf16.msra.mxu0 %v304_v55 }
  0xb0   :  { %5930 = vmatprep.subr.bf16.mxu0 %v9033_v25 }
  0xb1   :  { %v662_v59 = vpop.permute.xlu1 %661  ;;  %v657_v22 = vpop.permute.xlu0 %656 }
  0xb2   :  { %458 = vmatmul.mubr.bf16.vlgmr.msra.gmra.mrb[0].mxu0 %v6314_v57 }
  0xb3   :  { %5299 = vmatprep.mubr.msk.bf16.mxu0 %vm78_vm0, %v6317_v58 }
  0xb5   :  { %v6768_v60 = vpop.permute.xlu1 %666  ;;  %v672_v26 = vpop.permute.xlu0 %671 }
  0xb9   :  { %v6776_v62 = vpop.permute.xlu1 %727  ;;  %v701_v35 = vpop.permute.xlu0 %700 }
  0xba   :  { %466 = vmatmul.mubr.bf16.gmra.mrb[4].mxu0 %v6319_v61  ;;  %v730_v63 = vmul.f32 0.0, %v6776_v62  ;;  %v703_v46 = vmul.f32 0.0, %v701_v35 }
  0xbb   :  { %5300 = vmatprep.mubr.msk.bf16.mxu0 %vm78_vm0, %v6320_v2 }
  0xbc   :  { %v745_v0 = vpack.c.bf16 %v730_v63, %v730_v63  ;;  %v717_v63 = vpack.c.bf16 %v703_v46, %v703_v46 }
  0xbd   :  { %v953_v50 = vpop.permute.xlu1 %952 }
  0xbe   :  { %768 = vrot.lane.b32.xlu0 %v745_v0, %s6432_s24  ;;  %v955_v53 = vmul.f32 0.0, %v953_v50 }
  0xc2   :  { %474 = vmatmul.mubr.bf16.gmra.mrb[8].mxu0 %v6322_v1  ;;  %772 = vrot.lane.b32.xlu0 %v745_v0, %s6432_s24  ;;  %v970_v0 = vpack.c.bf16 %v955_v53, %v955_v53 }
  0xc3   :  { %5301 = vmatprep.mubr.msk.bf16.mxu0 %vm78_vm0, %v6323_v3  ;;  %v6870_v3 = vld [vmem:[%s9025_s1 + $0x5] ss:$0 sm:$0xff] }
  0xc6   :  { %1084 = vrot.lane.b32.xlu0 %v6792_v4, %s6433_s13 }
  0xca   :  { %482 = vmatmul.mubr.bf16.gmra.mrb[12].mxu0 %v6325_v5  ;;  %v6875_v5 = vld [vmem:[%s9025_s1 + $0x6] ss:$0 sm:$0xff] }
  0xcb   :  { %5302 = vmatprep.mubr.msk.bf16.mxu0 %vm78_vm0, %v6326_v6 }
  0xd2   :  { %490 = vmatmul.mubr.bf16.gmra.mrb[16].mxu0 %v6328_v7 }
  0xd3   :  { %5303 = vmatprep.mubr.msk.bf16.mxu0 %vm78_vm0, %v6329_v8 }
  0xda   :  { %498 = vmatmul.mubr.bf16.gmra.mrb[20].mxu0 %v6331_v9 }
  0xdb   :  { %5304 = vmatprep.mubr.msk.bf16.mxu0 %vm78_vm0, %v6332_v10 }
  0xe2   :  { %506 = vmatmul.mubr.bf16.gmra.mrb[24].mxu0 %v6334_v11 }
 0x130   :  { %v6853_v55 = vpop.permute.xlu0 %768 }
 0x134   :  { %v6863_v1 = vpop.permute.xlu0 %772 }
 0x185   :  { %v6820_v12 = vpop.f32.mrb[0].mxu0 }
 0x186   :  { %v461_v13 = vpop.f32.mrb[1].mxu0 }
 0x187   :  { %v6822_v14 = vpop.f32.mrb[2].mxu0 }
 0x188   :  { %v464_v15 = vpop.f32.mrb[3].mxu0 }
 0x189   :  { %v1926_v15 = vld [vmem:[%s9023_s3 + $0x50] sm:$0xff] }
 0x18d   :  { %v6824_v16 = vpop.f32.mrb[4].mxu0 }
 0x18e   :  { %v469_v17 = vpop.f32.mrb[5].mxu0 }
 0x18f   :  { %v6826_v18 = vpop.f32.mrb[6].mxu0 }
 0x190   :  { %9044 = vst [vmem:[#allocation4_spill] sm:$0xff] %v6826_v18  ;;  %v472_v19 = vpop.f32.mrb[7].mxu0 }
 0x195   :  { %v6828_v20 = vpop.f32.mrb[8].mxu0 }
 0x196   :  { %9045 = vst [vmem:[#allocation5_spill] sm:$0xff] %v6828_v20  ;;  %v477_v21 = vpop.f32.mrb[9].mxu0 }
 0x197   :  { %v6830_v23 = vpop.f32.mrb[10].mxu0  ;;  %v6898_v21 = vld [vmem:[%s9025_s1 + $0x7] ss:$0 sm:$0xff] }
 0x198   :  { %9046 = vst [vmem:[#allocation6_spill] sm:$0xff] %v6830_v23  ;;  %v480_v24 = vpop.f32.mrb[11].mxu0 }
 0x19d   :  { %v483_v27 = vpop.f32.mrb[12].mxu0 }
 0x19e   :  { %v674_v28 = vadd.f32 %v657_v22, %v483_v27  ;;  %v485_v29 = vpop.f32.mrb[13].mxu0 }
 0x19f   :  { %v486_v30 = vpop.f32.mrb[14].mxu0 }
 0x1a0   :  { %v6834_v31 = vmax.f32 %v674_v28, 0.0  ;;  %v675_v32 = vadd.f32 %v662_v59, %v486_v30  ;;  %v488_v33 = vpop.f32.mrb[15].mxu0  ;;  %v1928_v28 = vld [vmem:[%s9023_s3 + $0x60] sm:$0xff] }
 0x1a1   :  { %v1927_v33 = vld [vmem:[%s9023_s3 + $0x58] sm:$0xff] }
 0x1a2   :  { %v6836_v34 = vmax.f32 %v675_v32, 0.0  ;;  %v731_v36 = vmul.f32 %v6776_v62, %v6834_v31  ;;  %v704_v38 = vmul.f32 %v701_v35, %v6834_v31  ;;  %v956_v8 = vmul.f32 %v953_v50, %v6834_v31 }
 0x1a4   :  { %v733_v37 = vmul.f32 %v6776_v62, %v6836_v34  ;;  %v706_v39 = vmul.f32 %v701_v35, %v6836_v34  ;;  %v958_v7 = vmul.f32 %v953_v50, %v6836_v34 }
 0x1a5   :  { %v491_v40 = vpop.f32.mrb[16].mxu0 }
 0x1a6   :  { %v676_v41 = vadd.f32 %v6768_v60, %v491_v40  ;;  %v493_v42 = vpop.f32.mrb[17].mxu0  ;;  %v746_v43 = vpack.c.bf16 %v733_v37, %v731_v36  ;;  %v718_v44 = vpack.c.bf16 %v706_v39, %v704_v38  ;;  %v971_v10 = vpack.c.bf16 %v958_v7, %v956_v8  ;;  %v1929_v40 = vld [vmem:[%s9023_s3 + $0x68] sm:$0xff] }
 0x1a7   :  { %v494_v45 = vpop.f32.mrb[18].mxu0 }
 0x1a8   :  { %v6847_v47 = vmax.f32 %v676_v41, 0.0  ;;  %v677_v48 = vadd.f32 %v672_v26, %v494_v45  ;;  %770 = vrot.lane.b32.xlu1 %v746_v43, %s6432_s24  ;;  %869 = vrot.lane.b32.xlu0 %v718_v44, %s6436_s28  ;;  %v496_v49 = vpop.f32.mrb[19].mxu0  ;;  %v6345_v43 = vld [vmem:[%s9024_s2 + $0x74] ss:$8 sps:$4 sm:$0xff]   ;;  %v6347_v44 = vld [vmem:[%s9024_s2 + $0x70] ss:$8 sps:$4 sm:$0xff]  }
 0x1a9   :  { %5305 = vmatprep.mubr.msk.bf16.mxu0 %vm78_vm0, %v6345_v43 }
 0x1aa   :  { %v6851_v51 = vmax.f32 %v677_v48, 0.0  ;;  %v735_v57 = vmul.f32 %v6776_v62, %v6847_v47  ;;  %v708_v59 = vmul.f32 %v701_v35, %v6847_v47  ;;  %v960_v13 = vmul.f32 %v953_v50, %v6847_v47  ;;  %514 = vmatmul.mubr.bf16.gmra.mrb[28].mxu0 %v6347_v44 }
 0x1ac   :  { %v737_v58 = vmul.f32 %v6776_v62, %v6851_v51  ;;  %v710_v60 = vmul.f32 %v701_v35, %v6851_v51  ;;  %v1085_v62 = vpop.permute.xlu0 %1084  ;;  %v962_v11 = vmul.f32 %v953_v50, %v6851_v51  ;;  %v6919_v35 = vld [vmem:[%s9025_s1 + $0x8] ss:$0 sm:$0xff]  ;;  %v6335_v50 = vld [vmem:[%s9026_s4 + $0x18] sm:$0xff]  }
 0x1ad   :  { %v1087_v6 = vmul.f32 0.0, %v1085_v62  ;;  %v6893_v19 = vpop.f32.mrb[20].mxu0  ;;  %v1090_v24 = vmul.f32 %v1085_v62, %v6836_v34  ;;  %v1088_v26 = vmul.f32 %v1085_v62, %v6834_v31  ;;  %v1094_v37 = vmul.f32 %v1085_v62, %v6851_v51 }
 0x1ae   :  { %v748_v61 = vpack.c.bf16 %v737_v58, %v735_v57  ;;  %v720_v2 = vpack.c.bf16 %v710_v60, %v708_v59  ;;  %v973_v17 = vpack.c.bf16 %v962_v11, %v960_v13  ;;  %v501_v22 = vpop.f32.mrb[21].mxu0  ;;  %v1092_v38 = vmul.f32 %v1085_v62, %v6847_v47  ;;  %v6351_v58 = vld [vmem:[%s9024_s2 + $0x80] ss:$8 sps:$4 sm:$0xff]   ;;  %v6355_v62 = vld [vmem:[%s9024_s2 + $0x90] ss:$8 sps:$4 sm:$0xff]  }
 0x1af   :  { %v1102_v9 = vpack.c.bf16 %v1087_v6, %v1087_v6  ;;  %v6905_v27 = vpop.f32.mrb[22].mxu0  ;;  %v1103_v30 = vpack.c.bf16 %v1090_v24, %v1088_v26  ;;  %v6337_v22 = vld [vmem:[%s9026_s4 + $0x28] sm:$0xff]  }
 0x1b0   :  { %774 = vrot.lane.b32.xlu1 %v748_v61, %s6432_s24  ;;  %873 = vrot.lane.b32.xlu0 %v720_v2, %s6436_s28  ;;  %v504_v29 = vpop.f32.mrb[23].mxu0  ;;  %v1105_v39 = vpack.c.bf16 %v1094_v37, %v1092_v38  ;;  %v6338_v37 = vld [vmem:[%s9026_s4] sm:$0xff]  }
 0x1b4   :  { %867 = vrot.lane.b32.xlu1 %v717_v63, %s6436_s28  ;;  %993 = vrot.lane.b32.xlu0 %v970_v0, %s6437_s30 }
 0x1b5   :  { %v6911_v32 = vpop.f32.mrb[24].mxu0 }
 0x1b6   :  { %v509_v36 = vpop.f32.mrb[25].mxu0 }
 0x1b7   :  { %v6929_v41 = vpop.f32.mrb[26].mxu0 }
 0x1b8   :  { %871 = vrot.lane.b32.xlu1 %v717_v63, %s6436_s28  ;;  %997 = vrot.lane.b32.xlu0 %v970_v0, %s6437_s30  ;;  %v512_v42 = vpop.f32.mrb[27].mxu0  ;;  %v6336_v63 = vld [vmem:[%s9026_s4 + $0x20] sm:$0xff]  }
 0x1bc   :  { %1320 = vrot.lane.b32.xlu1 %v6870_v3, %s6438_s18  ;;  %1452 = vrot.lane.b32.xlu0 %v6875_v5, %s6437_s30 }
 0x1c0   :  { %995 = vrot.lane.b32.xlu1 %v971_v10, %s6437_s30  ;;  %1125 = vrot.lane.b32.xlu0 %v1102_v9, %s6438_s18 }
 0x1c4   :  { %999 = vrot.lane.b32.xlu1 %v973_v17, %s6437_s30  ;;  %1932 = vperm.xlu0 %6312, %v1926_v15  }
 0x1c8   :  { %1584 = vrot.lane.b32.xlu1 %v6898_v21, %s6432_s24  ;;  %1129 = vrot.lane.b32.xlu0 %v1102_v9, %s6438_s18 }
 0x1cc   :  { %1127 = vrot.lane.b32.xlu1 %v1103_v30, %s6438_s18  ;;  %1942 = vperm.xlu0 %6312, %v1928_v28  }
 0x1d0   :  { %1937 = vperm.xlu1 %6313, %v1927_v33   ;;  %1716 = vrot.lane.b32.xlu0 %v6919_v35, %s6436_s28 }
 0x1d4   :  { %1131 = vrot.lane.b32.xlu1 %v1105_v39, %s6438_s18 }
 0x1d8   :  { %1947 = vperm.xlu1 %6313, %v1929_v40  }
 0x1dc   :  { %2003 = vrot.lane.b32.xlu1 %v6702_v52, %s6429_s22 }
 0x21a   :  { %v771_v45 = vpop.permute.xlu1 %770  ;;  %v870_v52 = vpop.permute.xlu0 %869 }
 0x21b   :  { %v777_v46 = vsel %vm776_vm3, %v6853_v55, %v771_v45  ;;  %v6349_v55 = vld [vmem:[%s9024_s2 + $0x84] ss:$8 sps:$4 sm:$0xff]  }
 0x21c   :  { %5851 = vmatpush3.bf16.msra.mxu1 %v777_v46  ;;  %5306 = vmatprep.mubr.msk.bf16.mxu0 %vm78_vm0, %v6349_v55 }
 0x21d   :  { %5852 = vmatprep.subr.bf16.mxu1 %v9033_v25  ;;  %522 = vmatmul.mubr.bf16.gmra.mrb[32].mxu0 %v6351_v58 }
 0x222   :  { %v775_v48 = vpop.permute.xlu1 %774  ;;  %v874_v53 = vpop.permute.xlu0 %873 }
 0x223   :  { %v778_v49 = vsel %vm776_vm3, %v6863_v1, %v775_v48  ;;  %v6353_v1 = vld [vmem:[%s9024_s2 + $0x94] ss:$8 sps:$4 sm:$0xff]  }
 0x224   :  { %5853 = vmatpush3.bf16.msra.mxu1 %v778_v49  ;;  %5307 = vmatprep.mubr.msk.bf16.mxu0 %vm78_vm0, %v6353_v1 }
 0x225   :  { %5866 = vmatprep.subr.bf16.mxu1 %v9033_v25  ;;  %530 = vmatmul.mubr.bf16.gmra.mrb[36].mxu0 %v6355_v62 }
 0x226   :  { %v868_v57 = vpop.permute.xlu1 %867  ;;  %v994_v60 = vpop.permute.xlu0 %993  ;;  %5934 = vmatprep.mubr.msk.bf16.mxu0 %vm6435_vm2, %v9033_v25 }
 0x227   :  { %v876_v59 = vsel %vm875_vm4, %v868_v57, %v870_v52  ;;  %5855 = vmatmul.mubr.msk.bf16.vlgmr.msra.gmra.mrb[0].mxu1 %vm781_vm5, %v6335_v50  ;;  %v6339_v50 = vld [vmem:[%s9026_s4 + $0x8] sm:$0xff]  }
 0x228   :  { %5867 = vmatpush3.bf16.msra.mxu1 %v876_v59  ;;  %5858 = vmatprep.mubr.msk.bf16.mxu1 %vm6435_vm2, %v9033_v25 }
 0x229   :  { %5868 = vmatprep.subr.bf16.mxu1 %v9033_v25 }
 0x22a   :  { %v872_v61 = vpop.permute.xlu1 %871  ;;  %v998_v9 = vpop.permute.xlu0 %997 }
 0x22b   :  { %v877_v2 = vsel %vm875_vm4, %v872_v61, %v874_v53 }
 0x22c   :  { %5869 = vmatpush3.bf16.msra.mxu1 %v877_v2  ;;  %v6340_v2 = vld [vmem:[%s9026_s4 + $0x10] sm:$0xff]  }
 0x22d   :  { %5882 = vmatprep.subr.bf16.mxu1 %v9033_v25 }
 0x22e   :  { %v1321_v0 = vpop.permute.xlu1 %1320  ;;  %v1453_v24 = vpop.permute.xlu0 %1452 }
 0x22f   :  { %5859 = vmatmul.mubr.msk.bf16.gmra.mrb[4].mxu1 %vm781_vm5, %v6336_v63  ;;  %v1324_v6 = vmul.f32 0.0, %v1321_v0  ;;  %v1323_v7 = vmul.f32 %v1321_v0, %v6834_v31  ;;  %v1325_v8 = vmul.f32 %v1321_v0, %v6836_v34  ;;  %v1327_v15 = vmul.f32 %v1321_v0, %v6847_v47 }
 0x230   :  { %5862 = vmatprep.mubr.msk.bf16.mxu1 %vm6435_vm2, %v9033_v25  ;;  %v1329_v17 = vmul.f32 %v1321_v0, %v6851_v51  ;;  %v1456_v29 = vmul.f32 0.0, %v1453_v24  ;;  %v1455_v33 = vmul.f32 %v1453_v24, %v6834_v31  ;;  %v1457_v36 = vmul.f32 %v1453_v24, %v6836_v34 }
 0x231   :  { %v1339_v10 = vpack.c.bf16 %v1324_v6, %v1324_v6  ;;  %v1338_v11 = vpack.c.bf16 %v1325_v8, %v1323_v7  ;;  %v1459_v46 = vmul.f32 %v1453_v24, %v6847_v47  ;;  %v1461_v52 = vmul.f32 %v1453_v24, %v6851_v51 }
 0x232   :  { %v996_v13 = vpop.permute.xlu1 %995  ;;  %v1340_v28 = vpack.c.bf16 %v1329_v17, %v1327_v15  ;;  %v1471_v38 = vpack.c.bf16 %v1456_v29, %v1456_v29  ;;  %v1126_v40 = vpop.permute.xlu0 %1125  ;;  %v1470_v42 = vpack.c.bf16 %v1457_v36, %v1455_v33 }
 0x233   :  { %1363 = vrot.lane.b32.xlu1 %v1339_v10, %s6433_s13  ;;  %1361 = vrot.lane.b32.xlu0 %v1338_v11, %s6433_s13  ;;  %v1002_v45 = vsel %vm1001_vm6, %v994_v60, %v996_v13  ;;  %v1472_v53 = vpack.c.bf16 %v1461_v52, %v1459_v46  ;;  %v1218_v46 = vpack.c.bf16 %v6851_v51, %v6847_v47 }
 0x236   :  { %v1000_v26 = vpop.permute.xlu1 %999 }
 0x237   :  { %5863 = vmatmul.mubr.msk.bf16.gmra.mrb[8].mxu1 %vm781_vm5, %v6337_v22  ;;  %1367 = vrot.lane.b32.xlu1 %v1339_v10, %s6433_s13  ;;  %v1003_v48 = vsel %vm1001_vm6, %v998_v9, %v1000_v26  ;;  %v6341_v10 = vld [vmem:[%s9026_s4 + $0x30] sm:$0xff]  }
 0x238   :  { %1365 = vrot.lane.b32.xlu0 %v1340_v28, %s6433_s13  ;;  %5870 = vmatprep.mubr.msk.bf16.mxu1 %vm6435_vm2, %v9033_v25 }
 0x23a   :  { %v1585_v30 = vpop.permute.xlu1 %1584 }
 0x23b   :  { %2225 = vrot.lane.b32.xlu1 %v6712_v54, %s6430_s29  ;;  %v1588_v39 = vmul.f32 0.0, %v1585_v30  ;;  %v1587_v43 = vmul.f32 %v1585_v30, %v6834_v31  ;;  %v1589_v44 = vmul.f32 %v1585_v30, %v6836_v34  ;;  %v1591_v57 = vmul.f32 %v1585_v30, %v6847_v47 }
 0x23c   :  { %1976 = vrot.lane.b32.xlu0 %v6722_v56, %s6431_s12  ;;  %v1593_v55 = vmul.f32 %v1585_v30, %v6851_v51 }
 0x23d   :  { %v1603_v54 = vpack.c.bf16 %v1588_v39, %v1588_v39  ;;  %v1602_v56 = vpack.c.bf16 %v1589_v44, %v1587_v43 }
 0x23e   :  { %v1604_v59 = vpack.c.bf16 %v1593_v55, %v1591_v57  ;;  %v1128_v60 = vpop.permute.xlu1 %1127  ;;  %v6357_v57 = vld [vmem:[%s9026_s4 + $0x78] sm:$0xff]  }
 0x23f   :  { %5871 = vmatmul.mubr.msk.bf16.vlgmr.msra.gmra.mrb[12].mxu1 %vm781_vm5, %v6338_v37  ;;  %1495 = vrot.lane.b32.xlu1 %v1471_v38, %s6430_s29  ;;  %v1134_v13 = vsel %vm1133_vm7, %v1126_v40, %v1128_v60 }
 0x240   :  { %5883 = vmatpush3.bf16.msra.mxu1 %v1002_v45  ;;  %1493 = vrot.lane.b32.xlu0 %v1470_v42, %s6430_s29  ;;  %v6343_v45 = vld [vmem:[%s9026_s4 + $0x40] sm:$0xff]  }
 0x241   :  { %5884 = vmatprep.subr.bf16.mxu1 %v9033_v25  ;;  %5874 = vmatprep.mubr.msk.bf16.mxu1 %vm6435_vm2, %v9033_v25 }
 0x243   :  { %1627 = vrot.lane.b32.xlu1 %v1603_v54, %s6429_s22  ;;  %v1933_v49 = vpop.permute.xlu0 %1932 }
 0x244   :  { %5885 = vmatpush3.bf16.msra.mxu1 %v1003_v48  ;;  %1625 = vrot.lane.b32.xlu0 %v1602_v56, %s6429_s22  ;;  %v1217_v56 = vpack.c.bf16 %v6836_v34, %v6834_v31 }
 0x245   :  { %5898 = vmatprep.subr.bf16.mxu1 %v9033_v25 }
 0x247   :  { %5875 = vmatmul.mubr.msk.bf16.gmra.mrb[16].mxu1 %vm781_vm5, %v6339_v50  ;;  %1499 = vrot.lane.b32.xlu1 %v1471_v38, %s6430_s29  ;;  %v1130_v58 = vpop.permute.xlu0 %1129 }
 0x248   :  { %1497 = vrot.lane.b32.xlu0 %v1472_v53, %s6430_s29  ;;  %5878 = vmatprep.mubr.msk.bf16.mxu1 %vm6435_vm2, %v9033_v25 }
 0x24b   :  { %1631 = vrot.lane.b32.xlu1 %v1603_v54, %s6429_s22  ;;  %v1943_v61 = vpop.permute.xlu0 %1942  ;;  %v6344_v54 = vld [vmem:[%s9026_s4 + $0x48] sm:$0xff]  }
 0x24c   :  { %1629 = vrot.lane.b32.xlu0 %v1604_v59, %s6429_s22  ;;  %v1952_v17 = vadd.f32 %v1943_v61, %v6911_v32  ;;  %v6342_v32 = vld [vmem:[%s9026_s4 + $0x38] sm:$0xff]  }
 0x24f   :  { %v1938_v63 = vpop.permute.xlu1 %1937  ;;  %5879 = vmatmul.mubr.msk.bf16.gmra.mrb[20].mxu1 %vm781_vm5, %v6340_v2  ;;  %v1717_v0 = vpop.permute.xlu0 %1716 }
 0x250   :  { %2356 = vrot.lane.b32.xlu0 %v6792_v4, %s6433_s13  ;;  %v1719_v1 = vmul.f32 %v1717_v0, %v6834_v31  ;;  %v1721_v62 = vmul.f32 %v1717_v0, %v6836_v34  ;;  %v1720_v6 = vmul.f32 0.0, %v1717_v0  ;;  %5886 = vmatprep.mubr.msk.bf16.mxu1 %vm6435_vm2, %v9033_v25  ;;  %v1950_v4 = vadd.f32 %v1933_v49, %v6893_v19  ;;  %v6352_v31 = vld [vmem:[%s9026_s4 + $0x58] sm:$0xff]   ;;  %v6356_v34 = vld [vmem:[%s9026_s4 + $0x60] sm:$0xff]  }
 0x251   :  { %v1951_v11 = vadd.f32 %v1938_v63, %v6905_v27  ;;  %v1723_v36 = vmul.f32 %v1717_v0, %v6847_v47  ;;  %v1725_v37 = vmul.f32 %v1717_v0, %v6851_v51  ;;  %v6358_v47 = vld [vmem:[%s9026_s4 + $0x68] sm:$0xff]   ;;  %v6359_v51 = vld [vmem:[%s9026_s4 + $0x70] sm:$0xff]  }
 0x252   :  { %v1734_v7 = vpack.c.bf16 %v1721_v62, %v1719_v1  ;;  %v1735_v8 = vpack.c.bf16 %v1720_v6, %v1720_v6  ;;  %v7053_v19 = vmax.f32 %v1950_v4, 0.0 }
 0x253   :  { %v1132_v9 = vpop.permute.xlu1 %1131  ;;  %v7055_v27 = vmax.f32 %v1951_v11, 0.0  ;;  %v1736_v43 = vpack.c.bf16 %v1725_v37, %v1723_v36  ;;  %v6361_v36 = vld [vmem:[%s9026_s4 + $0x90] sm:$0xff]  }
 0x254   :  { %1757 = vrot.lane.b32.xlu1 %v1734_v7, %s6431_s12  ;;  %1759 = vrot.lane.b32.xlu0 %v1735_v8, %s6431_s12  ;;  %v1135_v26 = vsel %vm1133_vm7, %v1130_v58, %v1132_v9 }
 0x257   :  { %v1948_v15 = vpop.permute.xlu1 %1947  ;;  %5887 = vmatmul.mubr.msk.bf16.vlgmr.msra.gmra.mrb[24].mxu1 %vm781_vm5, %v6341_v10 }
 0x258   :  { %v1953_v22 = vadd.f32 %v1948_v15, %v6929_v41  ;;  %5899 = vmatpush3.bf16.msra.mxu1 %v1134_v13  ;;  %1763 = vrot.lane.b32.xlu0 %v1735_v8, %s6431_s12  ;;  %v7063_v41 = vmax.f32 %v1952_v17, 0.0  ;;  %v6360_v15 = vld [vmem:[%s9026_s4 + $0x80] sm:$0xff]  }
 0x259   :  { %5900 = vmatprep.subr.bf16.mxu1 %v9033_v25  ;;  %5890 = vmatprep.mubr.msk.bf16.mxu1 %vm6435_vm2, %v9033_v25 }
 0x25a   :  { %v7057_v24 = vmax.f32 %v1953_v22, 0.0 }
 0x25b   :  { %v2004_v28 = vpop.permute.xlu1 %2003 }
 0x25c   :  { %5901 = vmatpush3.bf16.msra.mxu1 %v1135_v26  ;;  %v2006_v29 = vmul.f32 0.0, %v2004_v28  ;;  %v2007_v30 = vmul.f32 %v2004_v28, %v7053_v19  ;;  %v2009_v33 = vmul.f32 %v2004_v28, %v7055_v27  ;;  %v2011_v40 = vmul.f32 %v2004_v28, %v7063_v41 }
 0x25d   :  { %5914 = vmatprep.subr.bf16.mxu1 %v9033_v25  ;;  %v2013_v42 = vmul.f32 %v2004_v28, %v7057_v24 }
 0x25e   :  { %v2021_v38 = vpack.c.bf16 %v2006_v29, %v2006_v29  ;;  %v2022_v39 = vpack.c.bf16 %v2009_v33, %v2007_v30 }
 0x25f   :  { %5891 = vmatmul.mubr.msk.bf16.gmra.mrb[28].mxu1 %vm781_vm5, %v6342_v32  ;;  %v2024_v44 = vpack.c.bf16 %v2013_v42, %v2011_v40 }
 0x260   :  { %2044 = vrot.lane.b32.xlu1 %v2021_v38, %s6432_s24  ;;  %2046 = vrot.lane.b32.xlu0 %v2022_v39, %s6432_s24  ;;  %v6362_v39 = vld [vmem:[%s9026_s4 + $0x88] sm:$0xff]  }
 0x261   :  { %5894 = vmatprep.mubr.msk.bf16.mxu1 %vm6435_vm2, %v9033_v25 }
 0x264   :  { %1761 = vrot.lane.b32.xlu1 %v1736_v43, %s6431_s12  ;;  %2050 = vrot.lane.b32.xlu0 %v2024_v44, %s6432_s24 }
 0x267   :  { %5895 = vmatmul.mubr.msk.bf16.gmra.mrb[32].mxu1 %vm781_vm5, %v6343_v45 }
 0x268   :  { %2048 = vrot.lane.b32.xlu1 %v2021_v38, %s6432_s24  ;;  %2722 = vrot.lane.b32.xlu0 %v6875_v5, %s6437_s30  ;;  %v6348_v5 = vld [vmem:[%s9026_s4 + $0x50] sm:$0xff]  }
 0x269   :  { %5902 = vmatprep.mubr.msk.bf16.mxu1 %vm6435_vm2, %v9033_v25 }
 0x26c   :  { %2591 = vrot.lane.b32.xlu1 %v6870_v3, %s6438_s18 }
 0x26f   :  { %5903 = vmatmul.mubr.msk.bf16.vlgmr.msra.gmra.mrb[36].mxu1 %vm781_vm5, %v6344_v54 }
 0x270   :  { %5915 = vmatpush3.bf16.msra.mxu1 %v1217_v56  ;;  %5906 = vmatprep.mubr.msk.bf16.mxu1 %vm6435_vm2, %v9033_v25 }
 0x271   :  { %5916 = vmatprep.subr.bf16.mxu1 %v9033_v25 }
 0x274   :  { %5917 = vmatpush3.bf16.msra.mxu1 %v1218_v46 }
 0x275   :  { %5946 = vmatprep.subr.bf16.mxu1 %v9033_v25 }
 0x277   :  { %5907 = vmatmul.mubr.msk.bf16.gmra.mrb[40].mxu1 %vm781_vm5, %v6348_v5 }
 0x278   :  { %5910 = vmatprep.mubr.msk.bf16.mxu1 %vm6435_vm2, %v9033_v25 }
 0x27f   :  { %5911 = vmatmul.mubr.msk.bf16.gmra.mrb[44].mxu1 %vm781_vm5, %v6352_v31 }
 0x280   :  { %5918 = vmatprep.mubr.msk.bf16.mxu1 %vm6435_vm2, %v9033_v25 }
 0x287   :  { %5919 = vmatmul.mubr.msk.bf16.vlgmr.msra.gmra.mrb[48].mxu1 %vm781_vm5, %v6356_v34  ;;  %v6363_v34 = vld [vmem:[%s9026_s4 + $0x98] sm:$0xff]  }
 0x288   :  { %5922 = vmatprep.mubr.msk.bf16.mxu1 %vm6435_vm2, %v9033_v25 }
 0x28f   :  { %5923 = vmatmul.mubr.msk.bf16.gmra.mrb[52].mxu1 %vm781_vm5, %v6358_v47 }
 0x290   :  { %5926 = vmatprep.mubr.msk.bf16.mxu1 %vm6435_vm2, %v9033_v25 }
 0x297   :  { %5927 = vmatmul.mubr.msk.bf16.gmra.mrb[56].mxu1 %vm781_vm5, %v6359_v51 }
 0x298   :  { %5950 = vmatprep.mubr.msk.bf16.mxu1 %vm6435_vm2, %v9033_v25 }
 0x2a5   :  { %v1364_v3 = vpop.permute.xlu1 %1363  ;;  %v1362_v52 = vpop.permute.xlu0 %1361 }
 0x2a6   :  { %v1370_v48 = vsel %vm1369_vm8, %v1362_v52, %v1364_v3 }
 0x2a7   :  { %5931 = vmatpush3.bf16.msra.mxu0 %v1370_v48  ;;  %v6365_v48 = vld [vmem:[%s9026_s4 + $0xa0] sm:$0xff]  }
 0x2a8   :  { %5932 = vmatprep.subr.bf16.mxu0 %v9033_v25 }
 0x2a9   :  { %v1368_v49 = vpop.permute.xlu1 %1367 }
 0x2aa   :  { %v1366_v50 = vpop.permute.xlu0 %1365 }
 0x2ab   :  { %v1371_v53 = vsel %vm1369_vm8, %v1366_v50, %v1368_v49  ;;  %v6367_v49 = vld [vmem:[%s9026_s4 + $0xb0] sm:$0xff]  }
 0x2ac   :  { %5933 = vmatpush3.bf16.msra.mxu0 %v1371_v53 }
 0x2ad   :  { %v2226_v55 = vpop.permute.xlu1 %2225  ;;  %5962 = vmatprep.subr.bf16.mxu0 %v9033_v25 }
 0x2ae   :  { %v1977_v58 = vpop.permute.xlu0 %1976  ;;  %v2228_v2 = vmul.f32 0.0, %v2226_v55  ;;  %v2229_v62 = vmul.f32 %v2226_v55, %v7053_v19  ;;  %v2231_v6 = vmul.f32 %v2226_v55, %v7055_v27  ;;  %v2233_v32 = vmul.f32 %v2226_v55, %v7063_v41 }
 0x2af   :  { %v1979_v59 = vmul.f32 0.0, %v1977_v58  ;;  %v1980_v60 = vmul.f32 %v1977_v58, %v7053_v19  ;;  %v1982_v61 = vmul.f32 %v1977_v58, %v7055_v27  ;;  %5935 = vmatmul.mubr.msk.bf16.vlgmr.msra.gmra.mrb[40].mxu0 %vm781_vm5, %v6357_v57  ;;  %v1984_v11 = vmul.f32 %v1977_v58, %v7063_v41 }
 0x2b0   :  { %5938 = vmatprep.mubr.msk.bf16.mxu0 %vm6435_vm2, %v9033_v25  ;;  %v2243_v9 = vpack.c.bf16 %v2228_v2, %v2228_v2  ;;  %v2244_v4 = vpack.c.bf16 %v2231_v6, %v2229_v62  ;;  %v1986_v13 = vmul.f32 %v1977_v58, %v7057_v24  ;;  %v2235_v29 = vmul.f32 %v2226_v55, %v7057_v24  ;;  %v6369_v55 = vld [vmem:[%s9026_s4 + $0xb8] sm:$0xff]  }
 0x2b1   :  { %v1496_v63 = vpop.permute.xlu1 %1495  ;;  %v1993_v0 = vpack.c.bf16 %v1979_v59, %v1979_v59  ;;  %v1994_v1 = vpack.c.bf16 %v1982_v61, %v1980_v60  ;;  %v6366_v60 = vld [vmem:[%s9026_s4 + $0xc0] sm:$0xff]  }
 0x2b2   :  { %v1494_v7 = vpop.permute.xlu0 %1493  ;;  %v1996_v28 = vpack.c.bf16 %v1986_v13, %v1984_v11  ;;  %v2246_v38 = vpack.c.bf16 %v2235_v29, %v2233_v32  ;;  %v6372_v32 = vld [vmem:[%s9027_s6 + $0x20] sm:$0xff]   ;;  %v6370_v29 = vld [vmem:[%s9026_s4 + $0xd0] sm:$0xff]  }
 0x2b3   :  { %v1502_v8 = vsel %vm1501_vm9, %v1494_v7, %v1496_v63  ;;  %2141 = vrot.lane.b32.xlu1 %v1993_v0, %s6436_s28  ;;  %2143 = vrot.lane.b32.xlu0 %v1994_v1, %s6436_s28 }
 0x2b4   :  { %5947 = vmatpush3.bf16.msra.mxu1 %v1502_v8 }
 0x2b5   :  { %v1628_v10 = vpop.permute.xlu1 %1627  ;;  %5948 = vmatprep.subr.bf16.mxu1 %v9033_v25 }
 0x2b6   :  { %v1626_v17 = vpop.permute.xlu0 %1625 }
 0x2b7   :  { %v1634_v22 = vsel %vm1633_vm10, %v1626_v17, %v1628_v10  ;;  %2266 = vrot.lane.b32.xlu1 %v2243_v9, %s6437_s30  ;;  %2268 = vrot.lane.b32.xlu0 %v2244_v4, %s6437_s30  ;;  %v6368_v10 = vld [vmem:[%s9026_s4 + $0xc8] sm:$0xff]  }
 0x2b8   :  { %5963 = vmatpush3.bf16.msra.mxu0 %v1634_v22 }
 0x2b9   :  { %v1500_v26 = vpop.permute.xlu1 %1499  ;;  %5964 = vmatprep.subr.bf16.mxu0 %v9033_v25  ;;  %5939 = vmatmul.mubr.msk.bf16.gmra.mrb[44].mxu0 %vm781_vm5, %v6360_v15 }
 0x2ba   :  { %v1498_v30 = vpop.permute.xlu0 %1497  ;;  %5942 = vmatprep.mubr.msk.bf16.mxu0 %vm6435_vm2, %v9033_v25 }
 0x2bb   :  { %v1503_v33 = vsel %vm1501_vm9, %v1498_v30, %v1500_v26  ;;  %2145 = vrot.lane.b32.xlu1 %v1993_v0, %s6436_s28  ;;  %2147 = vrot.lane.b32.xlu0 %v1996_v28, %s6436_s28  ;;  %v6371_v0 = vld [vmem:[%s9027_s6 + $0x18] sm:$0xff]  }
 0x2bc   :  { %5949 = vmatpush3.bf16.msra.mxu1 %v1503_v33 }
 0x2bd   :  { %v1632_v37 = vpop.permute.xlu1 %1631  ;;  %5978 = vmatprep.subr.bf16.mxu1 %v9033_v25 }
 0x2be   :  { %v1630_v40 = vpop.permute.xlu0 %1629 }
 0x2bf   :  { %v1635_v42 = vsel %vm1633_vm10, %v1630_v40, %v1632_v37  ;;  %2270 = vrot.lane.b32.xlu1 %v2243_v9, %s6437_s30  ;;  %2272 = vrot.lane.b32.xlu0 %v2246_v38, %s6437_s30  ;;  %v6373_v38 = vld [vmem:[%s9027_s6 + $0x28] sm:$0xff]  }
 0x2c0   :  { %5965 = vmatpush3.bf16.msra.mxu0 %v1635_v42  ;;  %5951 = vmatmul.mubr.msk.bf16.vlgmr.msra.gmra.mrb[60].mxu1 %vm781_vm5, %v6361_v36 }
 0x2c1   :  { %5943 = vmatmul.mubr.msk.bf16.gmra.mrb[48].mxu0 %vm781_vm5, %v6362_v39  ;;  %5954 = vmatprep.mubr.msk.bf16.mxu1 %vm6435_vm2, %v9033_v25  ;;  %v7286_v39 = vpop.f32.mrb[28].mxu0 }
 0x2c2   :  { %v2357_v43 = vpop.permute.xlu0 %2356  ;;  %5966 = vmatprep.mubr.msk.bf16.mxu0 %vm6435_vm2, %v9033_v25  ;;  %5994 = vmatprep.subr.bf16.mxu0 %v9033_v25  ;;  %9047 = vst [vmem:[#allocation7_spill] sm:$0xff] %v7286_v39  ;;  %v517_v40 = vpop.f32.mrb[29].mxu0 }
 0x2c3   :  { %2853 = vrot.lane.b32.xlu1 %v6898_v21, %s6432_s24  ;;  %2984 = vrot.lane.b32.xlu0 %v6919_v35, %s6436_s28  ;;  %v2359_v44 = vmul.f32 0.0, %v2357_v43  ;;  %v2360_v45 = vmul.f32 %v2357_v43, %v7053_v19  ;;  %v2362_v54 = vmul.f32 %v2357_v43, %v7055_v27  ;;  %v2364_v46 = vmul.f32 %v2357_v43, %v7063_v41  ;;  %v6364_v21 = vld [vmem:[%s9026_s4 + $0xa8] sm:$0xff]   ;;  %v7288_v42 = vpop.f32.mrb[30].mxu0 }
 0x2c4   :  { %v2366_v31 = vmul.f32 %v2357_v43, %v7057_v24  ;;  %9048 = vst [vmem:[#allocation8_spill] sm:$0xff] %v7288_v42 }
 0x2c5   :  { %v2374_v56 = vpack.c.bf16 %v2359_v44, %v2359_v44  ;;  %v2375_v5 = vpack.c.bf16 %v2362_v54, %v2360_v45  ;;  %v520_v44 = vpop.f32.mrb[31].mxu0 }
 0x2c6   :  { %v1758_v35 = vpop.permute.xlu1 %1757  ;;  %v1760_v47 = vpop.permute.xlu0 %1759  ;;  %v2377_v3 = vpack.c.bf16 %v2366_v31, %v2364_v46 }
 0x2c7   :  { %2397 = vrot.lane.b32.xlu1 %v2374_v56, %s6438_s18  ;;  %v1766_v51 = vsel %vm1765_vm11, %v1758_v35, %v1760_v47  ;;  %2399 = vrot.lane.b32.xlu0 %v2375_v5, %s6438_s18 }
 0x2c8   :  { %5979 = vmatpush3.bf16.msra.mxu1 %v1766_v51 }
 0x2c9   :  { %5955 = vmatmul.mubr.msk.bf16.gmra.mrb[64].mxu1 %vm781_vm5, %v6363_v34  ;;  %5967 = vmatmul.mubr.msk.bf16.vlgmr.msra.gmra.mrb[52].mxu0 %vm781_vm5, %v6364_v21 }
 0x2ca   :  { %5980 = vmatprep.subr.bf16.mxu1 %v9033_v25  ;;  %5958 = vmatprep.mubr.msk.bf16.mxu1 %vm6435_vm2, %v9033_v25  ;;  %v1764_v52 = vpop.permute.xlu0 %1763 }
 0x2cb   :  { %2401 = vrot.lane.b32.xlu1 %v2374_v56, %s6438_s18  ;;  %2403 = vrot.lane.b32.xlu0 %v2377_v3, %s6438_s18 }
 0x2cc   :  { %5970 = vmatprep.mubr.msk.bf16.mxu0 %vm6435_vm2, %v9033_v25 }
 0x2d1   :  { %5959 = vmatmul.mubr.msk.bf16.gmra.mrb[68].mxu1 %vm781_vm5, %v6365_v48  ;;  %5971 = vmatmul.mubr.msk.bf16.gmra.mrb[56].mxu0 %vm781_vm5, %v6367_v49 }
 0x2d2   :  { %v2045_v50 = vpop.permute.xlu1 %2044  ;;  %v2047_v53 = vpop.permute.xlu0 %2046  ;;  %5982 = vmatprep.mubr.msk.bf16.mxu1 %vm6435_vm2, %v9033_v25  ;;  %5974 = vmatprep.mubr.msk.bf16.mxu0 %vm6435_vm2, %v9033_v25 }
 0x2d3   :  { %v2052_v57 = vsel %vm776_vm3, %v2045_v50, %v2047_v53 }
 0x2d4   :  { %5995 = vmatpush3.bf16.msra.mxu0 %v2052_v57 }
 0x2d5   :  { %5996 = vmatprep.subr.bf16.mxu0 %v9033_v25 }
 0x2d6   :  { %v1762_v58 = vpop.permute.xlu1 %1761  ;;  %v2051_v61 = vpop.permute.xlu0 %2050 }
 0x2d7   :  { %v1767_v59 = vsel %vm1765_vm11, %v1762_v58, %v1764_v52 }
 0x2d8   :  { %5981 = vmatpush3.bf16.msra.mxu1 %v1767_v59 }
 0x2d9   :  { %5975 = vmatmul.mubr.msk.bf16.gmra.mrb[60].mxu0 %vm781_vm5, %v6369_v55  ;;  %6010 = vmatprep.subr.bf16.mxu1 %v9033_v25 }
 0x2da   :  { %v2049_v2 = vpop.permute.xlu1 %2048  ;;  %5998 = vmatprep.mubr.msk.bf16.mxu0 %vm6435_vm2, %v9033_v25  ;;  %v2723_v1 = vpop.permute.xlu0 %2722 }
 0x2db   :  { %v2053_v63 = vsel %vm776_vm3, %v2049_v2, %v2051_v61  ;;  %5983 = vmatmul.mubr.msk.bf16.vlgmr.msra.gmra.mrb[72].mxu1 %vm781_vm5, %v6366_v60  ;;  %v2726_v9 = vmul.f32 0.0, %v2723_v1  ;;  %v2725_v13 = vmul.f32 %v2723_v1, %v7053_v19  ;;  %v2727_v15 = vmul.f32 %v2723_v1, %v7055_v27 }
 0x2dc   :  { %5997 = vmatpush3.bf16.msra.mxu0 %v2053_v63  ;;  %5986 = vmatprep.mubr.msk.bf16.mxu1 %vm6435_vm2, %v9033_v25  ;;  %v2729_v33 = vmul.f32 %v2723_v1, %v7063_v41  ;;  %v2731_v36 = vmul.f32 %v2723_v1, %v7057_v24 }
 0x2dd   :  { %6026 = vmatprep.subr.bf16.mxu0 %v9033_v25  ;;  %v2741_v17 = vpack.c.bf16 %v2726_v9, %v2726_v9  ;;  %v2740_v22 = vpack.c.bf16 %v2727_v15, %v2725_v13 }
 0x2de   :  { %v2592_v62 = vpop.permute.xlu1 %2591  ;;  %v2742_v37 = vpack.c.bf16 %v2731_v36, %v2729_v33 }
 0x2df   :  { %v2594_v6 = vmul.f32 %v2592_v62, %v7053_v19  ;;  %v2596_v7 = vmul.f32 %v2592_v62, %v7055_v27  ;;  %v2595_v8 = vmul.f32 0.0, %v2592_v62  ;;  %v2598_v26 = vmul.f32 %v2592_v62, %v7063_v41 }
 0x2e0   :  { %v2600_v28 = vmul.f32 %v2592_v62, %v7057_v24 }
 0x2e1   :  { %v2609_v4 = vpack.c.bf16 %v2596_v7, %v2594_v6  ;;  %v2610_v11 = vpack.c.bf16 %v2595_v8, %v2595_v8  ;;  %5999 = vmatmul.mubr.msk.bf16.vlgmr.msra.gmra.mrb[64].mxu0 %vm781_vm5, %v6371_v0 }
 0x2e2   :  { %6002 = vmatprep.mubr.msk.bf16.mxu0 %vm6435_vm2, %v9033_v25  ;;  %v2611_v30 = vpack.c.bf16 %v2600_v28, %v2598_v26 }
 0x2e3   :  { %2632 = vrot.lane.b32.xlu1 %v2609_v4, %s6433_s13  ;;  %2634 = vrot.lane.b32.xlu0 %v2610_v11, %s6433_s13 }
 0x2e4   :  { %5987 = vmatmul.mubr.msk.bf16.gmra.mrb[76].mxu1 %vm781_vm5, %v6368_v10 }
 0x2e5   :  { %5990 = vmatprep.mubr.msk.bf16.mxu1 %vm6435_vm2, %v9033_v25 }
 0x2e7   :  { %2763 = vrot.lane.b32.xlu1 %v2740_v22, %s6430_s29  ;;  %2765 = vrot.lane.b32.xlu0 %v2741_v17, %s6430_s29 }
 0x2e9   :  { %6003 = vmatmul.mubr.msk.bf16.gmra.mrb[68].mxu0 %vm781_vm5, %v6372_v32 }
 0x2ea   :  { %6006 = vmatprep.mubr.msk.bf16.mxu0 %vm6435_vm2, %v9033_v25 }
 0x2eb   :  { %2636 = vrot.lane.b32.xlu1 %v2611_v30, %s6433_s13  ;;  %2638 = vrot.lane.b32.xlu0 %v2610_v11, %s6433_s13 }
 0x2ec   :  { %5991 = vmatmul.mubr.msk.bf16.gmra.mrb[80].mxu1 %vm781_vm5, %v6370_v29 }
 0x2ed   :  { %6014 = vmatprep.mubr.msk.bf16.mxu1 %vm6435_vm2, %v9033_v25 }
 0x2ef   :  { %2767 = vrot.lane.b32.xlu1 %v2742_v37, %s6430_s29  ;;  %2769 = vrot.lane.b32.xlu0 %v2741_v17, %s6430_s29 }
 0x2f0   :  { %v7290_v5 = vpop.f32.mrb[32].mxu0 }
 0x2f1   :  { %6007 = vmatmul.mubr.msk.bf16.gmra.mrb[72].mxu0 %vm781_vm5, %v6373_v38  ;;  %9049 = vst [vmem:[#allocation9_spill] sm:$0xff] %v7290_v5  ;;  %v525_v46 = vpop.f32.mrb[33].mxu0 }
 0x2f2   :  { %6030 = vmatprep.mubr.msk.bf16.mxu0 %vm6435_vm2, %v9033_v25  ;;  %v7292_v31 = vpop.f32.mrb[34].mxu0 }
 0x2f3   :  { %9050 = vst [vmem:[#allocation10_spill] sm:$0xff] %v7292_v31  ;;  %v528_v34 = vpop.f32.mrb[35].mxu0 }
 0x2f8   :  { %v7294_v3 = vpop.f32.mrb[36].mxu0 }
 0x2f9   :  { %9051 = vst [vmem:[#allocation11_spill] sm:$0xff] %v7294_v3  ;;  %v533_v52 = vpop.f32.mrb[37].mxu0 }
 0x2fa   :  { %v825_v43 = vpop.f32.mrb[0].mxu1  ;;  %v7296_v48 = vpop.f32.mrb[38].mxu0 }
 0x2fb   :  { %v5856_v45 = vpop.f32.mrb[1].mxu1  ;;  %9052 = vst [vmem:[#allocation12_spill] sm:$0xff] %v7296_v48  ;;  %v536_v49 = vpop.f32.mrb[39].mxu0 }
 0x2fc   :  { %v828_v54 = vpop.f32.mrb[2].mxu1  ;;  %v6375_v45 = vld [vmem:[%s9027_s6] sm:$0xff]  }
 0x2fd   :  { %v5857_v56 = vpop.f32.mrb[3].mxu1 }
 0x302   :  { %v833_v21 = vpop.f32.mrb[4].mxu1 }
 0x303   :  { %v5860_v35 = vpop.f32.mrb[5].mxu1 }
 0x304   :  { %v836_v47 = vpop.f32.mrb[6].mxu1 }
 0x305   :  { %v5861_v51 = vpop.f32.mrb[7].mxu1 }
 0x30a   :  { %v841_v50 = vpop.f32.mrb[8].mxu1 }
 0x30b   :  { %v5864_v53 = vpop.f32.mrb[9].mxu1 }
 0x30c   :  { %v844_v57 = vpop.f32.mrb[10].mxu1  ;;  %v2488_v53 = vpack.c.bf16 %v7055_v27, %v7053_v19 }
 0x30d   :  { %v5865_v55 = vpop.f32.mrb[11].mxu1 }
 0x312   :  { %v923_v58 = vpop.f32.mrb[12].mxu1 }
 0x313   :  { %v924_v59 = vadd.f32 %v923_v58, %v825_v43  ;;  %v5872_v60 = vpop.f32.mrb[13].mxu1 }
 0x314   :  { %v926_v61 = vpop.f32.mrb[14].mxu1 }
 0x315   :  { %v927_v2 = vadd.f32 %v926_v61, %v828_v54  ;;  %v5873_v63 = vpop.f32.mrb[15].mxu1 }
 0x31a   :  { %v931_v0 = vpop.f32.mrb[16].mxu1 }
 0x31b   :  { %v932_v1 = vadd.f32 %v931_v0, %v833_v21  ;;  %v5876_v62 = vpop.f32.mrb[17].mxu1  ;;  %v6374_v21 = vld [vmem:[%s9027_s6 + $0x30] sm:$0xff]  }
 0x31c   :  { %v934_v6 = vpop.f32.mrb[18].mxu1  ;;  %v6376_v62 = vld [vmem:[%s9027_s6 + $0x8] sm:$0xff]  }
 0x31d   :  { %v935_v7 = vadd.f32 %v934_v6, %v836_v47  ;;  %v5877_v8 = vpop.f32.mrb[19].mxu1 }
 0x31e   :  { %v2489_v8 = vpack.c.bf16 %v7057_v24, %v7063_v41 }
 0x322   :  { %v939_v9 = vpop.f32.mrb[20].mxu1 }
 0x323   :  { %v7298_v10 = vadd.f32 %v939_v9, %v841_v50  ;;  %v5880_v4 = vpop.f32.mrb[21].mxu1 }
 0x324   :  { %v942_v11 = vpop.f32.mrb[22].mxu1 }
 0x325   :  { %v2142_v13 = vpop.permute.xlu1 %2141  ;;  %v2144_v15 = vpop.permute.xlu0 %2143  ;;  %v7300_v17 = vadd.f32 %v942_v11, %v844_v57 }
 0x326   :  { %v2149_v22 = vsel %vm875_vm4, %v2142_v13, %v2144_v15  ;;  %v5881_v26 = vpop.f32.mrb[23].mxu1 }
 0x327   :  { %6011 = vmatpush3.bf16.msra.mxu1 %v2149_v22 }
 0x328   :  { %6012 = vmatprep.subr.bf16.mxu1 %v9033_v25 }
 0x329   :  { %v2267_v28 = vpop.permute.xlu1 %2266  ;;  %v2269_v32 = vpop.permute.xlu0 %2268 }
 0x32a   :  { %v2274_v29 = vsel %vm1001_vm6, %v2267_v28, %v2269_v32  ;;  %v1049_v30 = vpop.f32.mrb[24].mxu1 }
 0x32b   :  { %6027 = vmatpush3.bf16.msra.mxu0 %v2274_v29  ;;  %v7305_v33 = vadd.f32 %v1049_v30, %v924_v59  ;;  %v5888_v36 = vpop.f32.mrb[25].mxu1 }
 0x32c   :  { %6028 = vmatprep.subr.bf16.mxu0 %v9033_v25  ;;  %v1052_v37 = vpop.f32.mrb[26].mxu1 }
 0x32d   :  { %v2146_v38 = vpop.permute.xlu1 %2145  ;;  %v2148_v40 = vpop.permute.xlu0 %2147  ;;  %v7308_v43 = vadd.f32 %v1052_v37, %v927_v2 }
 0x32e   :  { %v2150_v44 = vsel %vm875_vm4, %v2146_v38, %v2148_v40  ;;  %v5889_v54 = vpop.f32.mrb[27].mxu1 }
 0x32f   :  { %6013 = vmatpush3.bf16.msra.mxu1 %v2150_v44 }
 0x330   :  { %6042 = vmatprep.subr.bf16.mxu1 %v9033_v25 }
 0x331   :  { %v2271_v56 = vpop.permute.xlu1 %2270  ;;  %v2273_v46 = vpop.permute.xlu0 %2272 }
 0x332   :  { %v2275_v34 = vsel %vm1001_vm6, %v2271_v56, %v2273_v46  ;;  %6015 = vmatmul.mubr.msk.bf16.vlgmr.msra.gmra.mrb[84].mxu1 %vm781_vm5, %v6375_v45  ;;  %v1057_v35 = vpop.f32.mrb[28].mxu1 }
 0x333   :  { %6029 = vmatpush3.bf16.msra.mxu0 %v2275_v34  ;;  %6018 = vmatprep.mubr.msk.bf16.mxu1 %vm6435_vm2, %v9033_v25  ;;  %v7322_v47 = vadd.f32 %v1057_v35, %v932_v1  ;;  %v5892_v51 = vpop.f32.mrb[29].mxu1 }
 0x334   :  { %6058 = vmatprep.subr.bf16.mxu0 %v9033_v25  ;;  %v1060_v52 = vpop.f32.mrb[30].mxu1  ;;  %v3111_v51 = vld [vmem:[%s9028_s7 + $0x10] sm:$0xff] }
 0x335   :  { %v2854_v49 = vpop.permute.xlu1 %2853  ;;  %v2985_v50 = vpop.permute.xlu0 %2984  ;;  %v7327_v57 = vadd.f32 %v1060_v52, %v935_v7  ;;  %v3112_v52 = vld [vmem:[%s9028_s7 + $0x18] sm:$0xff] }
 0x336   :  { %6031 = vmatmul.mubr.msk.bf16.vlgmr.msra.gmra.mrb[76].mxu0 %vm781_vm5, %v6374_v21  ;;  %v2856_v55 = vmul.f32 %v2854_v49, %v7053_v19  ;;  %v2858_v58 = vmul.f32 %v2854_v49, %v7055_v27  ;;  %v2857_v59 = vmul.f32 0.0, %v2854_v49  ;;  %v5893_v60 = vpop.f32.mrb[31].mxu1  ;;  %v2988_v61 = vmul.f32 0.0, %v2985_v50  ;;  %v3110_v21 = vld [vmem:[%s9028_s7 + $0x8] sm:$0xff] }
 0x337   :  { %6059 = vmatpush3.bf16.msra.mxu0 %v2488_v53  ;;  %6034 = vmatprep.mubr.msk.bf16.mxu0 %vm6435_vm2, %v9033_v25  ;;  %v2987_v0 = vmul.f32 %v2985_v50, %v7053_v19  ;;  %v2989_v1 = vmul.f32 %v2985_v50, %v7055_v27  ;;  %v6377_v19 = vld [vmem:[%s9027_s6 + $0x38] sm:$0xff]   ;;  %v2860_v22 = vmul.f32 %v2854_v49, %v7063_v41  ;;  %v3113_v60 = vld [vmem:[%s9028_s7 + $0x20] sm:$0xff] }
 0x338   :  { %v2871_v2 = vpack.c.bf16 %v2858_v58, %v2856_v55  ;;  %v2872_v63 = vpack.c.bf16 %v2857_v59, %v2857_v59  ;;  %6060 = vmatprep.subr.bf16.mxu0 %v9033_v25  ;;  %v3003_v4 = vpack.c.bf16 %v2988_v61, %v2988_v61  ;;  %v2862_v26 = vmul.f32 %v2854_v49, %v7057_v24  ;;  %v6381_v49 = vld [vmem:[%s9027_s6 + $0x60] sm:$0xff]   ;;  %v6382_v61 = vld [vmem:[%s9027_s6 + $0x50] sm:$0xff]  }
 0x339   :  { %v2398_v6 = vpop.permute.xlu1 %2397  ;;  %v2400_v7 = vpop.permute.xlu0 %2399  ;;  %v3002_v15 = vpack.c.bf16 %v2989_v1, %v2987_v0  ;;  %v2991_v38 = vmul.f32 %v2985_v50, %v7063_v41  ;;  %v2993_v40 = vmul.f32 %v2985_v50, %v7057_v24  ;;  %v6379_v41 = vld [vmem:[%s9027_s6 + $0x40] sm:$0xff]  }
 0x33a   :  { %v2405_v9 = vsel %vm1133_vm7, %v2398_v6, %v2400_v7  ;;  %2894 = vrot.lane.b32.xlu1 %v2871_v2, %s6429_s22  ;;  %2896 = vrot.lane.b32.xlu0 %v2872_v63, %s6429_s22  ;;  %v1065_v11 = vpop.f32.mrb[32].mxu1  ;;  %v2873_v37 = vpack.c.bf16 %v2862_v26, %v2860_v22  ;;  %v6383_v2 = vld [vmem:[%s9027_s6 + $0x68] sm:$0xff]   ;;  %v5562_v0 = vld [vmem:[%s9025_s1] ss:$0 sm:$0xff] }
 0x33b   :  { %6043 = vmatpush3.bf16.msra.mxu1 %v2405_v9  ;;  %6061 = vmatpush3.bf16.msra.mxu0 %v2489_v8  ;;  %v7349_v27 = vadd.f32 %v1065_v11, %v7298_v10  ;;  %v5896_v13 = vpop.f32.mrb[33].mxu1  ;;  %v3004_v54 = vpack.c.bf16 %v2993_v40, %v2991_v38 }
 0x33c   :  { %6044 = vmatprep.subr.bf16.mxu1 %v9033_v25  ;;  %6019 = vmatmul.mubr.msk.bf16.gmra.mrb[88].mxu1 %vm781_vm5, %v6376_v62  ;;  %v1068_v28 = vpop.f32.mrb[34].mxu1  ;;  %v6384_v13 = vld [vmem:[%s9027_s6 + $0x58] sm:$0xff]  }
 0x33d   :  { %v2402_v32 = vpop.permute.xlu1 %2401  ;;  %v2404_v29 = vpop.permute.xlu0 %2403  ;;  %6022 = vmatprep.mubr.msk.bf16.mxu1 %vm6435_vm2, %v9033_v25  ;;  %6090 = vmatprep.subr.bf16.mxu0 %v9033_v25  ;;  %v7359_v10 = vadd.f32 %v1068_v28, %v7300_v17  ;;  %v6378_v17 = vld [vmem:[%s9027_s6 + $0x10] sm:$0xff]  }
 0x33e   :  { %v2406_v30 = vsel %vm1133_vm7, %v2402_v32, %v2404_v29  ;;  %3025 = vrot.lane.b32.xlu1 %v3002_v15, %s6431_s12  ;;  %3027 = vrot.lane.b32.xlu0 %v3003_v4, %s6431_s12  ;;  %v5897_v36 = vpop.f32.mrb[35].mxu1  ;;  %v6385_v32 = vld [vmem:[%s9027_s6 + $0x70] sm:$0xff]  }
 0x33f   :  { %6045 = vmatpush3.bf16.msra.mxu1 %v2406_v30  ;;  %6035 = vmatmul.mubr.msk.bf16.gmra.mrb[80].mxu0 %vm781_vm5, %v6377_v19  ;;  %v5584_v19 = vld [vmem:[%s9025_s1 + $0x2] ss:$0 sm:$0xff]  ;;  %v5638_v30 = vld [vmem:[%s9025_s1 + $0x6] ss:$0 sm:$0xff] }
 0x340   :  { %6038 = vmatprep.mubr.msk.bf16.mxu0 %vm6435_vm2, %v9033_v25  ;;  %6074 = vmatprep.subr.bf16.mxu1 %v9033_v25 }
 0x342   :  { %2898 = vrot.lane.b32.xlu1 %v2873_v37, %s6429_s22  ;;  %2900 = vrot.lane.b32.xlu0 %v2872_v63, %s6429_s22  ;;  %v1181_v44 = vpop.f32.mrb[36].mxu1  ;;  %v5564_v63 = vld [vmem:[%s9025_s1 + $0x1] ss:$0 sm:$0xff] }
 0x343   :  { %v7379_v24 = vadd.f32 %v1181_v44, %v7305_v33  ;;  %v5904_v45 = vpop.f32.mrb[37].mxu1  ;;  %v3109_v33 = vld [vmem:[%s9028_s7] sm:$0xff] }
 0x344   :  { %6023 = vmatmul.mubr.msk.bf16.gmra.mrb[92].mxu1 %vm781_vm5, %v6378_v17  ;;  %v1184_v56 = vpop.f32.mrb[38].mxu1 }
 0x345   :  { %6046 = vmatprep.mubr.msk.bf16.mxu1 %vm6435_vm2, %v9033_v25  ;;  %v7385_v46 = vadd.f32 %v1184_v56, %v7308_v43  ;;  %v5905_v34 = vpop.f32.mrb[39].mxu1  ;;  %v6380_v43 = vld [vmem:[%s9027_s6 + $0x48] sm:$0xff]  }
 0x346   :  { %3029 = vrot.lane.b32.xlu1 %v3004_v54, %s6431_s12  ;;  %3031 = vrot.lane.b32.xlu0 %v3003_v4, %s6431_s12 }
 0x347   :  { %6039 = vmatmul.mubr.msk.bf16.gmra.mrb[84].mxu0 %vm781_vm5, %v6379_v41  ;;  %v6386_v41 = vld [vmem:[%s9027_s6 + $0x78] sm:$0xff]  }
 0x348   :  { %6062 = vmatprep.mubr.msk.bf16.mxu0 %vm6435_vm2, %v9033_v25 }
 0x34a   :  { %3117 = vperm.xlu1 %6313, %v3109_v33   ;;  %3122 = vperm.xlu0 %6312, %v3110_v21   ;;  %v1189_v35 = vpop.f32.mrb[40].mxu1 }
 0x34b   :  { %v7411_v50 = vadd.f32 %v1189_v35, %v7322_v47  ;;  %v5908_v53 = vpop.f32.mrb[41].mxu1  ;;  %v3114_v47 = vld [vmem:[%s9028_s7 + $0x28] sm:$0xff] }
 0x34c   :  { %6047 = vmatmul.mubr.msk.bf16.vlgmr.msra.gmra.mrb[96].mxu1 %vm781_vm5, %v6380_v43  ;;  %v1192_v55 = vpop.f32.mrb[42].mxu1 }
 0x34d   :  { %6050 = vmatprep.mubr.msk.bf16.mxu1 %vm6435_vm2, %v9033_v25  ;;  %v7417_v58 = vadd.f32 %v1192_v55, %v7327_v57  ;;  %v5909_v59 = vpop.f32.mrb[43].mxu1 }
 0x34e   :  { %3127 = vperm.xlu1 %6313, %v3111_v51   ;;  %3132 = vperm.xlu0 %6312, %v3112_v52   ;;  %v6388_v51 = vld [vmem:[%s9027_s6 + $0x80] sm:$0xff]  }
 0x34f   :  { %6063 = vmatmul.mubr.msk.bf16.vlgmr.msra.gmra.mrb[88].mxu0 %vm781_vm5, %v6381_v49  ;;  %v6389_v49 = vld [vmem:[%s9027_s6 + $0x98] sm:$0xff]  }
 0x350   :  { %6066 = vmatprep.mubr.msk.bf16.mxu0 %vm6435_vm2, %v9033_v25 }
 0x352   :  { %3137 = vperm.xlu1 %6313, %v3113_v60   ;;  %3142 = vperm.xlu0 %6312, %v3114_v47   ;;  %v1197_v57 = vpop.f32.mrb[44].mxu1  ;;  %v6390_v60 = vld [vmem:[%s9027_s6 + $0x88] sm:$0xff]   ;;  %v6391_v47 = vld [vmem:[%s9027_s6 + $0xa0] sm:$0xff]  }
 0x353   :  { %v7441_v1 = vadd.f32 %v1197_v57, %v7349_v27  ;;  %v5912_v62 = vpop.f32.mrb[45].mxu1  ;;  %v5598_v27 = vld [vmem:[%s9025_s1 + $0x3] ss:$0 sm:$0xff] }
 0x354   :  { %6051 = vmatmul.mubr.msk.bf16.gmra.mrb[100].mxu1 %vm781_vm5, %v6382_v61  ;;  %v1200_v6 = vpop.f32.mrb[46].mxu1 }
 0x355   :  { %v2633_v7 = vpop.permute.xlu1 %2632  ;;  %v2635_v8 = vpop.permute.xlu0 %2634  ;;  %6054 = vmatprep.mubr.msk.bf16.mxu1 %vm6435_vm2, %v9033_v25  ;;  %v1209_v9 = vadd.f32 %v1200_v6, %v7359_v10 }
 0x356   :  { %v2640_v4 = vsel %vm1369_vm8, %v2633_v7, %v2635_v8  ;;  %3214 = vrot.lane.b32.xlu1 %v5564_v63, %s6429_s22  ;;  %3181 = vrot.lane.b32.xlu0 %v5562_v0, %s6431_s12  ;;  %v5913_v11 = vpop.f32.mrb[47].mxu1 }
 0x357   :  { %6075 = vmatpush3.bf16.msra.mxu1 %v2640_v4  ;;  %6067 = vmatmul.mubr.msk.bf16.gmra.mrb[92].mxu0 %vm781_vm5, %v6383_v2 }
 0x358   :  { %6076 = vmatprep.subr.bf16.mxu1 %v9033_v25  ;;  %6070 = vmatprep.mubr.msk.bf16.mxu0 %vm6435_vm2, %v9033_v25 }
 0x359   :  { %v2764_v15 = vpop.permute.xlu1 %2763  ;;  %v2766_v22 = vpop.permute.xlu0 %2765 }
 0x35a   :  { %v2771_v26 = vsel %vm1501_vm9, %v2764_v15, %v2766_v22  ;;  %3459 = vrot.lane.b32.xlu1 %v5584_v19, %s6430_s29  ;;  %3604 = vrot.lane.b32.xlu0 %v5598_v27, %s6433_s13  ;;  %v1277_v28 = vpop.f32.mrb[48].mxu1 }
 0x35b   :  { %6091 = vmatpush3.bf16.msra.mxu0 %v2771_v26  ;;  %v1300_v29 = vadd.f32 %v1277_v28, %v7379_v24  ;;  %v5920_v10 = vpop.f32.mrb[49].mxu1 }
 0x35c   :  { %6092 = vmatprep.subr.bf16.mxu0 %v9033_v25  ;;  %6055 = vmatmul.mubr.msk.bf16.gmra.mrb[104].mxu1 %vm781_vm5, %v6384_v13  ;;  %v1280_v36 = vpop.f32.mrb[50].mxu1 }
 0x35d   :  { %v2637_v37 = vpop.permute.xlu1 %2636  ;;  %v2639_v38 = vpop.permute.xlu0 %2638  ;;  %6078 = vmatprep.mubr.msk.bf16.mxu1 %vm6435_vm2, %v9033_v25  ;;  %v1301_v40 = vadd.f32 %v1280_v36, %v7385_v46  ;;  %v6387_v46 = vld [vmem:[%s9027_s6 + $0x90] sm:$0xff]  }
 0x35e   :  { %v2641_v17 = vsel %vm1369_vm8, %v2637_v37, %v2639_v38  ;;  %v5921_v44 = vpop.f32.mrb[51].mxu1  ;;  %4003 = vrot.lane.b32.xlu0 %v5638_v30, %s6437_s30 }
 0x35f   :  { %6077 = vmatpush3.bf16.msra.mxu1 %v2641_v17  ;;  %6071 = vmatmul.mubr.msk.bf16.gmra.mrb[96].mxu0 %vm781_vm5, %v6385_v32 }
 0x360   :  { %6094 = vmatprep.mubr.msk.bf16.mxu0 %vm6435_vm2, %v9033_v25  ;;  %6106 = vmatprep.subr.bf16.mxu1 %v9033_v25 }
 0x361   :  { %v2768_v24 = vpop.permute.xlu1 %2767  ;;  %v2770_v45 = vpop.permute.xlu0 %2769 }
 0x362   :  { %v2772_v54 = vsel %vm1501_vm9, %v2768_v24, %v2770_v45  ;;  %v1285_v56 = vpop.f32.mrb[52].mxu1 }
 0x363   :  { %6093 = vmatpush3.bf16.msra.mxu0 %v2772_v54  ;;  %v1302_v34 = vadd.f32 %v1285_v56, %v7411_v50  ;;  %v5924_v33 = vpop.f32.mrb[53].mxu1 }
 0x364   :  { %6079 = vmatmul.mubr.msk.bf16.vlgmr.msra.gmra.mrb[108].mxu1 %vm781_vm5, %v6386_v41  ;;  %v1288_v21 = vpop.f32.mrb[54].mxu1  ;;  %6122 = vmatprep.subr.bf16.mxu0 %v9033_v25 }
 0x365   :  { %6082 = vmatprep.mubr.msk.bf16.mxu1 %vm6435_vm2, %v9033_v25  ;;  %v1303_v43 = vadd.f32 %v1288_v21, %v7417_v58  ;;  %v5925_v35 = vpop.f32.mrb[55].mxu1 }
 0x367   :  { %6095 = vmatmul.mubr.msk.bf16.vlgmr.msra.gmra.mrb[100].mxu0 %vm781_vm5, %v6387_v46 }
 0x368   :  { %6098 = vmatprep.mubr.msk.bf16.mxu0 %vm6435_vm2, %v9033_v25 }
 0x36a   :  { %v1293_v52 = vpop.f32.mrb[56].mxu1 }
 0x36b   :  { %v1304_v50 = vadd.f32 %v1293_v52, %v7441_v1  ;;  %v5928_v53 = vpop.f32.mrb[57].mxu1 }
 0x36c   :  { %6083 = vmatmul.mubr.msk.bf16.gmra.mrb[112].mxu1 %vm781_vm5, %v6388_v51  ;;  %v1296_v55 = vpop.f32.mrb[58].mxu1 }
 0x36d   :  { %6086 = vmatprep.mubr.msk.bf16.mxu1 %vm6435_vm2, %v9033_v25  ;;  %v1305_v58 = vadd.f32 %v1296_v55, %v1209_v9  ;;  %v5929_v59 = vpop.f32.mrb[59].mxu1 }
 0x36f   :  { %6099 = vmatmul.mubr.msk.bf16.gmra.mrb[104].mxu0 %vm781_vm5, %v6389_v49 }
 0x370   :  { %6102 = vmatprep.mubr.msk.bf16.mxu0 %vm6435_vm2, %v9033_v25 }
 0x374   :  { %6087 = vmatmul.mubr.msk.bf16.gmra.mrb[116].mxu1 %vm781_vm5, %v6390_v60 }
 0x375   :  { %6110 = vmatprep.mubr.msk.bf16.mxu1 %vm6435_vm2, %v9033_v25 }
 0x377   :  { %6103 = vmatmul.mubr.msk.bf16.gmra.mrb[108].mxu0 %vm781_vm5, %v6391_v47 }
 0x378   :  { %6126 = vmatprep.mubr.msk.bf16.mxu0 %vm6435_vm2, %v9033_v25 }
 0x382   :  { %v1417_v61 = vpop.f32.mrb[40].mxu0 }
 0x383   :  { %v1440_v57 = vadd.f32 %v1417_v61, %v1300_v29  ;;  %v5936_v2 = vpop.f32.mrb[41].mxu0 }
 0x384   :  { %v1420_v63 = vpop.f32.mrb[42].mxu0 }
 0x385   :  { %v1441_v0 = vadd.f32 %v1420_v63, %v1301_v40  ;;  %v5937_v1 = vpop.f32.mrb[43].mxu0 }
 0x38c   :  { %v1425_v62 = vpop.f32.mrb[44].mxu0 }
 0x38d   :  { %v1442_v6 = vadd.f32 %v1425_v62, %v1302_v34  ;;  %v5940_v7 = vpop.f32.mrb[45].mxu0 }
 0x38e   :  { %v1428_v8 = vpop.f32.mrb[46].mxu0 }
 0x38f   :  { %v1443_v9 = vadd.f32 %v1428_v8, %v1303_v43  ;;  %v5941_v4 = vpop.f32.mrb[47].mxu0 }
 0x393   :  { %v1549_v11 = vpop.f32.mrb[60].mxu1 }
 0x394   :  { %v1572_v19 = vadd.f32 %v1549_v11, %v1440_v57  ;;  %v5952_v27 = vpop.f32.mrb[61].mxu1  ;;  %v1433_v13 = vpop.f32.mrb[48].mxu0 }
 0x395   :  { %v1552_v15 = vpop.f32.mrb[62].mxu1  ;;  %v1444_v22 = vadd.f32 %v1433_v13, %v1304_v50  ;;  %v5944_v26 = vpop.f32.mrb[49].mxu0 }
 0x396   :  { %v1573_v28 = vadd.f32 %v1552_v15, %v1441_v0  ;;  %v5953_v32 = vpop.f32.mrb[63].mxu1  ;;  %v1436_v29 = vpop.f32.mrb[50].mxu0  ;;  %v6392_v26 = vld [vmem:[%s9027_s6 + $0xa8] sm:$0xff]  }
 0x397   :  { %v1445_v10 = vadd.f32 %v1436_v29, %v1305_v58  ;;  %v5945_v30 = vpop.f32.mrb[51].mxu0 }
 0x39c   :  { %v1557_v36 = vpop.f32.mrb[64].mxu1  ;;  %v1681_v37 = vpop.f32.mrb[52].mxu0 }
 0x39d   :  { %v1574_v38 = vadd.f32 %v1557_v36, %v1442_v6  ;;  %v5956_v40 = vpop.f32.mrb[65].mxu1  ;;  %v1704_v17 = vadd.f32 %v1681_v37, %v1572_v19  ;;  %v5968_v44 = vpop.f32.mrb[53].mxu0 }
 0x39e   :  { %v1560_v41 = vpop.f32.mrb[66].mxu1  ;;  %v1684_v24 = vpop.f32.mrb[54].mxu0  ;;  %v6393_v40 = vld [vmem:[%s9027_s6 + $0xc0] sm:$0xff]  }
 0x39f   :  { %v1575_v45 = vadd.f32 %v1560_v41, %v1443_v9  ;;  %v5957_v54 = vpop.f32.mrb[67].mxu1  ;;  %v1705_v56 = vadd.f32 %v1684_v24, %v1573_v28  ;;  %v5969_v46 = vpop.f32.mrb[55].mxu0 }
 0x3a4   :  { %v1565_v34 = vpop.f32.mrb[68].mxu1  ;;  %v1689_v33 = vpop.f32.mrb[56].mxu0 }
 0x3a5   :  { %v1576_v21 = vadd.f32 %v1565_v34, %v1444_v22  ;;  %v5960_v43 = vpop.f32.mrb[69].mxu1  ;;  %v1706_v35 = vadd.f32 %v1689_v33, %v1574_v38  ;;  %v5972_v51 = vpop.f32.mrb[57].mxu0 }
 0x3a6   :  { %v1568_v52 = vpop.f32.mrb[70].mxu1  ;;  %v1692_v49 = vpop.f32.mrb[58].mxu0  ;;  %v6395_v51 = vld [vmem:[%s9027_s6 + $0xc8] sm:$0xff]  }
 0x3a7   :  { %v1577_v50 = vadd.f32 %v1568_v52, %v1445_v10  ;;  %v5961_v53 = vpop.f32.mrb[71].mxu1  ;;  %v1707_v55 = vadd.f32 %v1692_v49, %v1575_v45  ;;  %v5973_v58 = vpop.f32.mrb[59].mxu0 }
 0x3ac   :  { %v2895_v59 = vpop.permute.xlu1 %2894  ;;  %v2897_v60 = vpop.permute.xlu0 %2896 }
 0x3ad   :  { %v2902_v47 = vsel %vm1633_vm10, %v2895_v59, %v2897_v60  ;;  %v1697_v61 = vpop.f32.mrb[60].mxu0 }
 0x3ae   :  { %6107 = vmatpush3.bf16.msra.mxu1 %v2902_v47  ;;  %v1813_v57 = vpop.f32.mrb[72].mxu1  ;;  %v1708_v2 = vadd.f32 %v1697_v61, %v1576_v21  ;;  %v5976_v63 = vpop.f32.mrb[61].mxu0 }
 0x3af   :  { %6108 = vmatprep.subr.bf16.mxu1 %v9033_v25  ;;  %v7527_v0 = vadd.f32 %v1813_v57, %v1704_v17  ;;  %v5984_v1 = vpop.f32.mrb[73].mxu1  ;;  %v1700_v62 = vpop.f32.mrb[62].mxu0  ;;  %v6397_v57 = vld [vmem:[%s9027_s6 + $0xd0] sm:$0xff]  }
 0x3b0   :  { %v3026_v6 = vpop.permute.xlu1 %3025  ;;  %v3028_v7 = vpop.permute.xlu0 %3027  ;;  %v1709_v8 = vadd.f32 %v1700_v62, %v1577_v50 }
 0x3b1   :  { %9053 = vst [vmem:[#allocation13_spill] sm:$0xff] %v7527_v0  ;;  %v3033_v9 = vsel %vm1765_vm11, %v3026_v6, %v3028_v7  ;;  %v1816_v4 = vpop.f32.mrb[74].mxu1  ;;  %v5977_v11 = vpop.f32.mrb[63].mxu0 }
 0x3b2   :  { %6123 = vmatpush3.bf16.msra.mxu0 %v3033_v9  ;;  %v7530_v19 = vadd.f32 %v1816_v4, %v1705_v56  ;;  %v5985_v27 = vpop.f32.mrb[75].mxu1  ;;  %v6394_v56 = vld [vmem:[%s9027_s6 + $0xb0] sm:$0xff]  }
 0x3b3   :  { %6124 = vmatprep.subr.bf16.mxu0 %v9033_v25 }
 0x3b4   :  { %9054 = vst [vmem:[#allocation14_spill] sm:$0xff] %v7530_v19  ;;  %v2899_v13 = vpop.permute.xlu1 %2898  ;;  %v2901_v15 = vpop.permute.xlu0 %2900 }
 0x3b5   :  { %v2903_v22 = vsel %vm1633_vm10, %v2899_v13, %v2901_v15  ;;  %v7537_v28 = vpop.f32.mrb[64].mxu0 }
 0x3b6   :  { %6109 = vmatpush3.bf16.msra.mxu1 %v2903_v22  ;;  %v6000_v32 = vpop.f32.mrb[65].mxu0  ;;  %v5624_v22 = vld [vmem:[%s9025_s1 + $0x5] ss:$0 sm:$0xff] }
 0x3b7   :  { %v1821_v29 = vpop.f32.mrb[76].mxu1  ;;  %v7539_v10 = vpop.f32.mrb[66].mxu0  ;;  %6138 = vmatprep.subr.bf16.mxu1 %v9033_v25  ;;  %v5666_v32 = vld [vmem:[%s9025_s1 + $0x8] ss:$0 sm:$0xff] }
 0x3b8   :  { %v3030_v30 = vpop.permute.xlu1 %3029  ;;  %v3032_v36 = vpop.permute.xlu0 %3031  ;;  %v7542_v37 = vadd.f32 %v1821_v29, %v1706_v35 }
 0x3b9   :  { %v3034_v38 = vsel %vm1765_vm11, %v3030_v30, %v3032_v36  ;;  %6111 = vmatmul.mubr.msk.bf16.vlgmr.msra.gmra.mrb[120].mxu1 %vm781_vm5, %v6392_v26  ;;  %v5988_v17 = vpop.f32.mrb[77].mxu1  ;;  %v6001_v44 = vpop.f32.mrb[67].mxu0  ;;  %v565_v26 = vld [vmem:[%s9023_s3] sm:$0xff]  ;;  %v567_v36 = vld [vmem:[%s9023_s3 + $0x10] sm:$0xff] }
 0x3ba   :  { %9055 = vst [vmem:[#allocation15_spill] sm:$0xff] %v7542_v37  ;;  %6125 = vmatpush3.bf16.msra.mxu0 %v3034_v38  ;;  %6114 = vmatprep.mubr.msk.bf16.mxu1 %vm6435_vm2, %v9033_v25  ;;  %v1824_v41 = vpop.f32.mrb[78].mxu1  ;;  %v5652_v38 = vld [vmem:[%s9025_s1 + $0x7] ss:$0 sm:$0xff]  ;;  %v566_v17 = vld [vmem:[%s9023_s3 + $0x8] sm:$0xff] }
 0x3bb   :  { %v7551_v24 = vadd.f32 %v1824_v41, %v1707_v55  ;;  %v5989_v45 = vpop.f32.mrb[79].mxu1  ;;  %6156 = vmatprep.subr.bf16.mxu0 %v9033_v25  ;;  %v6396_v55 = vld [vmem:[%s9027_s6 + $0xb8] sm:$0xff]  }
 0x3bc   :  { %v7554_v54 = vpop.f32.mrb[68].mxu0 }
 0x3bd   :  { %9056 = vst [vmem:[#allocation16_spill] sm:$0xff] %v7551_v24  ;;  %6127 = vmatmul.mubr.msk.bf16.vlgmr.msra.gmra.mrb[112].mxu0 %vm781_vm5, %v6393_v40  ;;  %v6004_v46 = vpop.f32.mrb[69].mxu0 }
 0x3be   :  { %6130 = vmatprep.mubr.msk.bf16.mxu0 %vm6435_vm2, %v9033_v25  ;;  %v7562_v34 = vpop.f32.mrb[70].mxu0 }
 0x3bf   :  { %v1829_v33 = vpop.f32.mrb[80].mxu1  ;;  %v6005_v21 = vpop.f32.mrb[71].mxu0 }
 0x3c0   :  { %v7564_v43 = vadd.f32 %v1829_v33, %v1708_v2  ;;  %v5992_v35 = vpop.f32.mrb[81].mxu1 }
 0x3c1   :  { %6115 = vmatmul.mubr.msk.bf16.gmra.mrb[124].mxu1 %vm781_vm5, %v6394_v56  ;;  %v1832_v52 = vpop.f32.mrb[82].mxu1 }
 0x3c2   :  { %9057 = vst [vmem:[#allocation17_spill] sm:$0xff] %v7564_v43  ;;  %6118 = vmatprep.mubr.msk.bf16.mxu1 %vm6435_vm2, %v9033_v25  ;;  %v7572_v49 = vadd.f32 %v1832_v52, %v1709_v8  ;;  %v5993_v50 = vpop.f32.mrb[83].mxu1 }
 0x3c4   :  { %9058 = vst [vmem:[#allocation18_spill] sm:$0xff] %v7572_v49  ;;  %v7574_v53 = vpop.f32.mrb[72].mxu0 }
 0x3c5   :  { %6131 = vmatmul.mubr.msk.bf16.gmra.mrb[116].mxu0 %vm781_vm5, %v6395_v51  ;;  %v6008_v58 = vpop.f32.mrb[73].mxu0 }
 0x3c6   :  { %6134 = vmatprep.mubr.msk.bf16.mxu0 %vm6435_vm2, %v9033_v25  ;;  %v7582_v59 = vpop.f32.mrb[74].mxu0 }
 0x3c7   :  { %v6009_v60 = vpop.f32.mrb[75].mxu0 }
 0x3c9   :  { %v7584_v47 = vpop.permute.xlu1 %3117  ;;  %6119 = vmatmul.mubr.msk.bf16.gmra.mrb[128].mxu1 %vm781_vm5, %v6396_v55  ;;  %v7587_v61 = vpop.permute.xlu0 %3122 }
 0x3ca   :  { %6144 = vmatprep.mubr.msk.bf16.mxu1 %vm6435_vm2, %v9033_v25 }
 0x3cd   :  { %v7594_v2 = vpop.permute.xlu1 %3127  ;;  %6135 = vmatmul.mubr.msk.bf16.gmra.mrb[120].mxu0 %vm781_vm5, %v6397_v57  ;;  %v7597_v63 = vpop.permute.xlu0 %3132 }
 0x3ce   :  { %6162 = vmatprep.mubr.msk.bf16.mxu0 %vm6435_vm2, %v9033_v25 }
 0x3d1   :  { %v7601_v1 = vpop.permute.xlu1 %3137  ;;  %v7603_v62 = vpop.permute.xlu0 %3142 }
 0x3d5   :  { %v7605_v6 = vpop.permute.xlu1 %3214  ;;  %v7607_v7 = vpop.permute.xlu0 %3181 }
 0x3d6   :  { %v3217_v8 = vmul.f32 0.0, %v7605_v6  ;;  %v3184_v9 = vmul.f32 0.0, %v7607_v7 }
 0x3d8   :  { %v3236_v4 = vpack.c.bf16 %v3217_v8, %v3217_v8  ;;  %v3202_v11 = vpack.c.bf16 %v3184_v9, %v3184_v9 }
 0x3d9   :  { %v7611_v27 = vpop.permute.xlu1 %3459  ;;  %v7632_v29 = vpop.permute.xlu0 %3604 }
 0x3da   :  { %3263 = vrot.lane.b32.xlu1 %v3236_v4, %s6432_s24  ;;  %3369 = vrot.lane.b32.xlu0 %v3202_v11, %s6436_s28  ;;  %v3462_v13 = vmul.f32 0.0, %v7611_v27  ;;  %v3607_v30 = vmul.f32 0.0, %v7632_v29 }
 0x3dc   :  { %v3481_v15 = vpack.c.bf16 %v3462_v13, %v3462_v13  ;;  %v3626_v40 = vpack.c.bf16 %v3607_v30, %v3607_v30 }
 0x3de   :  { %3267 = vrot.lane.b32.xlu1 %v3236_v4, %s6432_s24  ;;  %3508 = vrot.lane.b32.xlu0 %v3481_v15, %s6437_s30 }
 0x3e2   :  { %3271 = vrot.lane.b32.xlu1 %v3236_v4, %s6432_s24  ;;  %3373 = vrot.lane.b32.xlu0 %v3202_v11, %s6436_s28 }
 0x3e6   :  { %3858 = vrot.lane.b32.xlu1 %v5624_v22, %s6438_s18  ;;  %3512 = vrot.lane.b32.xlu0 %v3481_v15, %s6437_s30 }
 0x3ea   :  { %573 = vperm.xlu1 %6313, %v565_v26   ;;  %3377 = vrot.lane.b32.xlu0 %v3202_v11, %s6436_s28 }
 0x3ee   :  { %4293 = vrot.lane.b32.xlu1 %v5666_v32, %s6436_s28  ;;  %3516 = vrot.lane.b32.xlu0 %v3481_v15, %s6437_s30 }
 0x3f2   :  { %583 = vperm.xlu1 %6313, %v567_v36   ;;  %4148 = vrot.lane.b32.xlu0 %v5652_v38, %s6432_s24 }
 0x3f6   :  { %3653 = vrot.lane.b32.xlu0 %v3626_v40, %s6438_s18 }
 0x3fa   :  { %3657 = vrot.lane.b32.xlu0 %v3626_v40, %s6438_s18 }
 0x3fe   :  { %3661 = vrot.lane.b32.xlu0 %v3626_v40, %s6438_s18 }
 0x402   :  { %578 = vperm.xlu0 %6312, %v566_v17  }
 0x405   :  { %v2196_v44 = vpop.f32.mrb[84].mxu1 }
 0x406   :  { %v2197_v41 = vadd.f32 %v2196_v44, %v7537_v28  ;;  %v6016_v45 = vpop.f32.mrb[85].mxu1 }
 0x407   :  { %v2199_v56 = vpop.f32.mrb[86].mxu1 }
 0x408   :  { %v2200_v46 = vadd.f32 %v2199_v56, %v7539_v10  ;;  %v6017_v33 = vpop.f32.mrb[87].mxu1 }
 0x409   :  { %v2321_v21 = vpop.f32.mrb[76].mxu0 }
 0x40a   :  { %v2344_v35 = vadd.f32 %v2321_v21, %v2197_v41  ;;  %v6032_v51 = vpop.f32.mrb[77].mxu0 }
 0x40b   :  { %v2324_v52 = vpop.f32.mrb[78].mxu0 }
 0x40c   :  { %v2345_v50 = vadd.f32 %v2324_v52, %v2200_v46  ;;  %v6033_v55 = vpop.f32.mrb[79].mxu0 }
 0x40f   :  { %v2204_v58 = vpop.f32.mrb[88].mxu1 }
 0x410   :  { %v2205_v60 = vadd.f32 %v2204_v58, %v7554_v54  ;;  %v6020_v57 = vpop.f32.mrb[89].mxu1 }
 0x411   :  { %v2207_v8 = vpop.f32.mrb[90].mxu1 }
 0x412   :  { %v2208_v9 = vadd.f32 %v2207_v8, %v7562_v34  ;;  %v2329_v4 = vpop.f32.mrb[80].mxu0  ;;  %v6021_v28 = vpop.f32.mrb[91].mxu1 }
 0x413   :  { %v2346_v11 = vadd.f32 %v2329_v4, %v2205_v60  ;;  %v6036_v13 = vpop.f32.mrb[81].mxu0 }
 0x414   :  { %v2332_v15 = vpop.f32.mrb[82].mxu0 }
 0x415   :  { %v2347_v10 = vadd.f32 %v2332_v15, %v2208_v9  ;;  %v6037_v22 = vpop.f32.mrb[83].mxu0 }
 0x417   :  { %v2212_v26 = vpop.f32.mrb[92].mxu1 }
 0x418   :  { %v2213_v32 = vadd.f32 %v2212_v26, %v7574_v53  ;;  %v6024_v30 = vpop.f32.mrb[93].mxu1 }
 0x419   :  { %v2215_v36 = vpop.f32.mrb[94].mxu1 }
 0x41a   :  { %v2216_v38 = vadd.f32 %v2215_v36, %v7582_v59  ;;  %v2337_v40 = vpop.f32.mrb[84].mxu0  ;;  %v6025_v54 = vpop.f32.mrb[95].mxu1 }
 0x41b   :  { %v2348_v17 = vadd.f32 %v2337_v40, %v2213_v32  ;;  %v6040_v44 = vpop.f32.mrb[85].mxu0 }
 0x41c   :  { %v2340_v41 = vpop.f32.mrb[86].mxu0 }
 0x41d   :  { %v2349_v34 = vadd.f32 %v2340_v41, %v2216_v38  ;;  %v6041_v45 = vpop.f32.mrb[87].mxu0 }
 0x41f   :  { %v2452_v56 = vpop.f32.mrb[96].mxu1 }
 0x420   :  { %v2475_v46 = vadd.f32 %v2452_v56, %v2344_v35  ;;  %v6048_v33 = vpop.f32.mrb[97].mxu1 }
 0x421   :  { %v2455_v21 = vpop.f32.mrb[98].mxu1 }
 0x422   :  { %v2476_v51 = vadd.f32 %v2455_v21, %v2345_v50  ;;  %v2548_v52 = vpop.f32.mrb[88].mxu0  ;;  %v6049_v55 = vpop.f32.mrb[99].mxu1 }
 0x423   :  { %v2571_v58 = vadd.f32 %v2548_v52, %v2475_v46  ;;  %v6064_v53 = vpop.f32.mrb[89].mxu0 }
 0x424   :  { %v2551_v60 = vpop.f32.mrb[90].mxu0 }
 0x425   :  { %v2572_v57 = vadd.f32 %v2551_v60, %v2476_v51  ;;  %v6065_v8 = vpop.f32.mrb[91].mxu0 }
 0x427   :  { %v2460_v59 = vpop.f32.mrb[100].mxu1 }
 0x428   :  { %v2477_v9 = vadd.f32 %v2460_v59, %v2346_v11  ;;  %v6052_v4 = vpop.f32.mrb[101].mxu1 }
 0x429   :  { %v2463_v28 = vpop.f32.mrb[102].mxu1 }
 0x42a   :  { %v2478_v13 = vadd.f32 %v2463_v28, %v2347_v10  ;;  %v2556_v15 = vpop.f32.mrb[92].mxu0  ;;  %v6053_v22 = vpop.f32.mrb[103].mxu1 }
 0x42b   :  { %v2573_v26 = vadd.f32 %v2556_v15, %v2477_v9  ;;  %v6068_v32 = vpop.f32.mrb[93].mxu0 }
 0x42c   :  { %v2559_v35 = vpop.f32.mrb[94].mxu0 }
 0x42d   :  { %v2574_v30 = vadd.f32 %v2559_v35, %v2478_v13  ;;  %v6069_v36 = vpop.f32.mrb[95].mxu0 }
 0x42f   :  { %v2468_v50 = vpop.f32.mrb[104].mxu1 }
 0x430   :  { %v2479_v38 = vadd.f32 %v2468_v50, %v2348_v17  ;;  %v6056_v40 = vpop.f32.mrb[105].mxu1 }
 0x431   :  { %v2471_v54 = vpop.f32.mrb[106].mxu1 }
 0x432   :  { %v2480_v44 = vadd.f32 %v2471_v54, %v2349_v34  ;;  %v2564_v41 = vpop.f32.mrb[96].mxu0  ;;  %v6057_v45 = vpop.f32.mrb[107].mxu1 }
 0x433   :  { %v2575_v56 = vadd.f32 %v2564_v41, %v2479_v38  ;;  %v6072_v46 = vpop.f32.mrb[97].mxu0 }
 0x434   :  { %v2567_v11 = vpop.f32.mrb[98].mxu0 }
 0x435   :  { %v2576_v33 = vadd.f32 %v2567_v11, %v2480_v44  ;;  %v6073_v21 = vpop.f32.mrb[99].mxu0  ;;  %v7658_v44 = vpop.permute.xlu0 %4003 }
 0x437   :  { %v2687_v10 = vpop.f32.mrb[108].mxu1 }
 0x438   :  { %v2710_v51 = vadd.f32 %v2687_v10, %v2571_v58  ;;  %v6080_v52 = vpop.f32.mrb[109].mxu1 }
 0x439   :  { %v2690_v55 = vpop.f32.mrb[110].mxu1 }
 0x43a   :  { %v2711_v53 = vadd.f32 %v2690_v55, %v2572_v57  ;;  %v2818_v60 = vpop.f32.mrb[100].mxu0  ;;  %v6081_v8 = vpop.f32.mrb[111].mxu1 }
 0x43b   :  { %v2841_v59 = vadd.f32 %v2818_v60, %v2710_v51  ;;  %v6096_v9 = vpop.f32.mrb[101].mxu0 }
 0x43c   :  { %v2821_v17 = vpop.f32.mrb[102].mxu0 }
 0x43d   :  { %v2842_v4 = vadd.f32 %v2821_v17, %v2711_v53  ;;  %v6097_v28 = vpop.f32.mrb[103].mxu0 }
 0x43f   :  { %v2695_v34 = vpop.f32.mrb[112].mxu1 }
 0x440   :  { %v2712_v13 = vadd.f32 %v2695_v34, %v2573_v26  ;;  %v6084_v15 = vpop.f32.mrb[113].mxu1 }
 0x441   :  { %v2698_v22 = vpop.f32.mrb[114].mxu1 }
 0x442   :  { %v2713_v32 = vadd.f32 %v2698_v22, %v2574_v30  ;;  %v2826_v35 = vpop.f32.mrb[104].mxu0  ;;  %v6085_v36 = vpop.f32.mrb[115].mxu1 }
 0x443   :  { %v2843_v50 = vadd.f32 %v2826_v35, %v2712_v13  ;;  %v6100_v38 = vpop.f32.mrb[105].mxu0 }
 0x444   :  { %v2829_v58 = vpop.f32.mrb[106].mxu0 }
 0x445   :  { %v7656_v40 = vadd.f32 %v2829_v58, %v2713_v32  ;;  %v6101_v57 = vpop.f32.mrb[107].mxu0 }
 0x447   :  { %v2703_v54 = vpop.f32.mrb[116].mxu1 }
 0x448   :  { %v2714_v41 = vadd.f32 %v2703_v54, %v2575_v56  ;;  %v6088_v45 = vpop.f32.mrb[117].mxu1 }
 0x449   :  { %v2706_v46 = vpop.f32.mrb[118].mxu1 }
 0x44a   :  { %v2715_v11 = vadd.f32 %v2706_v46, %v2576_v33  ;;  %v2834_v21 = vpop.f32.mrb[108].mxu0  ;;  %v6089_v26 = vpop.f32.mrb[119].mxu1 }
 0x44b   :  { %v7660_v10 = vadd.f32 %v2834_v21, %v2714_v41  ;;  %v6104_v30 = vpop.f32.mrb[109].mxu0 }
 0x44c   :  { %v2837_v51 = vpop.f32.mrb[110].mxu0  ;;  %v7664_v55 = vpop.permute.xlu0 %3369 }
 0x44d   :  { %v7662_v52 = vadd.f32 %v2837_v51, %v2715_v11  ;;  %v6105_v53 = vpop.f32.mrb[111].mxu0  ;;  %v7666_v60 = vpop.permute.xlu1 %3263 }
 0x450   :  { %v7668_v8 = vpop.permute.xlu0 %3508 }
 0x451   :  { %v7672_v56 = vpop.permute.xlu1 %3267 }
 0x454   :  { %v7670_v9 = vpop.permute.xlu0 %3373 }
 0x455   :  { %v7676_v17 = vpop.permute.xlu1 %3271 }
 0x458   :  { %v7674_v33 = vpop.permute.xlu0 %3512 }
 0x459   :  { %v7680_v34 = vpop.permute.xlu1 %3858 }
 0x45c   :  { %v7678_v28 = vpop.permute.xlu0 %3377 }
 0x460   :  { %v7682_v13 = vpop.permute.xlu0 %3516 }
 0x464   :  { %v7684_v22 = vpop.permute.xlu0 %4148 }
 0x468   :  { %v7698_v38 = vpop.permute.xlu0 %3653 }
 0x469   :  { %v574_v15 = vpop.permute.xlu1 %573 }
 0x46a   :  { %v7687_v32 = vadd.f32 %v574_v15, %v6820_v12 }
 0x46c   :  { %v9036_v35 = vmax.f32 %v7687_v32, 0.0  ;;  %v7704_v54 = vpop.permute.xlu0 %3657 }
 0x46d   :  { %v7690_v36 = vpop.permute.xlu1 %4293 }
 0x46e   :  { %613 = vst.msk [vmem:[%s9029_s10] sm:$0xff] %vm78_vm0, %v9036_v35 }
 0x470   :  { %v7712_v41 = vpop.permute.xlu0 %3661 }
 0x471   :  { %v584_v58 = vpop.permute.xlu1 %583  ;;  %9059 = vst [vmem:[#allocation19_spill] sm:$0xff] %v7712_v41 }
 0x472   :  { %v7701_v57 = vadd.f32 %v584_v58, %v6824_v16 }
 0x474   :  { %v9035_v12 = vmax.f32 %v7701_v57, 0.0 }
 0x476   :  { %615 = vst.msk [vmem:[%s9029_s10 + $0x10] sm:$0xff] %vm78_vm0, %v9035_v12 }
 0x481   :  { %v579_v45 = vpop.permute.xlu0 %578 }
 0x482   :  { %v7715_v46 = vadd.f32 %v579_v45, %v6822_v14 }
 0x484   :  { %v9040_v16 = vmax.f32 %v7715_v46, 0.0 }
 0x486   :  { %614 = vst.msk [vmem:[%s9029_s10 + $0x8] sm:$0xff] %vm78_vm0, %v9040_v16 }
 0x48c   :  { %v2949_v11 = vpop.f32.mrb[120].mxu1 }
 0x48d   :  { %v2972_v21 = vadd.f32 %v2949_v11, %v2841_v59  ;;  %v6112_v26 = vpop.f32.mrb[121].mxu1 }
 0x48e   :  { %v2952_v30 = vpop.f32.mrb[122].mxu1 }
 0x48f   :  { %v2973_v51 = vadd.f32 %v2952_v30, %v2842_v4  ;;  %v6113_v53 = vpop.f32.mrb[123].mxu1 }
 0x490   :  { %v3080_v15 = vpop.f32.mrb[112].mxu0 }
 0x491   :  { %v3103_v58 = vadd.f32 %v3080_v15, %v2972_v21  ;;  %v6128_v25 = vpop.f32.mrb[113].mxu0 }
 0x492   :  { %v3083_v14 = vpop.f32.mrb[114].mxu0 }
 0x493   :  { %v3145_v45 = vadd.f32 %v7584_v47, %v3103_v58  ;;  %v3104_v12 = vadd.f32 %v3083_v14, %v2973_v51  ;;  %v6129_v35 = vpop.f32.mrb[115].mxu0 }
 0x494   :  { %v2957_v48 = vpop.f32.mrb[124].mxu1 }
 0x495   :  { %v7725_v3 = vmax.f32 %v3145_v45, 0.0  ;;  %v3146_v31 = vadd.f32 %v7587_v61, %v3104_v12  ;;  %v2974_v16 = vadd.f32 %v2957_v48, %v2843_v50  ;;  %v6116_v5 = vpop.f32.mrb[125].mxu1 }
 0x496   :  { %v2960_v59 = vpop.f32.mrb[126].mxu1 }
 0x497   :  { %v7728_v11 = vmax.f32 %v3146_v31, 0.0  ;;  %v2975_v4 = vadd.f32 %v2960_v59, %v7656_v40  ;;  %v6117_v26 = vpop.f32.mrb[127].mxu1  ;;  %v3218_v25 = vmul.f32 %v7605_v6, %v7725_v3  ;;  %v3185_v47 = vmul.f32 %v7607_v7, %v7725_v3 }
 0x498   :  { %v3088_v21 = vpop.f32.mrb[116].mxu0  ;;  %v3463_v35 = vmul.f32 %v7611_v27, %v7725_v3  ;;  %v7739_v48 = vmul.f32 %v7632_v29, %v7725_v3  ;;  %v7743_v5 = vmul.f32 %v7680_v34, %v7725_v3 }
 0x499   :  { %v3105_v31 = vadd.f32 %v3088_v21, %v2974_v16  ;;  %v6132_v61 = vpop.f32.mrb[117].mxu0  ;;  %v3220_v50 = vmul.f32 %v7605_v6, %v7728_v11  ;;  %v3187_v40 = vmul.f32 %v7607_v7, %v7728_v11  ;;  %v3465_v12 = vmul.f32 %v7611_v27, %v7728_v11 }
 0x49a   :  { %v3091_v30 = vpop.f32.mrb[118].mxu0  ;;  %v3610_v51 = vmul.f32 %v7632_v29, %v7728_v11  ;;  %v7755_v53 = vmul.f32 %v7680_v34, %v7728_v11  ;;  %v7759_v16 = vmul.f32 %v7658_v44, %v7725_v3  ;;  %v7763_v15 = vmul.f32 %v7658_v44, %v7728_v11 }
 0x49b   :  { %v3147_v58 = vadd.f32 %v7594_v2, %v3105_v31  ;;  %v3106_v14 = vadd.f32 %v3091_v30, %v2975_v4  ;;  %v3237_v45 = vpack.c.bf16 %v3220_v50, %v3218_v25  ;;  %v3203_v59 = vpack.c.bf16 %v3187_v40, %v3185_v47  ;;  %v6133_v26 = vpop.f32.mrb[119].mxu0 }
 0x49c   :  { %v2965_v21 = vpop.f32.mrb[128].mxu1  ;;  %v3482_v61 = vpack.c.bf16 %v3465_v12, %v3463_v35  ;;  %v3627_v42 = vpack.c.bf16 %v3610_v51, %v7739_v48  ;;  %v7779_v25 = vmul.f32 %v7684_v22, %v7725_v3  ;;  %v7783_v35 = vmul.f32 %v7684_v22, %v7728_v11 }
 0x49d   :  { %v7771_v37 = vmax.f32 %v3147_v58, 0.0  ;;  %v3148_v0 = vadd.f32 %v7597_v63, %v3106_v14  ;;  %v2976_v2 = vadd.f32 %v2965_v21, %v7660_v10  ;;  %v6120_v4 = vpop.f32.mrb[129].mxu1  ;;  %3265 = vrot.lane.b32.xlu0 %v3237_v45, %s6432_s24  ;;  %3371 = vrot.lane.b32.xlu1 %v3203_v59, %s6436_s28  ;;  %v7787_v48 = vmul.f32 %v7690_v36, %v7725_v3 }
 0x49e   :  { %v2968_v47 = vpop.f32.mrb[130].mxu1  ;;  %v7791_v63 = vmul.f32 %v7690_v36, %v7728_v11 }
 0x49f   :  { %v7795_v31 = vmax.f32 %v3148_v0, 0.0  ;;  %v2977_v50 = vadd.f32 %v2968_v47, %v7662_v52  ;;  %v3222_v40 = vmul.f32 %v7605_v6, %v7771_v37  ;;  %v3189_v12 = vmul.f32 %v7607_v7, %v7771_v37  ;;  %v6121_v30 = vpop.f32.mrb[131].mxu1 }
 0x4a0   :  { %v3096_v51 = vpop.f32.mrb[120].mxu0  ;;  %v3467_v58 = vmul.f32 %v7611_v27, %v7771_v37  ;;  %v7806_v14 = vmul.f32 %v7632_v29, %v7771_v37  ;;  %v7810_v0 = vmul.f32 %v7680_v34, %v7771_v37  ;;  %v7814_v52 = vmul.f32 %v7658_v44, %v7771_v37 }
 0x4a1   :  { %v3107_v45 = vadd.f32 %v3096_v51, %v2976_v2  ;;  %3510 = vrot.lane.b32.xlu1 %v3482_v61, %s6437_s30  ;;  %v6136_v59 = vpop.f32.mrb[121].mxu0  ;;  %v3224_v26 = vmul.f32 %v7605_v6, %v7795_v31  ;;  %v3191_v21 = vmul.f32 %v7607_v7, %v7795_v31  ;;  %v3469_v4 = vmul.f32 %v7611_v27, %v7795_v31 }
 0x4a2   :  { %v3099_v47 = vpop.f32.mrb[122].mxu0  ;;  %v3614_v30 = vmul.f32 %v7632_v29, %v7795_v31  ;;  %v7827_v10 = vmul.f32 %v7680_v34, %v7795_v31  ;;  %v7831_v61 = vmul.f32 %v7658_v44, %v7795_v31  ;;  %v4170_v2 = vpack.c.bf16 %v7783_v35, %v7779_v25 }
 0x4a3   :  { %v3149_v51 = vadd.f32 %v7601_v1, %v3107_v45  ;;  %v3108_v59 = vadd.f32 %v3099_v47, %v2977_v50  ;;  %v3239_v43 = vpack.c.bf16 %v3224_v26, %v3222_v40  ;;  %v3205_v39 = vpack.c.bf16 %v3191_v21, %v3189_v12  ;;  %v6137_v49 = vpop.f32.mrb[123].mxu0 }
 0x4a4   :  { %v3484_v24 = vpack.c.bf16 %v3469_v4, %v3467_v58  ;;  %v3629_v19 = vpack.c.bf16 %v3614_v30, %v7806_v14  ;;  %v3882_v20 = vpack.c.bf16 %v7827_v10, %v7810_v0  ;;  %v4027_v23 = vpack.c.bf16 %v7831_v61, %v7814_v52 }
 0x4a5   :  { %v7841_v41 = vmax.f32 %v3149_v51, 0.0  ;;  %v3150_v18 = vadd.f32 %v7603_v62, %v3108_v59  ;;  %3655 = vrot.lane.b32.xlu1 %v3627_v42, %s6438_s18  ;;  %3269 = vrot.lane.b32.xlu0 %v3239_v43, %s6432_s24  ;;  %v4315_v49 = vpack.c.bf16 %v7791_v63, %v7787_v48  ;;  %v4155_v1 = vmul.f32 %v7684_v22, %v7771_v37 }
 0x4a6   :  { %v4157_v10 = vmul.f32 %v7684_v22, %v7795_v31  ;;  %v4300_v50 = vmul.f32 %v7690_v36, %v7771_v37  ;;  %v4302_v40 = vmul.f32 %v7690_v36, %v7795_v31  ;;  %v3751_v14 = vpack.c.bf16 %v7795_v31, %v7771_v37 }
 0x4a7   :  { %v7856_v62 = vmax.f32 %v3150_v18, 0.0  ;;  %v3226_v42 = vmul.f32 %v7605_v6, %v7841_v41  ;;  %v3193_v43 = vmul.f32 %v7607_v7, %v7841_v41  ;;  %v3471_v48 = vmul.f32 %v7611_v27, %v7841_v41 }
 0x4a8   :  { %v4172_v63 = vpack.c.bf16 %v4157_v10, %v4155_v1  ;;  %v4317_v12 = vpack.c.bf16 %v4302_v40, %v4300_v50  ;;  %v3616_v58 = vmul.f32 %v7632_v29, %v7841_v41  ;;  %v7881_v21 = vmul.f32 %v7680_v34, %v7841_v41 }
 0x4a9   :  { %3375 = vrot.lane.b32.xlu1 %v3205_v39, %s6436_s28  ;;  %v3228_v18 = vmul.f32 %v7605_v6, %v7856_v62  ;;  %v3195_v0 = vmul.f32 %v7607_v7, %v7856_v62  ;;  %v3473_v52 = vmul.f32 %v7611_v27, %v7856_v62  ;;  %v3618_v45 = vmul.f32 %v7632_v29, %v7856_v62 }
 0x4aa   :  { %v3752_v26 = vpack.c.bf16 %v7856_v62, %v7841_v41  ;;  %v7885_v39 = vmul.f32 %v7680_v34, %v7856_v62  ;;  %v7889_v6 = vmul.f32 %v7658_v44, %v7841_v41  ;;  %v7895_v30 = vmul.f32 %v7658_v44, %v7856_v62 }
 0x4ab   :  { %v3241_v7 = vpack.c.bf16 %v3228_v18, %v3226_v42  ;;  %v3207_v27 = vpack.c.bf16 %v3195_v0, %v3193_v43  ;;  %v3486_v4 = vpack.c.bf16 %v3473_v52, %v3471_v48  ;;  %v3631_v47 = vpack.c.bf16 %v3618_v45, %v3616_v58  ;;  %v6398_v45 = vld [vmem:[%s9030_s8 + $0x18] sm:$0xff]  }
 0x4ac   :  { %v3884_v29 = vpack.c.bf16 %v7885_v39, %v7881_v21  ;;  %v7899_v61 = vmul.f32 %v7684_v22, %v7841_v41  ;;  %v7903_v51 = vmul.f32 %v7684_v22, %v7856_v62  ;;  %v3862_v59 = vmul.f32 0.0, %v7680_v34  ;;  %v9070_v39 = vld [vmem:[#allocation5_spill] sm:$0xff] }
 0x4ad   :  { %3514 = vrot.lane.b32.xlu1 %v3484_v24, %s6437_s30  ;;  %3273 = vrot.lane.b32.xlu0 %v3241_v7, %s6432_s24  ;;  %v7910_v1 = vmul.f32 %v7690_v36, %v7841_v41  ;;  %v7914_v10 = vmul.f32 %v7690_v36, %v7856_v62  ;;  %v4029_v50 = vpack.c.bf16 %v7895_v30, %v7889_v6  ;;  %v4007_v43 = vmul.f32 0.0, %v7658_v44  ;;  %v1842_v6 = vld [vmem:[%s9031_s5] sm:$0xff] }
 0x4ae   :  { %v4174_v40 = vpack.c.bf16 %v7903_v51, %v7899_v61  ;;  %v9060_v34 = vpack.c.bf16 %v7755_v53, %v7743_v5  ;;  %v3881_v42 = vpack.c.bf16 %v3862_v59, %v3862_v59  ;;  %v9061_v48 = vpack.c.bf16 %v7763_v15, %v7759_v16  ;;  %v570_v5 = vld [vmem:[%s9023_s3 + $0x28] sm:$0xff]  ;;  %v6416_v51 = vld [vmem:[%s9030_s8 + $0x98] sm:$0xff]  }
 0x4af   :  { %v4319_v24 = vpack.c.bf16 %v7914_v10, %v7910_v1  ;;  %v4026_v58 = vpack.c.bf16 %v4007_v43, %v4007_v43  ;;  %v4297_v44 = vmul.f32 0.0, %v7690_v36  ;;  %v569_v36 = vld [vmem:[%s9023_s3 + $0x20] sm:$0xff]  ;;  %v9064_v16 = vmax.f32 %v7701_v57, 0.0  ;;  %v4437_v10 = vld [vmem:[%s9032_s9 + $0x28] sm:$0xff] }
 0x4b1   :  { %3659 = vrot.lane.b32.xlu1 %v3629_v19, %s6438_s18  ;;  %3907 = vrot.lane.b32.xlu0 %v9060_v34, %s6433_s13  ;;  %v4316_v53 = vpack.c.bf16 %v4297_v44, %v4297_v44 }
 0x4b5   :  { %3909 = vrot.lane.b32.xlu1 %v3881_v42, %s6433_s13  ;;  %4052 = vrot.lane.b32.xlu0 %v9061_v48, %s6430_s29 }
 0x4b9   :  { %4054 = vrot.lane.b32.xlu1 %v4026_v58, %s6430_s29  ;;  %3911 = vrot.lane.b32.xlu0 %v3882_v20, %s6433_s13  ;;  %v4152_v20 = vmul.f32 0.0, %v7684_v22  ;;  %v9062_v22 = vmax.f32 %v7715_v46, 0.0  ;;  %v9063_v46 = vmax.f32 %v7687_v32, 0.0 }
 0x4bb   :  { %v4171_v19 = vpack.c.bf16 %v4152_v20, %v4152_v20 }
 0x4bd   :  { %3913 = vrot.lane.b32.xlu1 %v3881_v42, %s6433_s13  ;;  %4056 = vrot.lane.b32.xlu0 %v4027_v23, %s6430_s29  ;;  %v568_v23 = vld [vmem:[%s9023_s3 + $0x18] sm:$0xff] }
 0x4c1   :  { %4058 = vrot.lane.b32.xlu1 %v4026_v58, %s6430_s29  ;;  %4197 = vrot.lane.b32.xlu0 %v4170_v2, %s6429_s22 }
 0x4c5   :  { %3917 = vrot.lane.b32.xlu1 %v3881_v42, %s6433_s13  ;;  %4342 = vrot.lane.b32.xlu0 %v4315_v49, %s6431_s12  ;;  %v9065_v49 = vmov 0.0  }
 0x4c9   :  { %4201 = vrot.lane.b32.xlu0 %v4172_v63, %s6429_s22  ;;  %3379 = vrot.lane.b32.xlu1 %v3207_v27, %s6436_s28 }
 0x4cd   :  { %4346 = vrot.lane.b32.xlu0 %v4317_v12, %s6431_s12  ;;  %3518 = vrot.lane.b32.xlu1 %v3486_v4, %s6437_s30 }
 0x4d1   :  { %588 = vperm.xlu0 %6312, %v568_v23   ;;  %4062 = vrot.lane.b32.xlu1 %v4026_v58, %s6430_s29 }
 0x4d5   :  { %598 = vperm.xlu0 %6312, %v570_v5   ;;  %4199 = vrot.lane.b32.xlu1 %v4171_v19, %s6429_s22 }
 0x4d9   :  { %627 = vrot.lane.b32.xlu0 %v9062_v22, %s6428_s17  ;;  %4344 = vrot.lane.b32.xlu1 %v4316_v53, %s6431_s12 }
 0x4dd   :  { %4203 = vrot.lane.b32.xlu1 %v4171_v19, %s6429_s22 }
 0x4e1   :  { %3663 = vrot.lane.b32.xlu1 %v3631_v47, %s6438_s18  ;;  %v6399_v47 = vld [vmem:[%s9030_s8 + $0x20] sm:$0xff]  }
 0x4e5   :  { %4348 = vrot.lane.b32.xlu1 %v4316_v53, %s6431_s12 }
 0x4e9   :  { %4207 = vrot.lane.b32.xlu1 %v4171_v19, %s6429_s22  ;;  %v6401_v19 = vld [vmem:[%s9030_s8] sm:$0xff]  }
 0x4ed   :  { %4352 = vrot.lane.b32.xlu1 %v4316_v53, %s6431_s12 }
 0x4f1   :  { %593 = vperm.xlu1 %6313, %v569_v36  }
 0x4f5   :  { %625 = vrot.lane.b32.xlu1 %v9063_v46, %s6428_s17  ;;  %v9066_v46 = vpack.c.bf16 %v7728_v11, %v7725_v3 }
 0x4f9   :  { %629 = vrot.lane.b32.xlu1 %v9064_v16, %s6428_s17 }
 0x50f   :  { %v3266_v15 = vpop.permute.xlu0 %3265  ;;  %v3372_v25 = vpop.permute.xlu1 %3371 }
 0x510   :  { %v3275_v35 = vsel %vm776_vm3, %v7666_v60, %v3266_v15  ;;  %v3381_v2 = vsel %vm875_vm4, %v7664_v55, %v3372_v25  ;;  %v6405_v25 = vld [vmem:[%s9030_s8 + $0x10] sm:$0xff]  }
 0x511   :  { %6139 = vmatpush3.bf16.msra.mxu1 %v3275_v35  ;;  %6157 = vmatpush3.bf16.msra.mxu0 %v3381_v2  ;;  %v9067_v35 = vld [vmem:[#allocation4_spill] sm:$0xff] }
 0x512   :  { %6140 = vmatprep.subr.bf16.mxu1 %v9065_v49  ;;  %6158 = vmatprep.subr.bf16.mxu0 %v9065_v49 }
 0x513   :  { %v3511_v32 = vpop.permute.xlu1 %3510 }
 0x517   :  { %v3656_v63 = vpop.permute.xlu1 %3655  ;;  %v3270_v12 = vpop.permute.xlu0 %3269 }
 0x518   :  { %v3276_v57 = vsel %vm776_vm3, %v7672_v56, %v3270_v12  ;;  %v3665_v5 = vsel %vm1133_vm7, %v7698_v38, %v3656_v63  ;;  %v6403_v38 = vld [vmem:[%s9030_s8 + $0x8] sm:$0xff]  }
 0x519   :  { %6141 = vmatpush3.bf16.msra.mxu1 %v3276_v57  ;;  %v6407_v12 = vld [vmem:[%s9030_s8 + $0x48] sm:$0xff]   ;;  %v9069_v57 = vld [vmem:[#allocation6_spill] sm:$0xff] }
 0x51a   :  { %6142 = vmatprep.subr.bf16.mxu1 %v9065_v49 }
 0x51b   :  { %v3376_v18 = vpop.permute.xlu1 %3375 }
 0x51c   :  { %v3382_v60 = vsel %vm875_vm4, %v7670_v9, %v3376_v18  ;;  %v3520_v9 = vsel %vm1001_vm6, %v7668_v8, %v3511_v32 }
 0x51d   :  { %6159 = vmatpush3.bf16.msra.mxu0 %v3382_v60 }
 0x51e   :  { %6160 = vmatprep.subr.bf16.mxu0 %v9065_v49 }
 0x51f   :  { %v3515_v55 = vpop.permute.xlu1 %3514  ;;  %v3274_v0 = vpop.permute.xlu0 %3273 }
 0x520   :  { %v3277_v52 = vsel %vm776_vm3, %v7676_v17, %v3274_v0  ;;  %v3521_v27 = vsel %vm1001_vm6, %v7674_v33, %v3515_v55  ;;  %v6400_v33 = vld [vmem:[%s9030_s8 + $0x28] sm:$0xff]  }
 0x521   :  { %6143 = vmatpush3.bf16.msra.mxu1 %v3277_v52  ;;  %v6408_v52 = vld [vmem:[%s9030_s8 + $0x60] sm:$0xff]  }
 0x522   :  { %6174 = vmatprep.subr.bf16.mxu1 %v9065_v49 }
 0x523   :  { %v3660_v56 = vpop.permute.xlu1 %3659  ;;  %v7994_v7 = vpop.permute.xlu0 %3907 }
 0x524   :  { %6145 = vmatmul.mubr.msk.bf16.vlgmr.msra.gmra.mrb[132].mxu1 %vm3281_vm12, %v6398_v45  ;;  %v1843_v45 = vld [vmem:[%s9031_s5 + $0x8] sm:$0xff] }
 0x525   :  { %6175 = vmatpush3.bf16.msra.mxu1 %v3520_v9  ;;  %6148 = vmatprep.mubr.msk.bf16.mxu1 %vm6435_vm2, %v9065_v49  ;;  %v1845_v9 = vld [vmem:[%s9031_s5 + $0x18] sm:$0xff] }
 0x526   :  { %6176 = vmatprep.subr.bf16.mxu1 %v9065_v49 }
 0x527   :  { %v8002_v17 = vpop.permute.xlu1 %3909  ;;  %v8006_v4 = vpop.permute.xlu0 %4052 }
 0x528   :  { %v3919_v55 = vsel %vm1369_vm8, %v7994_v7, %v8002_v17 }
 0x529   :  { %6177 = vmatpush3.bf16.msra.mxu1 %v3521_v27 }
 0x52a   :  { %6178 = vmatprep.subr.bf16.mxu1 %v9065_v49 }
 0x52b   :  { %v8012_v8 = vpop.permute.xlu1 %4054  ;;  %v8017_v59 = vpop.permute.xlu0 %3911 }
 0x52c   :  { %6149 = vmatmul.mubr.msk.bf16.gmra.mrb[136].mxu1 %vm3281_vm12, %v6399_v47  ;;  %v1847_v47 = vld [vmem:[%s9031_s5 + $0x28] sm:$0xff] }
 0x52d   :  { %6152 = vmatprep.mubr.msk.bf16.mxu1 %vm6435_vm2, %v9065_v49 }
 0x52f   :  { %v8019_v34 = vpop.permute.xlu1 %3913  ;;  %v8026_v43 = vpop.permute.xlu0 %4056 }
 0x530   :  { %v3920_v7 = vsel %vm1369_vm8, %v8017_v59, %v8019_v34  ;;  %v6411_v34 = vld [vmem:[%s9030_s8 + $0x58] sm:$0xff]  }
 0x533   :  { %v8024_v42 = vpop.permute.xlu1 %4058  ;;  %v8033_v58 = vpop.permute.xlu0 %4197 }
 0x534   :  { %6153 = vmatmul.mubr.msk.bf16.gmra.mrb[140].mxu1 %vm3281_vm12, %v6400_v33  ;;  %v4065_v17 = vsel %vm1501_vm9, %v8026_v43, %v8024_v42  ;;  %v6412_v33 = vld [vmem:[%s9030_s8 + $0x70] sm:$0xff]  }
 0x535   :  { %6180 = vmatprep.mubr.msk.bf16.mxu1 %vm6435_vm2, %v9065_v49 }
 0x537   :  { %v8031_v48 = vpop.permute.xlu1 %3917  ;;  %v8043_v53 = vpop.permute.xlu0 %4342 }
 0x53b   :  { %v3380_v20 = vpop.permute.xlu1 %3379  ;;  %v8066_v16 = vpop.permute.xlu0 %4201 }
 0x53c   :  { %v3383_v23 = vsel %vm875_vm4, %v7678_v28, %v3380_v20  ;;  %v6402_v28 = vld [vmem:[%s9030_s8 + $0x30] sm:$0xff]  }
 0x53d   :  { %6161 = vmatpush3.bf16.msra.mxu0 %v3383_v23  ;;  %v1846_v23 = vld [vmem:[%s9031_s5 + $0x20] sm:$0xff] }
 0x53e   :  { %6192 = vmatprep.subr.bf16.mxu0 %v9065_v49 }
 0x53f   :  { %v3519_v44 = vpop.permute.xlu1 %3518  ;;  %v8086_v11 = vpop.permute.xlu0 %4346 }
 0x540   :  { %v3522_v22 = vsel %vm1001_vm6, %v7682_v13, %v3519_v44  ;;  %6163 = vmatmul.mubr.msk.bf16.vlgmr.msra.gmra.mrb[124].mxu0 %vm3281_vm12, %v6401_v19  ;;  %v3666_v13 = vsel %vm1133_vm7, %v7704_v54, %v3660_v56  ;;  %v6404_v54 = vld [vmem:[%s9030_s8 + $0x38] sm:$0xff]   ;;  %v4064_v56 = vsel %vm1501_vm9, %v8006_v4, %v8012_v8  ;;  %v6409_v4 = vld [vmem:[%s9030_s8 + $0x50] sm:$0xff]   ;;  %v6410_v8 = vld [vmem:[%s9030_s8 + $0x68] sm:$0xff]  }
 0x541   :  { %6179 = vmatpush3.bf16.msra.mxu1 %v3522_v22  ;;  %6193 = vmatpush3.bf16.msra.mxu0 %v3665_v5  ;;  %v9071_v22 = vld [vmem:[#allocation14_spill] sm:$0xff] }
 0x542   :  { %6194 = vmatprep.subr.bf16.mxu0 %v9065_v49  ;;  %6210 = vmatprep.subr.bf16.mxu1 %v9065_v49 }
 0x543   :  { %v8053_v36 = vpop.permute.xlu1 %4062  ;;  %6166 = vmatprep.mubr.msk.bf16.mxu0 %vm6435_vm2, %v9065_v49 }
 0x544   :  { %6181 = vmatmul.mubr.msk.bf16.vlgmr.msra.gmra.mrb[144].mxu1 %vm3281_vm12, %v6402_v28 }
 0x545   :  { %6195 = vmatpush3.bf16.msra.mxu0 %v3666_v13  ;;  %6211 = vmatpush3.bf16.msra.mxu1 %v9066_v46  ;;  %v9072_v46 = vld [vmem:[#allocation16_spill] sm:$0xff] }
 0x546   :  { %6212 = vmatprep.subr.bf16.mxu1 %v9065_v49  ;;  %6184 = vmatprep.mubr.msk.bf16.mxu1 %vm6435_vm2, %v9065_v49 }
 0x547   :  { %v8071_v15 = vpop.permute.xlu1 %4199  ;;  %6196 = vmatprep.subr.bf16.mxu0 %v9065_v49 }
 0x548   :  { %6167 = vmatmul.mubr.msk.bf16.gmra.mrb[128].mxu0 %vm3281_vm12, %v6403_v38 }
 0x549   :  { %6213 = vmatpush3.bf16.msra.mxu1 %v3751_v14  ;;  %6170 = vmatprep.mubr.msk.bf16.mxu0 %vm6435_vm2, %v9065_v49  ;;  %v6406_v14 = vld [vmem:[%s9030_s8 + $0x40] sm:$0xff]  }
 0x54a   :  { %6214 = vmatprep.subr.bf16.mxu1 %v9065_v49 }
 0x54b   :  { %v8084_v3 = vpop.permute.xlu1 %4344 }
 0x54c   :  { %6185 = vmatmul.mubr.msk.bf16.gmra.mrb[148].mxu1 %vm3281_vm12, %v6404_v54 }
 0x54d   :  { %6215 = vmatpush3.bf16.msra.mxu1 %v3752_v26  ;;  %6188 = vmatprep.mubr.msk.bf16.mxu1 %vm6435_vm2, %v9065_v49  ;;  %v9068_v26 = vld [vmem:[#allocation19_spill] sm:$0xff] }
 0x54e   :  { %6246 = vmatprep.subr.bf16.mxu1 %v9065_v49 }
 0x54f   :  { %v8098_v37 = vpop.permute.xlu1 %4203 }
 0x550   :  { %v589_v31 = vpop.permute.xlu0 %588  ;;  %6171 = vmatmul.mubr.msk.bf16.gmra.mrb[132].mxu0 %vm3281_vm12, %v6405_v25 }
 0x551   :  { %v604_v2 = vadd.f32 %v589_v31, %v9067_v35  ;;  %6198 = vmatprep.mubr.msk.bf16.mxu0 %vm6435_vm2, %v9065_v49 }
 0x553   :  { %v610_v41 = vmax.f32 %v604_v2, 0.0  ;;  %v3664_v62 = vpop.permute.xlu1 %3663 }
 0x554   :  { %v3667_v32 = vsel %vm1133_vm7, %v9068_v26, %v3664_v62  ;;  %v599_v63 = vpop.permute.xlu0 %598  ;;  %6189 = vmatmul.mubr.msk.bf16.gmra.mrb[152].mxu1 %vm3281_vm12, %v6406_v14  ;;  %v9073_v14 = vld [vmem:[#allocation18_spill] sm:$0xff] }
 0x555   :  { %616 = vst.msk [vmem:[%s9029_s10 + $0x18] sm:$0xff] %vm78_vm0, %v610_v41  ;;  %v606_v18 = vadd.f32 %v599_v63, %v9069_v57  ;;  %631 = vrot.lane.b32.xlu0 %v610_v41, %s6428_s17  ;;  %6197 = vmatpush3.bf16.msra.mxu0 %v3667_v32  ;;  %v6413_v32 = vld [vmem:[%s9030_s8 + $0x78] sm:$0xff]   ;;  %v4433_v63 = vld [vmem:[%s9032_s9 + $0x8] sm:$0xff]  ;;  %v4209_v57 = vsel %vm1633_vm10, %v8033_v58, %v8071_v15 }
 0x556   :  { %6228 = vmatprep.subr.bf16.mxu0 %v9065_v49  ;;  %6216 = vmatprep.mubr.msk.bf16.mxu1 %vm6435_vm2, %v9065_v49  ;;  %v4354_v58 = vsel %vm1765_vm11, %v8043_v53, %v8084_v3  ;;  %v6415_v15 = vld [vmem:[%s9030_s8 + $0x80] sm:$0xff]  }
 0x557   :  { %v612_v60 = vmax.f32 %v606_v18, 0.0  ;;  %v8161_v27 = vpop.permute.xlu1 %4348  ;;  %v6414_v18 = vld [vmem:[%s9030_s8 + $0x90] sm:$0xff]  }
 0x558   :  { %v628_v0 = vpop.permute.xlu0 %627  ;;  %6199 = vmatmul.mubr.msk.bf16.vlgmr.msra.gmra.mrb[136].mxu0 %vm3281_vm12, %v6407_v12  ;;  %v4355_v61 = vsel %vm1765_vm11, %v8086_v11, %v8161_v27  ;;  %v4436_v27 = vld [vmem:[%s9032_s9 + $0x20] sm:$0xff] }
 0x559   :  { %618 = vst.msk [vmem:[%s9029_s10 + $0x28] sm:$0xff] %vm78_vm0, %v612_v60  ;;  %5317 = vst.msk [vmem:[%s9029_s10 + $0xc8] sm:$0xff] %vm78_vm0, %v628_v0  ;;  %635 = vrot.lane.b32.xlu0 %v612_v60, %s6428_s17  ;;  %6229 = vmatpush3.bf16.msra.mxu0 %v3919_v55  ;;  %v6418_v55 = vld [vmem:[%s9030_s8 + $0xa0] sm:$0xff]  }
 0x55a   :  { %6230 = vmatprep.subr.bf16.mxu0 %v9065_v49  ;;  %6202 = vmatprep.mubr.msk.bf16.mxu0 %vm6435_vm2, %v9065_v49 }
 0x55b   :  { %v8176_v59 = vpop.permute.xlu1 %4207 }
 0x55c   :  { %6217 = vmatmul.mubr.msk.bf16.vlgmr.msra.gmra.mrb[156].mxu1 %vm3281_vm12, %v6408_v52 }
 0x55d   :  { %6247 = vmatpush3.bf16.msra.mxu1 %v4064_v56  ;;  %1855 = vperm.xlu0 %6312, %v1843_v45   ;;  %v9076_v45 = vld [vmem:[#allocation17_spill] sm:$0xff] }
 0x55e   :  { %6231 = vmatpush3.bf16.msra.mxu0 %v3920_v7  ;;  %6248 = vmatprep.subr.bf16.mxu1 %v9065_v49 }
 0x55f   :  { %6220 = vmatprep.mubr.msk.bf16.mxu1 %vm6435_vm2, %v9065_v49  ;;  %6232 = vmatprep.subr.bf16.mxu0 %v9065_v49  ;;  %v8192_v42 = vpop.permute.xlu1 %4352 }
 0x560   :  { %6203 = vmatmul.mubr.msk.bf16.gmra.mrb[140].mxu0 %vm3281_vm12, %v6409_v4  ;;  %v5685_v4 = vld [vmem:[%s9025_s1] ss:$0 sm:$0xff] }
 0x561   :  { %6249 = vmatpush3.bf16.msra.mxu1 %v4065_v17  ;;  %1865 = vperm.xlu0 %6312, %v1845_v9   ;;  %v4432_v9 = vld [vmem:[%s9032_s9] sm:$0xff]  ;;  %v4434_v17 = vld [vmem:[%s9032_s9 + $0x10] sm:$0xff] }
 0x562   :  { %6250 = vmatprep.subr.bf16.mxu1 %v9065_v49  ;;  %6206 = vmatprep.mubr.msk.bf16.mxu0 %vm6435_vm2, %v9065_v49 }
 0x564   :  { %6221 = vmatmul.mubr.msk.bf16.gmra.mrb[160].mxu1 %vm3281_vm12, %v6410_v8 }
 0x565   :  { %1875 = vperm.xlu0 %6312, %v1847_v47   ;;  %6224 = vmatprep.mubr.msk.bf16.mxu1 %vm6435_vm2, %v9065_v49 }
 0x568   :  { %6207 = vmatmul.mubr.msk.bf16.gmra.mrb[144].mxu0 %vm3281_vm12, %v6411_v34 }
 0x569   :  { %3915 = vrot.lane.b32.xlu0 %v3884_v29, %s6433_s13  ;;  %6234 = vmatprep.mubr.msk.bf16.mxu0 %vm6435_vm2, %v9065_v49 }
 0x56c   :  { %6225 = vmatmul.mubr.msk.bf16.gmra.mrb[164].mxu1 %vm3281_vm12, %v6412_v33 }
 0x56d   :  { %4060 = vrot.lane.b32.xlu0 %v4029_v50, %s6430_s29  ;;  %6252 = vmatprep.mubr.msk.bf16.mxu1 %vm6435_vm2, %v9065_v49  ;;  %v1844_v50 = vld [vmem:[%s9031_s5 + $0x10] sm:$0xff] }
 0x570   :  { %v594_v21 = vpop.permute.xlu1 %593 }
 0x571   :  { %v605_v29 = vadd.f32 %v594_v21, %v9070_v39 }
 0x573   :  { %v611_v43 = vmax.f32 %v605_v29, 0.0 }
 0x574   :  { %v626_v20 = vpop.permute.xlu1 %625 }
 0x575   :  { %617 = vst.msk [vmem:[%s9029_s10 + $0x20] sm:$0xff] %vm78_vm0, %v611_v43  ;;  %5316 = vst.msk [vmem:[%s9029_s10 + $0xc0] sm:$0xff] %vm78_vm0, %v626_v20  ;;  %633 = vrot.lane.b32.xlu1 %v611_v43, %s6428_s17  ;;  %v6419_v43 = vld [vmem:[%s9030_s8 + $0xa8] sm:$0xff]  }
 0x578   :  { %v630_v30 = vpop.permute.xlu1 %629 }
 0x579   :  { %5318 = vst.msk [vmem:[%s9029_s10 + $0xd0] sm:$0xff] %vm78_vm0, %v630_v30  ;;  %1850 = vperm.xlu1 %6313, %v1842_v6  }
 0x57d   :  { %1860 = vperm.xlu1 %6313, %v1844_v50  }
 0x581   :  { %1870 = vperm.xlu1 %6313, %v1846_v23   ;;  %v6422_v23 = vld [vmem:[%s9030_s8 + $0xc8] sm:$0xff]  }
 0x5c7   :  { %v632_v19 = vpop.permute.xlu0 %631 }
 0x5c8   :  { %5319 = vst.msk [vmem:[%s9029_s10 + $0xd8] sm:$0xff] %vm78_vm0, %v632_v19  ;;  %v6423_v19 = vld [vmem:[%s9030_s8 + $0xb8] sm:$0xff]  }
 0x5cb   :  { %v636_v44 = vpop.permute.xlu0 %635 }
 0x5cc   :  { %5321 = vst.msk [vmem:[%s9029_s10 + $0xe8] sm:$0xff] %vm78_vm0, %v636_v44  ;;  %v6424_v44 = vld [vmem:[%s9030_s8 + $0xd0] sm:$0xff]  }
 0x5dc   :  { %v1856_v5 = vpop.permute.xlu0 %1855 }
 0x5dd   :  { %v1879_v28 = vadd.f32 %v1856_v5, %v9071_v22 }
 0x5df   :  { %v1885_v13 = vmax.f32 %v1879_v28, 0.0 }
 0x5e0   :  { %v1866_v38 = vpop.permute.xlu0 %1865 }
 0x5e1   :  { %1891 = vst.msk [vmem:[%s9029_s10 + $0x38] sm:$0xff] %vm78_vm0, %v1885_v13  ;;  %v1881_v54 = vadd.f32 %v1866_v38, %v9072_v46  ;;  %1904 = vrot.lane.b32.xlu0 %v1885_v13, %s6428_s17  ;;  %v9077_v38 = vld [vmem:[#allocation7_spill] sm:$0xff] }
 0x5e3   :  { %v1887_v25 = vmax.f32 %v1881_v54, 0.0 }
 0x5e4   :  { %v1876_v31 = vpop.permute.xlu0 %1875 }
 0x5e5   :  { %1893 = vst.msk [vmem:[%s9029_s10 + $0x48] sm:$0xff] %vm78_vm0, %v1887_v25  ;;  %v1883_v35 = vadd.f32 %v1876_v31, %v9073_v14  ;;  %1908 = vrot.lane.b32.xlu0 %v1887_v25, %s6428_s17 }
 0x5e7   :  { %v1889_v2 = vmax.f32 %v1883_v35, 0.0  ;;  %v634_v41 = vpop.permute.xlu1 %633  ;;  %v9079_v35 = vld [vmem:[#allocation9_spill] sm:$0xff] }
 0x5e8   :  { %5320 = vst.msk [vmem:[%s9029_s10 + $0xe0] sm:$0xff] %vm78_vm0, %v634_v41  ;;  %v3916_v62 = vpop.permute.xlu0 %3915 }
 0x5e9   :  { %1895 = vst.msk [vmem:[%s9029_s10 + $0x58] sm:$0xff] %vm78_vm0, %v1889_v2  ;;  %v3921_v26 = vsel %vm1369_vm8, %v3916_v62, %v8031_v48  ;;  %1912 = vrot.lane.b32.xlu0 %v1889_v2, %s6428_s17 }
 0x5ea   :  { %6233 = vmatpush3.bf16.msra.mxu0 %v3921_v26  ;;  %v9080_v26 = vld [vmem:[#allocation10_spill] sm:$0xff] }
 0x5eb   :  { %6264 = vmatprep.subr.bf16.mxu0 %v9065_v49 }
 0x5ec   :  { %v4061_v12 = vpop.permute.xlu0 %4060 }
 0x5ed   :  { %v4066_v48 = vsel %vm1501_vm9, %v4061_v12, %v8053_v36  ;;  %4445 = vperm.xlu0 %6312, %v4433_v63   ;;  %6235 = vmatmul.mubr.msk.bf16.vlgmr.msra.gmra.mrb[148].mxu0 %vm3281_vm12, %v6413_v32  ;;  %v4210_v36 = vsel %vm1633_vm10, %v8066_v16, %v8098_v37  ;;  %v9074_v16 = vld [vmem:[#allocation13_spill] sm:$0xff]  ;;  %v9075_v37 = vld [vmem:[#allocation15_spill] sm:$0xff] }
 0x5ee   :  { %6251 = vmatpush3.bf16.msra.mxu1 %v4066_v48  ;;  %6265 = vmatpush3.bf16.msra.mxu0 %v4209_v57 }
 0x5ef   :  { %6266 = vmatprep.subr.bf16.mxu0 %v9065_v49  ;;  %6282 = vmatprep.subr.bf16.mxu1 %v9065_v49 }
 0x5f0   :  { %6238 = vmatprep.mubr.msk.bf16.mxu0 %vm6435_vm2, %v9065_v49 }
 0x5f1   :  { %4205 = vrot.lane.b32.xlu0 %v4174_v40, %s6429_s22  ;;  %6253 = vmatmul.mubr.msk.bf16.vlgmr.msra.gmra.mrb[168].mxu1 %vm3281_vm12, %v6414_v18  ;;  %v4435_v40 = vld [vmem:[%s9032_s9 + $0x18] sm:$0xff] }
 0x5f2   :  { %6267 = vmatpush3.bf16.msra.mxu0 %v4210_v36  ;;  %6283 = vmatpush3.bf16.msra.mxu1 %v4354_v58  ;;  %v9081_v58 = vld [vmem:[#allocation11_spill] sm:$0xff] }
 0x5f3   :  { %6284 = vmatprep.subr.bf16.mxu1 %v9065_v49  ;;  %6256 = vmatprep.mubr.msk.bf16.mxu1 %vm6435_vm2, %v9065_v49 }
 0x5f4   :  { %6268 = vmatprep.subr.bf16.mxu0 %v9065_v49 }
 0x5f5   :  { %4350 = vrot.lane.b32.xlu0 %v4319_v24, %s6431_s12  ;;  %6239 = vmatmul.mubr.msk.bf16.gmra.mrb[152].mxu0 %vm3281_vm12, %v6415_v15  ;;  %v6417_v24 = vld [vmem:[%s9030_s8 + $0x88] sm:$0xff]  }
 0x5f6   :  { %6285 = vmatpush3.bf16.msra.mxu1 %v4355_v61  ;;  %6242 = vmatprep.mubr.msk.bf16.mxu0 %vm6435_vm2, %v9065_v49 }
 0x5f7   :  { %6286 = vmatprep.subr.bf16.mxu1 %v9065_v49  ;;  %v3325_v31 = vpop.f32.mrb[132].mxu1 }
 0x5f8   :  { %v1851_v53 = vpop.permute.xlu1 %1850  ;;  %v6146_v14 = vpop.f32.mrb[133].mxu1 }
 0x5f9   :  { %v1878_v1 = vadd.f32 %v1851_v53, %v9074_v16  ;;  %4455 = vperm.xlu0 %6312, %v4435_v40   ;;  %6257 = vmatmul.mubr.msk.bf16.gmra.mrb[172].mxu1 %vm3281_vm12, %v6416_v51  ;;  %v3328_v41 = vpop.f32.mrb[134].mxu1 }
 0x5fa   :  { %6260 = vmatprep.mubr.msk.bf16.mxu1 %vm6435_vm2, %v9065_v49  ;;  %v6147_v62 = vpop.f32.mrb[135].mxu1 }
 0x5fb   :  { %v1884_v3 = vmax.f32 %v1878_v1, 0.0 }
 0x5fc   :  { %v1861_v11 = vpop.permute.xlu1 %1860 }
 0x5fd   :  { %1890 = vst.msk [vmem:[%s9029_s10 + $0x30] sm:$0xff] %vm78_vm0, %v1884_v3  ;;  %v1880_v60 = vadd.f32 %v1861_v11, %v9075_v37  ;;  %4465 = vperm.xlu0 %6312, %v4437_v10   ;;  %1902 = vrot.lane.b32.xlu1 %v1884_v3, %s6428_s17  ;;  %v9082_v10 = vld [vmem:[#allocation12_spill] sm:$0xff] }
 0x5fe   :  { %6243 = vmatmul.mubr.msk.bf16.gmra.mrb[156].mxu0 %vm3281_vm12, %v6417_v24 }
 0x5ff   :  { %v1886_v0 = vmax.f32 %v1880_v60, 0.0  ;;  %6270 = vmatprep.mubr.msk.bf16.mxu0 %vm6435_vm2, %v9065_v49  ;;  %v3333_v63 = vpop.f32.mrb[136].mxu1 }
 0x600   :  { %v1871_v52 = vpop.permute.xlu1 %1870  ;;  %v6150_v12 = vpop.f32.mrb[137].mxu1 }
 0x601   :  { %1892 = vst.msk [vmem:[%s9029_s10 + $0x40] sm:$0xff] %vm78_vm0, %v1886_v0  ;;  %v1882_v56 = vadd.f32 %v1871_v52, %v9076_v45  ;;  %1906 = vrot.lane.b32.xlu1 %v1886_v0, %s6428_s17  ;;  %6261 = vmatmul.mubr.msk.bf16.gmra.mrb[176].mxu1 %vm3281_vm12, %v6418_v55  ;;  %v3336_v57 = vpop.f32.mrb[138].mxu1 }
 0x602   :  { %6288 = vmatprep.mubr.msk.bf16.mxu1 %vm6435_vm2, %v9065_v49  ;;  %v6151_v48 = vpop.f32.mrb[139].mxu1 }
 0x603   :  { %v1888_v7 = vmax.f32 %v1882_v56, 0.0 }
 0x605   :  { %1894 = vst.msk [vmem:[%s9029_s10 + $0x50] sm:$0xff] %vm78_vm0, %v1888_v7  ;;  %1910 = vrot.lane.b32.xlu1 %v1888_v7, %s6428_s17  ;;  %v5687_v7 = vld [vmem:[%s9025_s1 + $0x1] ss:$0 sm:$0xff] }
 0x607   :  { %v3341_v15 = vpop.f32.mrb[140].mxu1 }
 0x608   :  { %v6154_v40 = vpop.f32.mrb[141].mxu1 }
 0x609   :  { %4440 = vperm.xlu1 %6313, %v4432_v9   ;;  %v3344_v53 = vpop.f32.mrb[142].mxu1 }
 0x60a   :  { %v6155_v16 = vpop.f32.mrb[143].mxu1 }
 0x60d   :  { %4450 = vperm.xlu1 %6313, %v4434_v17  }
 0x611   :  { %4460 = vperm.xlu1 %6313, %v4436_v27  }
 0x613   :  { %v3430_v18 = vpop.f32.mrb[124].mxu0 }
 0x614   :  { %v3431_v61 = vadd.f32 %v3430_v18, %v3325_v31  ;;  %v6164_v51 = vpop.f32.mrb[125].mxu0 }
 0x615   :  { %4540 = vrot.lane.b32.xlu1 %v5685_v4, %s6431_s12  ;;  %v3433_v1 = vpop.f32.mrb[126].mxu0 }
 0x616   :  { %v3434_v11 = vadd.f32 %v3433_v1, %v3328_v41  ;;  %v6165_v37 = vpop.f32.mrb[127].mxu0 }
 0x617   :  { %v3569_v3 = vpop.f32.mrb[144].mxu1 }
 0x618   :  { %v3592_v60 = vadd.f32 %v3569_v3, %v3431_v61  ;;  %v6182_v55 = vpop.f32.mrb[145].mxu1 }
 0x619   :  { %v3572_v45 = vpop.f32.mrb[146].mxu1 }
 0x61a   :  { %v3593_v9 = vadd.f32 %v3572_v45, %v3434_v11  ;;  %v6183_v17 = vpop.f32.mrb[147].mxu1 }
 0x61b   :  { %v3438_v0 = vpop.f32.mrb[128].mxu0 }
 0x61c   :  { %v3439_v52 = vadd.f32 %v3438_v0, %v3333_v63  ;;  %v6168_v56 = vpop.f32.mrb[129].mxu0 }
 0x61d   :  { %v3441_v27 = vpop.f32.mrb[130].mxu0 }
 0x61f   :  { %v3577_v4 = vpop.f32.mrb[148].mxu1 }
 0x653   :  { %v1905_v47 = vpop.permute.xlu0 %1904 }
 0x654   :  { %5440 = vst.msk [vmem:[%s9029_s10 + $0xf8] sm:$0xff] %vm78_vm0, %v1905_v47  ;;  %v3442_v47 = vadd.f32 %v3441_v27, %v3336_v57 }
 0x657   :  { %v1909_v8 = vpop.permute.xlu0 %1908 }
 0x658   :  { %5442 = vst.msk [vmem:[%s9029_s10 + $0x108] sm:$0xff] %vm78_vm0, %v1909_v8  ;;  %v6169_v8 = vpop.f32.mrb[131].mxu0 }
 0x65b   :  { %v1913_v34 = vpop.permute.xlu0 %1912 }
 0x65c   :  { %5444 = vst.msk [vmem:[%s9029_s10 + $0x118] sm:$0xff] %vm78_vm0, %v1913_v34  ;;  %v3594_v34 = vadd.f32 %v3577_v4, %v3439_v52 }
 0x66c   :  { %v8374_v33 = vpop.permute.xlu0 %4445 }
 0x66f   :  { %v1903_v21 = vpop.permute.xlu1 %1902 }
 0x670   :  { %5439 = vst.msk [vmem:[%s9029_s10 + $0xf0] sm:$0xff] %vm78_vm0, %v1903_v21  ;;  %v4206_v39 = vpop.permute.xlu0 %4205  ;;  %v6186_v21 = vpop.f32.mrb[149].mxu1 }
 0x671   :  { %v4211_v29 = vsel %vm1633_vm10, %v4206_v39, %v8176_v59  ;;  %v6420_v59 = vld [vmem:[%s9030_s8 + $0xc0] sm:$0xff]   ;;  %v3446_v39 = vpop.f32.mrb[132].mxu0 }
 0x672   :  { %6269 = vmatpush3.bf16.msra.mxu0 %v4211_v29  ;;  %v3447_v29 = vadd.f32 %v3446_v39, %v3341_v15 }
 0x673   :  { %v1907_v20 = vpop.permute.xlu1 %1906 }
 0x674   :  { %5441 = vst.msk [vmem:[%s9029_s10 + $0x100] sm:$0xff] %vm78_vm0, %v1907_v20  ;;  %v4351_v6 = vpop.permute.xlu0 %4350  ;;  %v6172_v20 = vpop.f32.mrb[133].mxu0 }
 0x675   :  { %v4356_v30 = vsel %vm1765_vm11, %v4351_v6, %v8192_v42  ;;  %6271 = vmatmul.mubr.msk.bf16.vlgmr.msra.gmra.mrb[160].mxu0 %vm3281_vm12, %v6419_v43  ;;  %v6421_v42 = vld [vmem:[%s9030_s8 + $0xb0] sm:$0xff]   ;;  %v3580_v43 = vpop.f32.mrb[150].mxu1 }
 0x676   :  { %6287 = vmatpush3.bf16.msra.mxu1 %v4356_v30  ;;  %6274 = vmatprep.mubr.msk.bf16.mxu0 %vm6435_vm2, %v9065_v49  ;;  %v3595_v6 = vadd.f32 %v3580_v43, %v3442_v47  ;;  %v6187_v30 = vpop.f32.mrb[151].mxu1 }
 0x677   :  { %v1911_v50 = vpop.permute.xlu1 %1910 }
 0x678   :  { %5443 = vst.msk [vmem:[%s9029_s10 + $0x110] sm:$0xff] %vm78_vm0, %v1911_v50  ;;  %v3585_v50 = vpop.f32.mrb[152].mxu1 }
 0x679   :  { %6289 = vmatmul.mubr.msk.bf16.vlgmr.msra.gmra.mrb[180].mxu1 %vm3281_vm12, %v6420_v59  ;;  %v3449_v59 = vpop.f32.mrb[134].mxu0 }
 0x67a   :  { %6292 = vmatprep.mubr.msk.bf16.mxu1 %vm6435_vm2, %v9065_v49 }
 0x67d   :  { %6275 = vmatmul.mubr.msk.bf16.gmra.mrb[164].mxu0 %vm3281_vm12, %v6421_v42  ;;  %v3450_v42 = vadd.f32 %v3449_v59, %v3344_v53 }
 0x67e   :  { %6278 = vmatprep.mubr.msk.bf16.mxu0 %vm6435_vm2, %v9065_v49 }
 0x681   :  { %6293 = vmatmul.mubr.msk.bf16.gmra.mrb[184].mxu1 %vm3281_vm12, %v6422_v23  ;;  %v6173_v23 = vpop.f32.mrb[135].mxu0 }
 0x682   :  { %6296 = vmatprep.mubr.msk.bf16.mxu1 %vm6435_vm2, %v9065_v49  ;;  %v9078_v49 = vld [vmem:[#allocation8_spill] sm:$0xff] }
 0x685   :  { %6279 = vmatmul.mubr.msk.bf16.gmra.mrb[168].mxu0 %vm3281_vm12, %v6423_v19  ;;  %v3596_v19 = vadd.f32 %v3585_v50, %v3447_v29 }
 0x688   :  { %v8423_v5 = vpop.permute.xlu1 %4440 }
 0x689   :  { %6297 = vmatmul.mubr.msk.bf16.gmra.mrb[188].mxu1 %vm3281_vm12, %v6424_v44  ;;  %v6190_v44 = vpop.f32.mrb[153].mxu1 }
 0x68c   :  { %v8426_v22 = vpop.permute.xlu1 %4450 }
 0x690   :  { %v8428_v28 = vpop.permute.xlu1 %4460 }
 0x694   :  { %v4541_v13 = vpop.permute.xlu1 %4540 }
 0x695   :  { %v4544_v46 = vmul.f32 %v4541_v13, %v9077_v38  ;;  %v4543_v54 = vmul.f32 0.0, %v4541_v13  ;;  %v4546_v25 = vmul.f32 %v4541_v13, %v9078_v49  ;;  %v4548_v2 = vmul.f32 %v4541_v13, %v9079_v35 }
 0x696   :  { %v4550_v32 = vmul.f32 %v4541_v13, %v9080_v26  ;;  %v4552_v36 = vmul.f32 %v4541_v13, %v9081_v58  ;;  %v4554_v24 = vmul.f32 %v4541_v13, %v9082_v10  ;;  %v3714_v13 = vpop.f32.mrb[136].mxu0 }
 0x697   :  { %4569 = vrot.lane.b32.xlu1 %v4544_v46, %s6436_s28  ;;  %4567 = vrot.lane.b32.xlu0 %v4543_v54, %s6436_s28  ;;  %v3588_v46 = vpop.f32.mrb[154].mxu1 }
 0x698   :  { %v3597_v31 = vadd.f32 %v3588_v46, %v3450_v42  ;;  %v6191_v14 = vpop.f32.mrb[155].mxu1 }
 0x699   :  { %v3811_v41 = vpop.f32.mrb[156].mxu1 }
 0x69a   :  { %v6218_v12 = vpop.f32.mrb[157].mxu1 }
 0x69b   :  { %4573 = vrot.lane.b32.xlu1 %v4546_v25, %s6436_s28  ;;  %4571 = vrot.lane.b32.xlu0 %v4543_v54, %s6436_s28  ;;  %v6200_v25 = vpop.f32.mrb[137].mxu0  ;;  %v3814_v18 = vpop.f32.mrb[158].mxu1 }
 0x69c   :  { %v6219_v61 = vpop.f32.mrb[159].mxu1 }
 0x69d   :  { %v3819_v40 = vpop.f32.mrb[160].mxu1 }
 0x69f   :  { %4577 = vrot.lane.b32.xlu1 %v4548_v2, %s6436_s28  ;;  %4575 = vrot.lane.b32.xlu0 %v4543_v54, %s6436_s28  ;;  %v3717_v2 = vpop.f32.mrb[138].mxu0 }
 0x6a0   :  { %v3738_v62 = vadd.f32 %v3717_v2, %v3593_v9 }
 0x6a2   :  { %v3835_v15 = vadd.f32 %v3814_v18, %v3738_v62 }
 0x6a3   :  { %4581 = vrot.lane.b32.xlu1 %v4550_v32, %s6436_s28  ;;  %4579 = vrot.lane.b32.xlu0 %v4543_v54, %s6436_s28  ;;  %v6201_v32 = vpop.f32.mrb[139].mxu0 }
 0x6a4   :  { %v3722_v57 = vpop.f32.mrb[140].mxu0 }
 0x6a5   :  { %v3739_v48 = vadd.f32 %v3722_v57, %v3594_v34 }
 0x6a7   :  { %4585 = vrot.lane.b32.xlu1 %v4552_v36, %s6436_s28  ;;  %4583 = vrot.lane.b32.xlu0 %v4543_v54, %s6436_s28  ;;  %v6204_v36 = vpop.f32.mrb[141].mxu0  ;;  %v3836_v1 = vadd.f32 %v3819_v40, %v3739_v48 }
 0x6a8   :  { %v3725_v51 = vpop.f32.mrb[142].mxu0 }
 0x6a9   :  { %v3740_v53 = vadd.f32 %v3725_v51, %v3595_v6  ;;  %v6205_v16 = vpop.f32.mrb[143].mxu0 }
 0x6aa   :  { %v3730_v3 = vpop.f32.mrb[144].mxu0  ;;  %v8464_v16 = vpop.permute.xlu0 %4455 }
 0x6ab   :  { %4589 = vrot.lane.b32.xlu1 %v4554_v24, %s6436_s28  ;;  %4587 = vrot.lane.b32.xlu0 %v4543_v54, %s6436_s28  ;;  %v3737_v54 = vadd.f32 %v3714_v13, %v3592_v60  ;;  %v6222_v24 = vpop.f32.mrb[161].mxu1  ;;  %v3741_v11 = vadd.f32 %v3730_v3, %v3596_v19  ;;  %v6208_v60 = vpop.f32.mrb[145].mxu0 }
 0x6ac   :  { %v3822_v37 = vpop.f32.mrb[162].mxu1  ;;  %v3733_v52 = vpop.f32.mrb[146].mxu0 }
 0x6ad   :  { %v3834_v63 = vadd.f32 %v3811_v41, %v3737_v54  ;;  %v3837_v55 = vadd.f32 %v3822_v37, %v3740_v53  ;;  %v6223_v0 = vpop.f32.mrb[163].mxu1  ;;  %v3742_v56 = vadd.f32 %v3733_v52, %v3597_v31 }
 0x6ae   :  { %v3827_v45 = vpop.f32.mrb[164].mxu1 }
 0x6af   :  { %4616 = vrot.lane.b32.xlu0 %v5687_v7, %s6429_s22  ;;  %v6209_v7 = vpop.f32.mrb[147].mxu0  ;;  %v3838_v9 = vadd.f32 %v3827_v45, %v3741_v11  ;;  %v6226_v17 = vpop.f32.mrb[165].mxu1 }
 0x6b0   :  { %v3830_v27 = vpop.f32.mrb[166].mxu1 }
 0x6b1   :  { %v3839_v4 = vadd.f32 %v3830_v27, %v3742_v56  ;;  %v6227_v8 = vpop.f32.mrb[167].mxu1  ;;  %v5689_v27 = vld [vmem:[%s9025_s1 + $0x2] ss:$0 sm:$0xff] }
 0x6b2   :  { %v5697_v8 = vld [vmem:[%s9025_s1 + $0x7] ss:$0 sm:$0xff] }
 0x6c0   :  { %v3968_v47 = vpop.f32.mrb[148].mxu0 }
 0x6c1   :  { %v3991_v34 = vadd.f32 %v3968_v47, %v3834_v63  ;;  %v6236_v21 = vpop.f32.mrb[149].mxu0  ;;  %v5691_v47 = vld [vmem:[%s9025_s1 + $0x3] ss:$0 sm:$0xff] }
 0x6c2   :  { %v3971_v39 = vpop.f32.mrb[150].mxu0  ;;  %v5699_v21 = vld [vmem:[%s9025_s1 + $0x8] ss:$0 sm:$0xff] }
 0x6c3   :  { %v3992_v29 = vadd.f32 %v3971_v39, %v3835_v15  ;;  %v6237_v43 = vpop.f32.mrb[151].mxu0 }
 0x6c4   :  { %v4113_v20 = vpop.f32.mrb[168].mxu1 }
 0x6c5   :  { %v8452_v6 = vadd.f32 %v4113_v20, %v3991_v34  ;;  %v6254_v30 = vpop.f32.mrb[169].mxu1  ;;  %v5695_v34 = vld [vmem:[%s9025_s1 + $0x6] ss:$0 sm:$0xff] }
 0x6c6   :  { %v4116_v59 = vpop.f32.mrb[170].mxu1 }
 0x6c7   :  { %v8454_v50 = vadd.f32 %v4116_v59, %v3992_v29  ;;  %v6255_v42 = vpop.f32.mrb[171].mxu1 }
 0x6c8   :  { %v3976_v23 = vpop.f32.mrb[152].mxu0 }
 0x6c9   :  { %v3993_v19 = vadd.f32 %v3976_v23, %v3836_v1  ;;  %v6240_v44 = vpop.f32.mrb[153].mxu0  ;;  %v8466_v1 = vpop.permute.xlu0 %4465 }
 0x6ca   :  { %v3979_v13 = vpop.f32.mrb[154].mxu0 }
 0x6cb   :  { %v3994_v46 = vadd.f32 %v3979_v13, %v3837_v55  ;;  %v6241_v54 = vpop.f32.mrb[155].mxu0 }
 0x6cc   :  { %v4121_v25 = vpop.f32.mrb[172].mxu1 }
 0x6cd   :  { %v8456_v31 = vadd.f32 %v4121_v25, %v3993_v19  ;;  %v6258_v14 = vpop.f32.mrb[173].mxu1 }
 0x6ce   :  { %v4124_v2 = vpop.f32.mrb[174].mxu1 }
 0x6cf   :  { %v8458_v41 = vadd.f32 %v4124_v2, %v3994_v46  ;;  %v6259_v62 = vpop.f32.mrb[175].mxu1 }
 0x6d1   :  { %v3984_v32 = vpop.f32.mrb[156].mxu0 }
 0x6d2   :  { %v3995_v63 = vadd.f32 %v3984_v32, %v3838_v9  ;;  %v6244_v12 = vpop.f32.mrb[157].mxu0 }
 0x6d3   :  { %v3987_v57 = vpop.f32.mrb[158].mxu0 }
 0x6d4   :  { %v3996_v48 = vadd.f32 %v3987_v57, %v3839_v4  ;;  %v4129_v18 = vpop.f32.mrb[176].mxu1  ;;  %v6245_v36 = vpop.f32.mrb[159].mxu0  ;;  %v5693_v4 = vld [vmem:[%s9025_s1 + $0x5] ss:$0 sm:$0xff] }
 0x6d5   :  { %v8460_v15 = vadd.f32 %v4129_v18, %v3995_v63  ;;  %v6262_v61 = vpop.f32.mrb[177].mxu1 }
 0x6d6   :  { %v4132_v51 = vpop.f32.mrb[178].mxu1 }
 0x6d7   :  { %v8462_v40 = vadd.f32 %v4132_v51, %v3996_v48  ;;  %v6263_v53 = vpop.f32.mrb[179].mxu1 }
 0x709   :  { %v8468_v24 = vpop.permute.xlu0 %4567 }
 0x70d   :  { %v8470_v3 = vpop.permute.xlu0 %4571 }
 0x711   :  { %v8472_v11 = vpop.permute.xlu0 %4575 }
 0x715   :  { %v8474_v37 = vpop.permute.xlu0 %4579 }
 0x719   :  { %v8476_v60 = vpop.permute.xlu0 %4583 }
 0x71d   :  { %v8478_v55 = vpop.permute.xlu0 %4587 }
 0x721   :  { %v4617_v0 = vpop.permute.xlu0 %4616 }
 0x722   :  { %v4620_v52 = vmul.f32 %v4617_v0, %v9077_v38  ;;  %v4619_v45 = vmul.f32 0.0, %v4617_v0  ;;  %v4622_v56 = vmul.f32 %v4617_v0, %v9078_v49  ;;  %v4624_v7 = vmul.f32 %v4617_v0, %v9079_v35 }
 0x723   :  { %v4626_v9 = vmul.f32 %v4617_v0, %v9080_v26  ;;  %v4628_v17 = vmul.f32 %v4617_v0, %v9081_v58  ;;  %v4630_v39 = vmul.f32 %v4617_v0, %v9082_v10 }
 0x724   :  { %4645 = vrot.lane.b32.xlu0 %v4620_v52, %s6432_s24  ;;  %4643 = vrot.lane.b32.xlu1 %v4619_v45, %s6432_s24 }
 0x728   :  { %4649 = vrot.lane.b32.xlu0 %v4622_v56, %s6432_s24  ;;  %4647 = vrot.lane.b32.xlu1 %v4619_v45, %s6432_s24 }
 0x72c   :  { %4653 = vrot.lane.b32.xlu0 %v4624_v7, %s6432_s24  ;;  %4651 = vrot.lane.b32.xlu1 %v4619_v45, %s6432_s24 }
 0x730   :  { %4657 = vrot.lane.b32.xlu0 %v4626_v9, %s6432_s24  ;;  %4655 = vrot.lane.b32.xlu1 %v4619_v45, %s6432_s24 }
 0x734   :  { %4661 = vrot.lane.b32.xlu0 %v4628_v17, %s6432_s24  ;;  %4659 = vrot.lane.b32.xlu1 %v4619_v45, %s6432_s24 }
 0x738   :  { %4692 = vrot.lane.b32.xlu0 %v5689_v27, %s6430_s29  ;;  %4663 = vrot.lane.b32.xlu1 %v4619_v45, %s6432_s24 }
 0x73c   :  { %4856 = vrot.lane.b32.xlu0 %v5693_v4, %s6438_s18  ;;  %4768 = vrot.lane.b32.xlu1 %v5691_v47, %s6433_s13 }
 0x740   :  { %5008 = vrot.lane.b32.xlu0 %v5697_v8, %s6432_s24  ;;  %4932 = vrot.lane.b32.xlu1 %v5695_v34, %s6437_s30 }
 0x744   :  { %4665 = vrot.lane.b32.xlu0 %v4630_v39, %s6432_s24  ;;  %5084 = vrot.lane.b32.xlu1 %v5699_v21, %s6436_s28 }
 0x748   :  { %v4258_v29 = vpop.f32.mrb[160].mxu0 }
 0x749   :  { %v4281_v43 = vadd.f32 %v4258_v29, %v8452_v6  ;;  %v6272_v20 = vpop.f32.mrb[161].mxu0 }
 0x74a   :  { %v4261_v30 = vpop.f32.mrb[162].mxu0 }
 0x74b   :  { %v4282_v59 = vadd.f32 %v4261_v30, %v8454_v50  ;;  %v6273_v42 = vpop.f32.mrb[163].mxu0 }
 0x74c   :  { %v4403_v23 = vpop.f32.mrb[180].mxu1 }
 0x74d   :  { %v4426_v19 = vadd.f32 %v4403_v23, %v4281_v43  ;;  %v6290_v44 = vpop.f32.mrb[181].mxu1 }
 0x74e   :  { %v4406_v13 = vpop.f32.mrb[182].mxu1 }
 0x74f   :  { %v8525_v46 = vadd.f32 %v8423_v5, %v4426_v19  ;;  %v4427_v54 = vadd.f32 %v4406_v13, %v4282_v59  ;;  %v6291_v25 = vpop.f32.mrb[183].mxu1 }
 0x750   :  { %v4266_v14 = vpop.f32.mrb[164].mxu0 }
 0x751   :  { %v4474_v2 = vmax.f32 %v8525_v46, 0.0  ;;  %v8529_v62 = vadd.f32 %v8374_v33, %v4427_v54  ;;  %v4283_v6 = vadd.f32 %v4266_v14, %v8456_v31  ;;  %v6276_v32 = vpop.f32.mrb[165].mxu0 }
 0x752   :  { %v4269_v50 = vpop.f32.mrb[166].mxu0 }
 0x753   :  { %4480 = vst.msk [vmem:[%s9029_s10 + $0x60] sm:$0xff] %vm78_vm0, %v4474_v2  ;;  %v4475_v5 = vmax.f32 %v8529_v62, 0.0  ;;  %v4284_v63 = vadd.f32 %v4269_v50, %v8458_v41  ;;  %v6277_v12 = vpop.f32.mrb[167].mxu0 }
 0x754   :  { %v4411_v57 = vpop.f32.mrb[184].mxu1 }
 0x755   :  { %4481 = vst.msk [vmem:[%s9029_s10 + $0x68] sm:$0xff] %vm78_vm0, %v4475_v5  ;;  %v4428_v33 = vadd.f32 %v4411_v57, %v4283_v6  ;;  %v6294_v31 = vpop.f32.mrb[185].mxu1 }
 0x756   :  { %v4414_v48 = vpop.f32.mrb[186].mxu1 }
 0x757   :  { %v8547_v18 = vadd.f32 %v8426_v22, %v4428_v33  ;;  %v4429_v36 = vadd.f32 %v4414_v48, %v4284_v63  ;;  %v6295_v61 = vpop.f32.mrb[187].mxu1 }
 0x758   :  { %v4274_v51 = vpop.f32.mrb[168].mxu0 }
 0x759   :  { %v4476_v41 = vmax.f32 %v8547_v18, 0.0  ;;  %v8551_v53 = vadd.f32 %v8464_v16, %v4429_v36  ;;  %v4285_v0 = vadd.f32 %v4274_v51, %v8460_v15  ;;  %v6280_v52 = vpop.f32.mrb[169].mxu0 }
 0x75a   :  { %v4277_v45 = vpop.f32.mrb[170].mxu0 }
 0x75b   :  { %4482 = vst.msk [vmem:[%s9029_s10 + $0x70] sm:$0xff] %vm78_vm0, %v4476_v41  ;;  %v4477_v22 = vmax.f32 %v8551_v53, 0.0  ;;  %v4286_v56 = vadd.f32 %v4277_v45, %v8462_v40  ;;  %v6281_v7 = vpop.f32.mrb[171].mxu0 }
 0x75c   :  { %v4419_v9 = vpop.f32.mrb[188].mxu1 }
 0x75d   :  { %4483 = vst.msk [vmem:[%s9029_s10 + $0x78] sm:$0xff] %vm78_vm0, %v4477_v22  ;;  %v4430_v15 = vadd.f32 %v4419_v9, %v4285_v0  ;;  %v6298_v16 = vpop.f32.mrb[189].mxu1 }
 0x75e   :  { %v4422_v17 = vpop.f32.mrb[190].mxu1 }
 0x75f   :  { %v8569_v27 = vadd.f32 %v8428_v28, %v4430_v15  ;;  %v4431_v4 = vadd.f32 %v4422_v17, %v4286_v56  ;;  %v6299_v47 = vpop.f32.mrb[191].mxu1  ;;  %v8588_v28 = vpop.permute.xlu1 %4569 }
 0x761   :  { %v4478_v8 = vmax.f32 %v8569_v27, 0.0  ;;  %v8573_v40 = vadd.f32 %v8466_v1, %v4431_v4 }
 0x763   :  { %4484 = vst.msk [vmem:[%s9029_s10 + $0x80] sm:$0xff] %vm78_vm0, %v4478_v8  ;;  %v4479_v34 = vmax.f32 %v8573_v40, 0.0  ;;  %v8590_v1 = vpop.permute.xlu1 %4573 }
 0x765   :  { %4485 = vst.msk [vmem:[%s9029_s10 + $0x88] sm:$0xff] %vm78_vm0, %v4479_v34 }
 0x767   :  { %v8592_v21 = vpop.permute.xlu1 %4577 }
 0x76b   :  { %v8594_v39 = vpop.permute.xlu1 %4581 }
 0x76f   :  { %v8596_v29 = vpop.permute.xlu1 %4585 }
 0x773   :  { %v4590_v43 = vpop.permute.xlu1 %4589 }
 0x774   :  { %v4597_v57 = vsel %vm875_vm4, %v8478_v55, %v4590_v43 }
 0x775   :  { %v4609_v31 = vadd.f32 %v4597_v57, %v9082_v10 }
 0x796   :  { %v8598_v20 = vpop.permute.xlu0 %4645  ;;  %v8600_v30 = vpop.permute.xlu1 %4643 }
 0x79a   :  { %v8602_v59 = vpop.permute.xlu0 %4649  ;;  %v8604_v42 = vpop.permute.xlu1 %4647 }
 0x79e   :  { %v8606_v23 = vpop.permute.xlu0 %4653  ;;  %v8610_v44 = vpop.permute.xlu1 %4651 }
 0x7a2   :  { %v8608_v19 = vpop.permute.xlu0 %4657  ;;  %v8614_v54 = vpop.permute.xlu1 %4655 }
 0x7a6   :  { %v8612_v13 = vpop.permute.xlu0 %4661  ;;  %v8620_v63 = vpop.permute.xlu1 %4659 }
 0x7aa   :  { %v4693_v25 = vpop.permute.xlu0 %4692  ;;  %v4664_v48 = vpop.permute.xlu1 %4663 }
 0x7ab   :  { %v4695_v14 = vmul.f32 0.0, %v4693_v25  ;;  %v4696_v6 = vmul.f32 %v4693_v25, %v9077_v38  ;;  %v4698_v50 = vmul.f32 %v4693_v25, %v9078_v49  ;;  %v4700_v33 = vmul.f32 %v4693_v25, %v9079_v35 }
 0x7ac   :  { %v4702_v51 = vmul.f32 %v4693_v25, %v9080_v26  ;;  %v4704_v55 = vmul.f32 %v4693_v25, %v9081_v58  ;;  %v4706_v52 = vmul.f32 %v4693_v25, %v9082_v10 }
 0x7ad   :  { %4721 = vrot.lane.b32.xlu0 %v4696_v6, %s6437_s30  ;;  %4719 = vrot.lane.b32.xlu1 %v4695_v14, %s6437_s30 }
 0x7ae   :  { %v4857_v32 = vpop.permute.xlu0 %4856  ;;  %v4769_v45 = vpop.permute.xlu1 %4768 }
 0x7af   :  { %v4771_v56 = vmul.f32 0.0, %v4769_v45  ;;  %v4772_v7 = vmul.f32 %v4769_v45, %v9077_v38  ;;  %v4774_v9 = vmul.f32 %v4769_v45, %v9078_v49  ;;  %v4776_v15 = vmul.f32 %v4769_v45, %v9079_v35 }
 0x7b0   :  { %v4778_v16 = vmul.f32 %v4769_v45, %v9080_v26  ;;  %v4780_v17 = vmul.f32 %v4769_v45, %v9081_v58  ;;  %v4782_v4 = vmul.f32 %v4769_v45, %v9082_v10  ;;  %v4860_v47 = vmul.f32 0.0, %v4857_v32 }
 0x7b1   :  { %4725 = vrot.lane.b32.xlu0 %v4698_v50, %s6437_s30  ;;  %4723 = vrot.lane.b32.xlu1 %v4695_v14, %s6437_s30  ;;  %v4859_v43 = vmul.f32 %v4857_v32, %v9077_v38  ;;  %v4861_v25 = vmul.f32 %v4857_v32, %v9078_v49  ;;  %v4865_v6 = vmul.f32 %v4857_v32, %v9080_v26 }
 0x7b2   :  { %v8624_v12 = vpop.permute.xlu0 %5008  ;;  %v4867_v50 = vmul.f32 %v4857_v32, %v9081_v58  ;;  %v4869_v57 = vmul.f32 %v4857_v32, %v9082_v10 }
 0x7b3   :  { %v5011_v45 = vmul.f32 %v8624_v12, %v9077_v38 }
 0x7b5   :  { %4729 = vrot.lane.b32.xlu0 %v4700_v33, %s6437_s30  ;;  %4727 = vrot.lane.b32.xlu1 %v4695_v14, %s6437_s30  ;;  %v4933_v33 = vpop.permute.xlu1 %4932 }
 0x7b6   :  { %v4666_v36 = vpop.permute.xlu0 %4665 }
 0x7b7   :  { %v4673_v61 = vsel %vm776_vm3, %v4664_v48, %v4666_v36  ;;  %v4935_v48 = vmul.f32 %v4933_v33, %v9077_v38  ;;  %v4937_v36 = vmul.f32 %v4933_v33, %v9078_v49 }
 0x7b8   :  { %v8634_v0 = vadd.f32 %v4673_v61, %v4609_v31  ;;  %v4936_v31 = vmul.f32 0.0, %v4933_v33  ;;  %v4941_v61 = vmul.f32 %v4933_v33, %v9080_v26 }
 0x7b9   :  { %4733 = vrot.lane.b32.xlu0 %v4702_v51, %s6437_s30  ;;  %4731 = vrot.lane.b32.xlu1 %v4695_v14, %s6437_s30  ;;  %v4943_v51 = vmul.f32 %v4933_v33, %v9081_v58 }
 0x7bd   :  { %4737 = vrot.lane.b32.xlu0 %v4704_v55, %s6437_s30  ;;  %4735 = vrot.lane.b32.xlu1 %v4695_v14, %s6437_s30  ;;  %v4945_v55 = vmul.f32 %v4933_v33, %v9082_v10 }
 0x7c1   :  { %4741 = vrot.lane.b32.xlu0 %v4706_v52, %s6437_s30  ;;  %4739 = vrot.lane.b32.xlu1 %v4695_v14, %s6437_s30  ;;  %v4863_v14 = vmul.f32 %v4857_v32, %v9079_v35  ;;  %v4939_v32 = vmul.f32 %v4933_v33, %v9079_v35  ;;  %v5012_v52 = vmul.f32 0.0, %v8624_v12  ;;  %v4670_v33 = vsel %vm776_vm3, %v8610_v44, %v8606_v23 }
 0x7c5   :  { %4797 = vrot.lane.b32.xlu0 %v4772_v7, %s6438_s18  ;;  %4795 = vrot.lane.b32.xlu1 %v4771_v56, %s6438_s18  ;;  %v5015_v7 = vmul.f32 %v8624_v12, %v9079_v35 }
 0x7c9   :  { %4801 = vrot.lane.b32.xlu0 %v4774_v9, %s6438_s18  ;;  %4799 = vrot.lane.b32.xlu1 %v4771_v56, %s6438_s18  ;;  %v5017_v9 = vmul.f32 %v8624_v12, %v9080_v26 }
 0x7cd   :  { %4805 = vrot.lane.b32.xlu0 %v4776_v15, %s6438_s18  ;;  %4803 = vrot.lane.b32.xlu1 %v4771_v56, %s6438_s18  ;;  %v4592_v15 = vsel %vm875_vm4, %v8468_v24, %v8588_v28 }
 0x7d1   :  { %4809 = vrot.lane.b32.xlu0 %v4778_v16, %s6438_s18  ;;  %4807 = vrot.lane.b32.xlu1 %v4771_v56, %s6438_s18  ;;  %v8718_v16 = vpop.permute.xlu1 %5084 }
 0x7d5   :  { %4813 = vrot.lane.b32.xlu0 %v4780_v17, %s6438_s18  ;;  %4811 = vrot.lane.b32.xlu1 %v4771_v56, %s6438_s18  ;;  %v5019_v17 = vmul.f32 %v8624_v12, %v9081_v58 }
 0x7d9   :  { %4817 = vrot.lane.b32.xlu0 %v4782_v4, %s6438_s18  ;;  %4815 = vrot.lane.b32.xlu1 %v4771_v56, %s6438_s18  ;;  %v5013_v56 = vmul.f32 %v8624_v12, %v9078_v49  ;;  %v4668_v4 = vsel %vm776_vm3, %v8600_v30, %v8598_v20  ;;  %v4669_v20 = vsel %vm776_vm3, %v8604_v42, %v8602_v59  ;;  %v5167_v59 = vld [vmem:[%s9023_s3 + $0x78] sm:$0xff] }
 0x7dd   :  { %4885 = vrot.lane.b32.xlu0 %v4860_v47, %s6433_s13  ;;  %4883 = vrot.lane.b32.xlu1 %v4859_v43, %s6433_s13  ;;  %v4593_v43 = vsel %vm875_vm4, %v8470_v3, %v8590_v1  ;;  %v4594_v3 = vsel %vm875_vm4, %v8472_v11, %v8592_v21  ;;  %v5166_v1 = vld [vmem:[%s9023_s3 + $0x70] sm:$0xff]  ;;  %v4595_v21 = vsel %vm875_vm4, %v8474_v37, %v8594_v39 }
 0x7de   :  { %v4596_v39 = vsel %vm875_vm4, %v8476_v60, %v8596_v29 }
 0x7e1   :  { %4889 = vrot.lane.b32.xlu0 %v4860_v47, %s6433_s13  ;;  %4887 = vrot.lane.b32.xlu1 %v4861_v25, %s6433_s13 }
 0x7e5   :  { %4893 = vrot.lane.b32.xlu0 %v4860_v47, %s6433_s13  ;;  %4891 = vrot.lane.b32.xlu1 %v4863_v14, %s6433_s13  ;;  %v5021_v14 = vmul.f32 %v8624_v12, %v9082_v10 }
 0x7e9   :  { %4897 = vrot.lane.b32.xlu0 %v4860_v47, %s6433_s13  ;;  %4895 = vrot.lane.b32.xlu1 %v4865_v6, %s6433_s13  ;;  %v4605_v6 = vadd.f32 %v4593_v43, %v9078_v49 }
 0x7eb   :  { %v4681_v42 = vadd.f32 %v4669_v20, %v4605_v6 }
 0x7ed   :  { %4901 = vrot.lane.b32.xlu0 %v4860_v47, %s6433_s13  ;;  %4899 = vrot.lane.b32.xlu1 %v4867_v50, %s6433_s13 }
 0x7f1   :  { %4905 = vrot.lane.b32.xlu0 %v4860_v47, %s6433_s13  ;;  %4903 = vrot.lane.b32.xlu1 %v4869_v57, %s6433_s13  ;;  %v4604_v47 = vadd.f32 %v4592_v15, %v9077_v38 }
 0x7f3   :  { %v4680_v24 = vadd.f32 %v4668_v4, %v4604_v47  ;;  %v5088_v4 = vmul.f32 0.0, %v8718_v16 }
 0x7f5   :  { %4959 = vrot.lane.b32.xlu1 %v4935_v48, %s6430_s29  ;;  %4961 = vrot.lane.b32.xlu0 %v4936_v31, %s6430_s29  ;;  %v4606_v48 = vadd.f32 %v4594_v3, %v9079_v35  ;;  %v5091_v3 = vmul.f32 %v8718_v16, %v9079_v35 }
 0x7f7   :  { %v4682_v23 = vadd.f32 %v4670_v33, %v4606_v48 }
 0x7f9   :  { %4963 = vrot.lane.b32.xlu1 %v4937_v36, %s6430_s29  ;;  %4965 = vrot.lane.b32.xlu0 %v4936_v31, %s6430_s29  ;;  %v5168_v36 = vld [vmem:[%s9023_s3 + $0x80] sm:$0xff] }
 0x7fd   :  { %4967 = vrot.lane.b32.xlu1 %v4939_v32, %s6430_s29  ;;  %4969 = vrot.lane.b32.xlu0 %v4936_v31, %s6430_s29  ;;  %v5169_v32 = vld [vmem:[%s9023_s3 + $0x88] sm:$0xff] }
 0x801   :  { %4971 = vrot.lane.b32.xlu1 %v4941_v61, %s6430_s29  ;;  %4973 = vrot.lane.b32.xlu0 %v4936_v31, %s6430_s29 }
 0x805   :  { %4975 = vrot.lane.b32.xlu1 %v4943_v51, %s6430_s29  ;;  %4977 = vrot.lane.b32.xlu0 %v4936_v31, %s6430_s29  ;;  %v4671_v51 = vsel %vm776_vm3, %v8614_v54, %v8608_v19 }
 0x809   :  { %4979 = vrot.lane.b32.xlu1 %v4945_v55, %s6430_s29  ;;  %4981 = vrot.lane.b32.xlu0 %v4936_v31, %s6430_s29 }
 0x80d   :  { %5035 = vrot.lane.b32.xlu1 %v5011_v45, %s6429_s22  ;;  %5037 = vrot.lane.b32.xlu0 %v5012_v52, %s6429_s22  ;;  %v5170_v45 = vld [vmem:[%s9023_s3 + $0x90] sm:$0xff] }
 0x811   :  { %5039 = vrot.lane.b32.xlu1 %v5013_v56, %s6429_s22  ;;  %5041 = vrot.lane.b32.xlu0 %v5012_v52, %s6429_s22  ;;  %v5171_v56 = vld [vmem:[%s9023_s3 + $0x98] sm:$0xff] }
 0x815   :  { %5043 = vrot.lane.b32.xlu1 %v5015_v7, %s6429_s22  ;;  %5045 = vrot.lane.b32.xlu0 %v5012_v52, %s6429_s22 }
 0x819   :  { %5047 = vrot.lane.b32.xlu1 %v5017_v9, %s6429_s22  ;;  %5049 = vrot.lane.b32.xlu0 %v5012_v52, %s6429_s22  ;;  %v4672_v9 = vsel %vm776_vm3, %v8620_v63, %v8612_v13 }
 0x81d   :  { %5051 = vrot.lane.b32.xlu1 %v5019_v17, %s6429_s22  ;;  %5053 = vrot.lane.b32.xlu0 %v5012_v52, %s6429_s22  ;;  %v4608_v17 = vadd.f32 %v4596_v39, %v9081_v58 }
 0x81f   :  { %v4722_v28 = vpop.permute.xlu0 %4721  ;;  %v4720_v25 = vpop.permute.xlu1 %4719  ;;  %v4684_v29 = vadd.f32 %v4672_v9, %v4608_v17 }
 0x820   :  { %v4744_v30 = vsel %vm1001_vm6, %v4720_v25, %v4722_v28 }
 0x821   :  { %v4756_v50 = vadd.f32 %v4744_v30, %v4680_v24  ;;  %5055 = vrot.lane.b32.xlu1 %v5021_v14, %s6429_s22  ;;  %5057 = vrot.lane.b32.xlu0 %v5012_v52, %s6429_s22  ;;  %v4607_v52 = vadd.f32 %v4595_v21, %v9080_v26  ;;  %v5087_v24 = vmul.f32 %v8718_v16, %v9077_v38 }
 0x822   :  { %v5089_v14 = vmul.f32 %v8718_v16, %v9078_v49 }
 0x823   :  { %v4726_v12 = vpop.permute.xlu0 %4725  ;;  %v4724_v57 = vpop.permute.xlu1 %4723  ;;  %v4683_v19 = vadd.f32 %v4671_v51, %v4607_v52 }
 0x824   :  { %v4745_v31 = vsel %vm1001_vm6, %v4724_v57, %v4726_v12 }
 0x825   :  { %v4757_v11 = vadd.f32 %v4745_v31, %v4681_v42  ;;  %5174 = vperm.xlu1 %6313, %v5166_v1   ;;  %5179 = vperm.xlu0 %6312, %v5167_v59  }
 0x827   :  { %v4730_v44 = vpop.permute.xlu0 %4729  ;;  %v4728_v61 = vpop.permute.xlu1 %4727 }
 0x828   :  { %v4746_v55 = vsel %vm1001_vm6, %v4728_v61, %v4730_v44 }
 0x829   :  { %v4758_v37 = vadd.f32 %v4746_v55, %v4682_v23  ;;  %5184 = vperm.xlu1 %6313, %v5168_v36   ;;  %5189 = vperm.xlu0 %6312, %v5169_v32  }
 0x82b   :  { %v4734_v54 = vpop.permute.xlu0 %4733  ;;  %v4732_v7 = vpop.permute.xlu1 %4731 }
 0x82c   :  { %v4747_v15 = vsel %vm1001_vm6, %v4732_v7, %v4734_v54 }
 0x82d   :  { %v4759_v60 = vadd.f32 %v4747_v15, %v4683_v19  ;;  %5194 = vperm.xlu1 %6313, %v5170_v45   ;;  %5199 = vperm.xlu0 %6312, %v5171_v56  }
 0x82f   :  { %v4738_v47 = vpop.permute.xlu0 %4737  ;;  %v4736_v43 = vpop.permute.xlu1 %4735 }
 0x830   :  { %v4748_v28 = vsel %vm1001_vm6, %v4736_v43, %v4738_v47 }
 0x831   :  { %v4760_v25 = vadd.f32 %v4748_v28, %v4684_v29  ;;  %5111 = vrot.lane.b32.xlu1 %v5087_v24, %s6431_s12  ;;  %5113 = vrot.lane.b32.xlu0 %v5088_v4, %s6431_s12 }
 0x833   :  { %v4742_v13 = vpop.permute.xlu0 %4741  ;;  %v4740_v63 = vpop.permute.xlu1 %4739 }
 0x834   :  { %v4749_v20 = vsel %vm1001_vm6, %v4740_v63, %v4742_v13 }
 0x835   :  { %v4761_v30 = vadd.f32 %v4749_v20, %v8634_v0  ;;  %5115 = vrot.lane.b32.xlu1 %v5089_v14, %s6431_s12  ;;  %5117 = vrot.lane.b32.xlu0 %v5088_v4, %s6431_s12  ;;  %v5093_v0 = vmul.f32 %v8718_v16, %v9080_v26 }
 0x837   :  { %v4798_v38 = vpop.permute.xlu0 %4797  ;;  %v4796_v6 = vpop.permute.xlu1 %4795 }
 0x838   :  { %v4820_v1 = vsel %vm1133_vm7, %v4796_v6, %v4798_v38 }
 0x839   :  { %v4832_v59 = vadd.f32 %v4820_v1, %v4756_v50  ;;  %5119 = vrot.lane.b32.xlu1 %v5091_v3, %s6431_s12  ;;  %5121 = vrot.lane.b32.xlu0 %v5088_v4, %s6431_s12  ;;  %v5095_v50 = vmul.f32 %v8718_v16, %v9081_v58 }
 0x83b   :  { %v4802_v49 = vpop.permute.xlu0 %4801  ;;  %v4800_v42 = vpop.permute.xlu1 %4799 }
 0x83c   :  { %v4821_v12 = vsel %vm1133_vm7, %v4800_v42, %v4802_v49 }
 0x83d   :  { %v4833_v57 = vadd.f32 %v4821_v12, %v4757_v11  ;;  %5123 = vrot.lane.b32.xlu1 %v5093_v0, %s6431_s12  ;;  %5125 = vrot.lane.b32.xlu0 %v5088_v4, %s6431_s12  ;;  %v5097_v11 = vmul.f32 %v8718_v16, %v9082_v10 }
 0x83f   :  { %v4806_v35 = vpop.permute.xlu0 %4805  ;;  %v4804_v33 = vpop.permute.xlu1 %4803 }
 0x840   :  { %v4822_v31 = vsel %vm1133_vm7, %v4804_v33, %v4806_v35 }
 0x841   :  { %v4834_v48 = vadd.f32 %v4822_v31, %v4758_v37  ;;  %5127 = vrot.lane.b32.xlu1 %v5095_v50, %s6431_s12  ;;  %5129 = vrot.lane.b32.xlu0 %v5088_v4, %s6431_s12  ;;  %v538_v50 = vld [vmem:[%s9025_s1] sm:$0x1]  ;;  %v5308_v31 = vld [vmem:[%s9025_s1 + $0x1] sm:$0x1] }
 0x843   :  { %v4810_v26 = vpop.permute.xlu0 %4809  ;;  %v4808_v21 = vpop.permute.xlu1 %4807 }
 0x844   :  { %v4823_v36 = vsel %vm1133_vm7, %v4808_v21, %v4810_v26  ;;  %v541_v21 = vadd.f32 %v5308_v31, %v538_v50 }
 0x845   :  { %v4835_v32 = vadd.f32 %v4823_v36, %v4759_v60  ;;  %5131 = vrot.lane.b32.xlu1 %v5097_v11, %s6431_s12  ;;  %5133 = vrot.lane.b32.xlu0 %v5088_v4, %s6431_s12  ;;  %v5309_v11 = vld [vmem:[%s9025_s1 + $0x2] sm:$0x1] }
 0x846   :  { %v544_v36 = vadd.f32 %v5309_v11, %v541_v21 }
 0x847   :  { %v4814_v58 = vpop.permute.xlu0 %4813  ;;  %v4812_v23 = vpop.permute.xlu1 %4811 }
 0x848   :  { %v4824_v44 = vsel %vm1133_vm7, %v4812_v23, %v4814_v58  ;;  %v5310_v23 = vld [vmem:[%s9025_s1 + $0x3] sm:$0x1] }
 0x849   :  { %v4836_v61 = vadd.f32 %v4824_v44, %v4760_v25  ;;  %v547_v44 = vadd.f32 %v5310_v23, %v544_v36 }
 0x84b   :  { %v4818_v51 = vpop.permute.xlu0 %4817  ;;  %v4816_v55 = vpop.permute.xlu1 %4815 }
 0x84c   :  { %v4825_v52 = vsel %vm1133_vm7, %v4816_v55, %v4818_v51 }
 0x84d   :  { %v4837_v37 = vadd.f32 %v4825_v52, %v4761_v30 }
 0x84f   :  { %v4886_v39 = vpop.permute.xlu0 %4885  ;;  %v4884_v45 = vpop.permute.xlu1 %4883 }
 0x850   :  { %v4908_v10 = vsel %vm1369_vm8, %v4884_v45, %v4886_v39 }
 0x851   :  { %v8817_v16 = vadd.f32 %v4908_v10, %v4832_v59 }
 0x853   :  { %v4890_v56 = vpop.permute.xlu0 %4889  ;;  %v4888_v19 = vpop.permute.xlu1 %4887 }
 0x854   :  { %v4909_v54 = vsel %vm1369_vm8, %v4888_v19, %v4890_v56  ;;  %v5313_v56 = vld [vmem:[%s9025_s1 + $0x6] sm:$0x1] }
 0x855   :  { %v8820_v7 = vadd.f32 %v4909_v54, %v4833_v57  ;;  %v5314_v54 = vld [vmem:[%s9025_s1 + $0x7] sm:$0x1] }
 0x857   :  { %v4894_v9 = vpop.permute.xlu0 %4893  ;;  %v4892_v15 = vpop.permute.xlu1 %4891 }
 0x858   :  { %v4910_v17 = vsel %vm1369_vm8, %v4892_v15, %v4894_v9 }
 0x859   :  { %v8823_v60 = vadd.f32 %v4910_v17, %v4834_v48 }
 0x85b   :  { %v4898_v29 = vpop.permute.xlu0 %4897  ;;  %v4896_v4 = vpop.permute.xlu1 %4895 }
 0x85c   :  { %v4911_v47 = vsel %vm1369_vm8, %v4896_v4, %v4898_v29  ;;  %v5315_v29 = vld [vmem:[%s9025_s1 + $0x8] sm:$0x1] }
 0x85d   :  { %v8826_v43 = vadd.f32 %v4911_v47, %v4835_v32 }
 0x85f   :  { %v4902_v24 = vpop.permute.xlu0 %4901  ;;  %v4900_v28 = vpop.permute.xlu1 %4899 }
 0x860   :  { %v4912_v25 = vsel %vm1369_vm8, %v4900_v28, %v4902_v24 }
 0x861   :  { %v8829_v13 = vadd.f32 %v4912_v25, %v4836_v61  ;;  %v5311_v61 = vld [vmem:[%s9025_s1 + $0x4] sm:$0x1] }
 0x862   :  { %v550_v52 = vadd.f32 %v5311_v61, %v547_v44 }
 0x863   :  { %v4906_v63 = vpop.permute.xlu0 %4905  ;;  %v4904_v14 = vpop.permute.xlu1 %4903 }
 0x864   :  { %v4913_v20 = vsel %vm1369_vm8, %v4904_v14, %v4906_v63  ;;  %v5155_v63 = vlaneseq }
 0x865   :  { %v8832_v30 = vadd.f32 %v4913_v20, %v4837_v37  ;;  %v5312_v37 = vld [vmem:[%s9025_s1 + $0x5] sm:$0x1] }
 0x866   :  { %v553_v39 = vadd.f32 %v5312_v37, %v550_v52  ;;  %v5156_v50 = vshrl.u32 %v5155_v63, 7 }
 0x867   :  { %v4962_v38 = vpop.permute.xlu0 %4961  ;;  %v4960_v6 = vpop.permute.xlu1 %4959 }
 0x868   :  { %v556_v19 = vadd.f32 %v5313_v56, %v553_v39  ;;  %v4984_v31 = vsel %vm1501_vm9, %v4960_v6, %v4962_v38  ;;  %v5157_v36 = vsub.s32 0, %v5156_v50 }
 0x869   :  { %v4996_v61 = vadd.f32 %v4984_v31, %v8817_v16 }
 0x86a   :  { %v559_v17 = vadd.f32 %v5314_v54, %v556_v19 }
 0x86b   :  { %v4966_v3 = vpop.permute.xlu0 %4965  ;;  %v4964_v1 = vpop.permute.xlu1 %4963 }
 0x86c   :  { %v562_v4 = vadd.f32 %v5315_v29, %v559_v17  ;;  %v4985_v52 = vsel %vm1501_vm9, %v4964_v1, %v4966_v3 }
 0x86d   :  { %v4997_v6 = vadd.f32 %v4985_v52, %v8820_v7 }
 0x86e   :  { %6425 = vrcp.f32 %v562_v4 }
 0x86f   :  { %v4970_v59 = vpop.permute.xlu0 %4969  ;;  %v4968_v49 = vpop.permute.xlu1 %4967 }
 0x870   :  { %v4986_v29 = vsel %vm1501_vm9, %v4968_v49, %v4970_v59 }
 0x871   :  { %v4998_v63 = vadd.f32 %v4986_v29, %v8823_v60 }
 0x873   :  { %v8834_v42 = vpop.permute.xlu0 %4973  ;;  %v8836_v0 = vpop.permute.xlu1 %4971 }
 0x874   :  { %v4987_v7 = vsel %vm1501_vm9, %v8836_v0, %v8834_v42 }
 0x877   :  { %v8838_v12 = vpop.permute.xlu0 %4977  ;;  %v8840_v57 = vpop.permute.xlu1 %4975 }
 0x878   :  { %v6426_v23 = vpop.eup %6425  ;;  %v4988_v42 = vsel %vm1501_vm9, %v8840_v57, %v8838_v12 }
 0x879   :  { %v8887_v56 = vrot.slane %v6426_v23, %v5157_v36 }
 0x87b   :  { %v8842_v35 = vpop.permute.xlu0 %4981  ;;  %v8844_v33 = vpop.permute.xlu1 %4979 }
 0x87c   :  { %v4989_v12 = vsel %vm1501_vm9, %v8844_v33, %v8842_v35 }
 0x87f   :  { %v5038_v48 = vpop.permute.xlu0 %5037  ;;  %v5036_v26 = vpop.permute.xlu1 %5035 }
 0x880   :  { %v5060_v44 = vsel %vm1633_vm10, %v5036_v26, %v5038_v48 }
 0x881   :  { %v5072_v37 = vadd.f32 %v5060_v44, %v4996_v61 }
 0x883   :  { %v5042_v32 = vpop.permute.xlu0 %5041  ;;  %v5040_v58 = vpop.permute.xlu1 %5039 }
 0x884   :  { %v5061_v54 = vsel %vm1633_vm10, %v5040_v58, %v5042_v32 }
 0x885   :  { %v5073_v4 = vadd.f32 %v5061_v54, %v4997_v6 }
 0x887   :  { %v5046_v51 = vpop.permute.xlu0 %5045  ;;  %v5044_v55 = vpop.permute.xlu1 %5043 }
 0x888   :  { %v5062_v3 = vsel %vm1633_vm10, %v5044_v55, %v5046_v51  ;;  %v4999_v55 = vadd.f32 %v4987_v7, %v8826_v43 }
 0x889   :  { %v5074_v58 = vadd.f32 %v5062_v3, %v4998_v63 }
 0x88b   :  { %v5050_v45 = vpop.permute.xlu0 %5049  ;;  %v5048_v10 = vpop.permute.xlu1 %5047 }
 0x88c   :  { %v5063_v23 = vsel %vm1633_vm10, %v5048_v10, %v5050_v45 }
 0x88d   :  { %v5075_v0 = vadd.f32 %v5063_v23, %v4999_v55 }
 0x88f   :  { %v5054_v9 = vpop.permute.xlu0 %5053  ;;  %v5052_v15 = vpop.permute.xlu1 %5051 }
 0x890   :  { %v5064_v43 = vsel %vm1633_vm10, %v5052_v15, %v5054_v9 }
 0x893   :  { %v8873_v47 = vpop.permute.xlu0 %5057  ;;  %v8875_v24 = vpop.permute.xlu1 %5055 }
 0x8a4   :  { %v5180_v28 = vpop.permute.xlu0 %5179  ;;  %v5175_v25 = vpop.permute.xlu1 %5174 }
 0x8a8   :  { %v8877_v14 = vpop.permute.xlu0 %5189  ;;  %v5185_v20 = vpop.permute.xlu1 %5184 }
 0x8ac   :  { %v8880_v21 = vpop.permute.xlu0 %5199  ;;  %v8882_v11 = vpop.permute.xlu1 %5194 }
 0x8b0   :  { %v5114_v39 = vpop.permute.xlu0 %5113  ;;  %v5112_v19 = vpop.permute.xlu1 %5111 }
 0x8b1   :  { %v5136_v38 = vsel %vm1765_vm11, %v5112_v19, %v5114_v39 }
 0x8b2   :  { %v5148_v17 = vadd.f32 %v5136_v38, %v5072_v37  ;;  %v5000_v37 = vadd.f32 %v4988_v42, %v8829_v13  ;;  %v5065_v13 = vsel %vm1633_vm10, %v8875_v24, %v8873_v47 }
 0x8b4   :  { %v5160_v48 = vmul.f32 %v8887_v56, %v5148_v17  ;;  %v5118_v16 = vpop.permute.xlu0 %5117  ;;  %v5116_v26 = vpop.permute.xlu1 %5115  ;;  %v5076_v57 = vadd.f32 %v5064_v43, %v5000_v37 }
 0x8b5   :  { %v5137_v1 = vsel %vm1765_vm11, %v5116_v26, %v5118_v16 }
 0x8b6   :  { %v5202_v50 = vadd.f32 %v5175_v25, %v5160_v48  ;;  %v5149_v32 = vadd.f32 %v5137_v1, %v5073_v4 }
 0x8b8   :  { %v5208_v31 = vmax.f32 %v5202_v50, 0.0  ;;  %v5161_v59 = vmul.f32 %v8887_v56, %v5149_v32  ;;  %v5122_v49 = vpop.permute.xlu0 %5121  ;;  %v5120_v36 = vpop.permute.xlu1 %5119 }
 0x8b9   :  { %v5138_v51 = vsel %vm1765_vm11, %v5120_v36, %v5122_v49 }
 0x8ba   :  { %5214 = vst.msk [vmem:[%s9029_s10 + $0x90] sm:$0xff] %vm78_vm0, %v5208_v31  ;;  %v5203_v60 = vadd.f32 %v5180_v28, %v5161_v59  ;;  %v5150_v25 = vadd.f32 %v5138_v51, %v5074_v58  ;;  %5226 = vrot.lane.b32.xlu1 %v5208_v31, %s6428_s17 }
 0x8bc   :  { %v5209_v44 = vmax.f32 %v5203_v60, 0.0  ;;  %v5162_v45 = vmul.f32 %v8887_v56, %v5150_v25  ;;  %v5126_v10 = vpop.permute.xlu0 %5125  ;;  %v5124_v61 = vpop.permute.xlu1 %5123 }
 0x8bd   :  { %v5139_v52 = vsel %vm1765_vm11, %v5124_v61, %v5126_v10 }
 0x8be   :  { %5215 = vst.msk [vmem:[%s9029_s10 + $0x98] sm:$0xff] %vm78_vm0, %v5209_v44  ;;  %v5204_v28 = vadd.f32 %v5185_v20, %v5162_v45  ;;  %v5151_v39 = vadd.f32 %v5139_v52, %v5075_v0  ;;  %5228 = vrot.lane.b32.xlu0 %v5209_v44, %s6428_s17  ;;  %v5001_v20 = vadd.f32 %v4989_v12, %v8832_v30 }
 0x8c0   :  { %v5210_v19 = vmax.f32 %v5204_v28, 0.0  ;;  %v5163_v9 = vmul.f32 %v8887_v56, %v5151_v39  ;;  %v5130_v15 = vpop.permute.xlu0 %5129  ;;  %v5128_v54 = vpop.permute.xlu1 %5127  ;;  %v5077_v6 = vadd.f32 %v5065_v13, %v5001_v20 }
 0x8c1   :  { %v5140_v38 = vsel %vm1765_vm11, %v5128_v54, %v5130_v15 }
 0x8c2   :  { %5216 = vst.msk [vmem:[%s9029_s10 + $0xa0] sm:$0xff] %vm78_vm0, %v5210_v19  ;;  %v5205_v35 = vadd.f32 %v8877_v14, %v5163_v9  ;;  %v5152_v33 = vadd.f32 %v5140_v38, %v5076_v57  ;;  %5230 = vrot.lane.b32.xlu1 %v5210_v19, %s6428_s17 }
 0x8c4   :  { %v5211_v17 = vmax.f32 %v5205_v35, 0.0  ;;  %v5164_v29 = vmul.f32 %v8887_v56, %v5152_v33  ;;  %v5134_v4 = vpop.permute.xlu0 %5133  ;;  %v5132_v47 = vpop.permute.xlu1 %5131 }
 0x8c5   :  { %v5141_v24 = vsel %vm1765_vm11, %v5132_v47, %v5134_v4 }
 0x8c6   :  { %5217 = vst.msk [vmem:[%s9029_s10 + $0xa8] sm:$0xff] %vm78_vm0, %v5211_v17  ;;  %v5206_v30 = vadd.f32 %v8882_v11, %v5164_v29  ;;  %v5153_v48 = vadd.f32 %v5141_v24, %v5077_v6  ;;  %5232 = vrot.lane.b32.xlu0 %v5211_v17, %s6428_s17  ;;  %4492 = vrot.lane.b32.xlu1 %v4474_v2, %s6428_s17 }
 0x8c8   :  { %v5212_v14 = vmax.f32 %v5206_v30, 0.0  ;;  %v5165_v16 = vmul.f32 %v8887_v56, %v5153_v48 }
 0x8ca   :  { %5218 = vst.msk [vmem:[%s9029_s10 + $0xb0] sm:$0xff] %vm78_vm0, %v5212_v14  ;;  %v5207_v26 = vadd.f32 %v8880_v21, %v5165_v16  ;;  %4494 = vrot.lane.b32.xlu0 %v4475_v5, %s6428_s17  ;;  %4496 = vrot.lane.b32.xlu1 %v4476_v41, %s6428_s17 }
 0x8cc   :  { %v5213_v46 = vmax.f32 %v5207_v26, 0.0 }
 0x8ce   :  { %5219 = vst.msk [vmem:[%s9029_s10 + $0xb8] sm:$0xff] %vm78_vm0, %v5213_v46  ;;  %4498 = vrot.lane.b32.xlu0 %v4477_v22, %s6428_s17  ;;  %4500 = vrot.lane.b32.xlu1 %v4478_v8, %s6428_s17 }
 0x8d2   :  { %5234 = vrot.lane.b32.xlu1 %v5212_v14, %s6428_s17  ;;  %4502 = vrot.lane.b32.xlu0 %v4479_v34, %s6428_s17 }
 0x8d6   :  { %5236 = vrot.lane.b32.xlu0 %v5213_v46, %s6428_s17 }
 0x92c   :  { %v5227_v2 = vpop.permute.xlu1 %5226 }
 0x92d   :  { %5700 = vst.msk [vmem:[%s9029_s10 + $0x150] sm:$0xff] %vm78_vm0, %v5227_v2 }
 0x930   :  { %v5229_v62 = vpop.permute.xlu0 %5228 }
 0x931   :  { %5701 = vst.msk [vmem:[%s9029_s10 + $0x158] sm:$0xff] %vm78_vm0, %v5229_v62 }
 0x934   :  { %v5231_v5 = vpop.permute.xlu1 %5230 }
 0x935   :  { %5702 = vst.msk [vmem:[%s9029_s10 + $0x160] sm:$0xff] %vm78_vm0, %v5231_v5 }
 0x938   :  { %v5233_v18 = vpop.permute.xlu0 %5232  ;;  %v4493_v41 = vpop.permute.xlu1 %4492 }
 0x939   :  { %5703 = vst.msk [vmem:[%s9029_s10 + $0x168] sm:$0xff] %vm78_vm0, %v5233_v18  ;;  %5679 = vst.msk [vmem:[%s9029_s10 + $0x120] sm:$0xff] %vm78_vm0, %v4493_v41 }
 0x93c   :  { %v4495_v53 = vpop.permute.xlu0 %4494  ;;  %v4497_v22 = vpop.permute.xlu1 %4496 }
 0x93d   :  { %5680 = vst.msk [vmem:[%s9029_s10 + $0x128] sm:$0xff] %vm78_vm0, %v4495_v53  ;;  %5681 = vst.msk [vmem:[%s9029_s10 + $0x130] sm:$0xff] %vm78_vm0, %v4497_v22 }
 0x940   :  { %v4499_v27 = vpop.permute.xlu0 %4498  ;;  %v4501_v8 = vpop.permute.xlu1 %4500 }
 0x941   :  { %5682 = vst.msk [vmem:[%s9029_s10 + $0x138] sm:$0xff] %vm78_vm0, %v4499_v27  ;;  %5683 = vst.msk [vmem:[%s9029_s10 + $0x140] sm:$0xff] %vm78_vm0, %v4501_v8 }
 0x944   :  { %v5235_v40 = vpop.permute.xlu1 %5234  ;;  %v4503_v34 = vpop.permute.xlu0 %4502 }
 0x945   :  { %5704 = vst.msk [vmem:[%s9029_s10 + $0x170] sm:$0xff] %vm78_vm0, %v5235_v40  ;;  %5684 = vst.msk [vmem:[%s9029_s10 + $0x148] sm:$0xff] %vm78_vm0, %v4503_v34 }
 0x948   :  { %v5237_v21 = vpop.permute.xlu0 %5236 }
 0x949   :  { %5705 = vst.msk [vmem:[%s9029_s10 + $0x178] sm:$0xff] %vm78_vm0, %v5237_v21 }

</bundles_post_ra>
